<compile_context>
chip_gen: v5e
topology: v5e:2x2
jax: 0.10.0
libtpu: 0.0.40
codegen_flags: <defaults>
</compile_context>

<pallas_src>
import jax
import jax.numpy as jnp
from jax import lax
from jax.experimental import pallas as pl
from jax.experimental.pallas import tpu as pltpu


# ----------------------------------------------------------------------------
# Static tap tables for the phase-decomposed (space-to-depth by `s`) layout.
# A tap of a stride-s conv / transposed conv becomes (phase plane, flat offset)
# on pad-`pad` padded per-phase planes of shape (Hp, Wp), flattened row-major.
# ----------------------------------------------------------------------------
def _phase_pad(k, s, p):
    offs = [abs((i - p) // s) for i in range(k)]
    offs += [abs((r + p - i) // s)
             for r in range(s) for i in range(k) if (r + p - i) % s == 0]
    return max(offs)


def _conv_taps(k, s, p, Wp):
    taps = []
    for i in range(k):
        for j in range(k):
            py, dy = (i - p) % s, (i - p) // s
            px, dx = (j - p) % s, (j - p) // s
            taps.append((py * s + px, dy * Wp + dx))
    return taps


def _deconv_taps(k, s, p, Wp):
    per_phase = []
    for ry in range(s):
        for rx in range(s):
            taps = []
            for i in range(k):
                if (ry + p - i) % s:
                    continue
                dy = (ry + p - i) // s
                for j in range(k):
                    if (rx + p - j) % s:
                        continue
                    dx = (rx + p - j) // s
                    taps.append((i * k + j, dy * Wp + dx))
            per_phase.append(taps)
    return per_phase


# ----------------------------------------------------------------------------
# Fused kernel: one grid step == one batch image; every stage stays in VMEM.
# ----------------------------------------------------------------------------
def _make_fused_kernel(k, s, p, Hq, Wq, pad, compute_dtype):
    P = s * s
    Hp, Wp = Hq + 2 * pad, Wq + 2 * pad
    Lp = Hp * Wp
    G = pad * Wp + pad                       # guard >= max |flat tap offset|
    conv_taps = _conv_taps(k, s, p, Wp)
    deconv_taps = _deconv_taps(k, s, p, Wp)
    cdt = compute_dtype

    def kernel(x_ref, wd_ref, w1_ref, w2_ref, w3_ref,
               bd_ref, b1_ref, b2_ref, b3_ref, alpha_ref, mask_ref,
               o_ref, deep_scr, c1_scr, e_scr):
        C = b1_ref.shape[0]

        # Guards of every padded plane must read back as exact zeros.
        deep_scr[...] = jnp.zeros(deep_scr.shape, deep_scr.dtype)
        c1_scr[...] = jnp.zeros(c1_scr.shape, c1_scr.dtype)
        e_scr[...] = jnp.zeros(e_scr.shape, e_scr.dtype)

        mask = mask_ref[...]                          # (1, Lp) interior mask
        a_d, a_1 = alpha_ref[0], alpha_ref[1]
        a_2, a_3 = alpha_ref[2], alpha_ref[3]

        # -- stage 0: deep = PReLU(Wd @ x + bd)   (1x1 conv, per phase) ------
        for ph in range(P):
            xm = x_ref[0, ph].astype(cdt)             # (Cin, Lp), in-kernel cast
            y = jnp.dot(wd_ref[...].astype(cdt), xm,
                        preferred_element_type=jnp.float32)
            y = y + bd_ref[...]
            y = jnp.where(y >= 0.0, y, a_d * y)
            deep_scr[ph, :, G:G + Lp] = (y * mask).astype(deep_scr.dtype)

        # -- stage 1: c1 = PReLU(conv_s(deep, W1) + b1) -----------------------
        acc = jnp.zeros((C, Lp), jnp.float32)
        for t, (ph, off) in enumerate(conv_taps):
            sl = deep_scr[ph, :, G + off:G + off + Lp]          # (C, Lp)
            acc = acc + jnp.dot(w1_ref[t].astype(cdt), sl,
                                preferred_element_type=jnp.float32)
        y = acc + b1_ref[...]
        y = jnp.where(y >= 0.0, y, a_1 * y)
        c1f = y * mask                                          # f32, zero margins
        c1_scr[:, G:G + Lp] = c1f.astype(c1_scr.dtype)

        # -- stage 2: e = PReLU(convT_s(c1, W2) + b2) - deep  (per phase) -----
        for ph in range(P):
            acc = jnp.zeros((C, Lp), jnp.float32)
            for t, off in deconv_taps[ph]:
                sl = c1_scr[:, G + off:G + off + Lp]
                acc = acc + jnp.dot(w2_ref[t].astype(cdt), sl,
                                    preferred_element_type=jnp.float32)
            y = acc + b2_ref[...]
            y = jnp.where(y >= 0.0, y, a_2 * y)
            y = y - deep_scr[ph, :, G:G + Lp].astype(jnp.float32)
            e_scr[ph, :, G:G + Lp] = (y * mask).astype(e_scr.dtype)

        # -- stage 3: out = PReLU(conv_s(e, W3) + b3) + c1 --------------------
        acc = jnp.zeros((C, Lp), jnp.float32)
        for t, (ph, off) in enumerate(conv_taps):
            sl = e_scr[ph, :, G + off:G + off + Lp]
            acc = acc + jnp.dot(w3_ref[t].astype(cdt), sl,
                                preferred_element_type=jnp.float32)
        y = acc + b3_ref[...]
        y = jnp.where(y >= 0.0, y, a_3 * y)
        o_ref[0] = (y + c1f).astype(o_ref.dtype)

    return kernel, Lp, G


# ----------------------------------------------------------------------------
# Wrapper: single cheap layout pass on the input, one pallas_call, tiny crop.
# ----------------------------------------------------------------------------
def deep_down_projection_block(x_nchw, params, kernel_size, stride, padding,
                               compute_dtype=jnp.bfloat16):
    """Fused DBPN DeepDownProjectionBlock forward.  x: (N, Cin, H, W) f32."""
    N, Cin, H, W = x_nchw.shape
    k, s, p = kernel_size, stride, padding
    C = params["Wd"].shape[0]
    if k != s + 2 * p or H % s or W % s:
        raise NotImplementedError(
            "fused phase-decomposed kernel needs k == s + 2p and H, W % s == 0")

    P = s * s
    Hq, Wq = H // s, W // s
    pad = _phase_pad(k, s, p)
    Hp, Wp = Hq + 2 * pad, Wq + 2 * pad
    Lp = Hp * Wp

    kernel, _, G = _make_fused_kernel(k, s, p, Hq, Wq, pad, compute_dtype)
    Lg = Lp + 2 * G

    # Space-to-depth + pad + flatten: one tiny XLA layout pass over the input.
    xq = x_nchw.reshape(N, Cin, Hq, s, Wq, s).transpose(0, 3, 5, 1, 2, 4)
    xq = jnp.pad(xq.reshape(N, P, Cin, Hq, Wq),
                 ((0, 0), (0, 0), (0, 0), (pad, pad), (pad, pad)))
    x_ph = xq.reshape(N, P, Cin, Lp)

    wd = params["Wd"].reshape(C, Cin)
    w1 = params["W1"].transpose(2, 3, 0, 1).reshape(k * k, C, C)   # [t] -> (co,ci)
    w2 = params["W2t"].transpose(2, 3, 1, 0).reshape(k * k, C, C)  # [t] -> (co,ci)
    w3 = params["W3"].transpose(2, 3, 0, 1).reshape(k * k, C, C)
    bd = params["bd"].astype(jnp.float32).reshape(C, 1)
    b1 = params["b1"].astype(jnp.float32).reshape(C, 1)
    b2 = params["b2"].astype(jnp.float32).reshape(C, 1)
    b3 = params["b3"].astype(jnp.float32).reshape(C, 1)
    alphas = jnp.stack([jnp.asarray(params[n_], jnp.float32)
                        for n_ in ("ad", "a1", "a2", "a3")])
    mask = jnp.zeros((Hp, Wp), jnp.float32)
    mask = mask.at[pad:pad + Hq, pad:pad + Wq].set(1.0).reshape(1, Lp)

    out_pad = pl.pallas_call(
        kernel,
        out_shape=jax.ShapeDtypeStruct((N, C, Lp), jnp.float32),
        grid_spec=pltpu.PrefetchScalarGridSpec(
            num_scalar_prefetch=0,
            grid=(N,),
            in_specs=[
                pl.BlockSpec((1, P, Cin, Lp), lambda n: (n, 0, 0, 0)),   # x_ph
                pl.BlockSpec((C, Cin), lambda n: (0, 0)),                # Wd
                pl.BlockSpec((k * k, C, C), lambda n: (0, 0, 0)),        # W1
                pl.BlockSpec((k * k, C, C), lambda n: (0, 0, 0)),        # W2
                pl.BlockSpec((k * k, C, C), lambda n: (0, 0, 0)),        # W3
                pl.BlockSpec((C, 1), lambda n: (0, 0)),                  # bd
                pl.BlockSpec((C, 1), lambda n: (0, 0)),                  # b1
                pl.BlockSpec((C, 1), lambda n: (0, 0)),                  # b2
                pl.BlockSpec((C, 1), lambda n: (0, 0)),                  # b3
                pl.BlockSpec(memory_space=pltpu.MemorySpace.SMEM),       # alphas
                pl.BlockSpec((1, Lp), lambda n: (0, 0)),                 # mask
            ],
            out_specs=pl.BlockSpec((1, C, Lp), lambda n: (n, 0, 0)),
            scratch_shapes=[
                pltpu.VMEM((P, C, Lg), compute_dtype),   # deep phase planes
                pltpu.VMEM((C, Lg), compute_dtype),      # c1 plane
                pltpu.VMEM((P, C, Lg), compute_dtype),   # e = conv2 - deep
            ],
        ),
        compiler_params=pltpu.CompilerParams(
            dimension_semantics=("parallel",),
            vmem_limit_bytes=16 * 1024 * 1024,
        ),
    )(x_ph, wd, w1, w2, w3, bd, b1, b2, b3, alphas, mask)

    out = out_pad.reshape(N, C, Hp, Wp)[:, :, pad:pad + Hq, pad:pad + Wq]
    return out


# ----------------------------------------------------------------------------
# Pure-JAX reference (lax convolutions) for verification
# ----------------------------------------------------------------------------
def _prelu(x, a):
    return jnp.maximum(x, 0.0) + a * jnp.minimum(x, 0.0)


def ref_forward(x_nchw, params, k, s, p):
    dn = ("NCHW", "OIHW", "NCHW")
    prec = lax.Precision.HIGHEST
    deep = lax.conv_general_dilated(x_nchw, params["Wd"], (1, 1),
                                    [(0, 0), (0, 0)], dimension_numbers=dn,
                                    precision=prec)
    deep = _prelu(deep + params["bd"][None, :, None, None], params["ad"])
    c1 = lax.conv_general_dilated(deep, params["W1"], (s, s),
                                  [(p, p), (p, p)], dimension_numbers=dn,
                                  precision=prec)
    c1 = _prelu(c1 + params["b1"][None, :, None, None], params["a1"])
    w2_eq = jnp.transpose(params["W2t"], (1, 0, 2, 3))[:, :, ::-1, ::-1]
    c2 = lax.conv_general_dilated(c1, w2_eq, (1, 1),
                                  [(k - 1 - p,) * 2] * 2,
                                  lhs_dilation=(s, s), dimension_numbers=dn,
                                  precision=prec)
    c2 = _prelu(c2 + params["b2"][None, :, None, None], params["a2"]) - deep
    c3 = lax.conv_general_dilated(c2, params["W3"], (s, s),
                                  [(p, p), (p, p)], dimension_numbers=dn,
                                  precision=prec)
    c3 = _prelu(c3 + params["b3"][None, :, None, None], params["a3"]) + c1
    return c3


# ----------------------------------------------------------------------------
if __name__ == "__main__":
    # DBPN-style config: channels=4, kernel=6, stride=2, pad=2, num_stage=2.
    channels, kernel_size, stride, padding, num_stage = 4, 6, 2, 2, 2
    N, H, W = 2, 16, 16
    Cin = channels * num_stage

    key = jax.random.PRNGKey(0)
    ks = jax.random.split(key, 9)
    params = {
        "Wd": 0.1 * jax.random.normal(ks[0], (channels, Cin, 1, 1), jnp.float32),
        "bd": 0.1 * jax.random.normal(ks[1], (channels,), jnp.float32),
        "ad": jnp.float32(0.25),
        "W1": 0.1 * jax.random.normal(ks[2], (channels, channels,
                                              kernel_size, kernel_size),
                                      jnp.float32),
        "b1": 0.1 * jax.random.normal(ks[3], (channels,), jnp.float32),
        "a1": jnp.float32(0.25),
        "W2t": 0.1 * jax.random.normal(ks[4], (channels, channels,
                                               kernel_size, kernel_size),
                                       jnp.float32),
        "b2": 0.1 * jax.random.normal(ks[5], (channels,), jnp.float32),
        "a2": jnp.float32(0.25),
        "W3": 0.1 * jax.random.normal(ks[6], (channels, channels,
                                              kernel_size, kernel_size),
                                      jnp.float32),
        "b3": 0.1 * jax.random.normal(ks[7], (channels,), jnp.float32),
        "a3": jnp.float32(0.25),
    }
    x = jax.random.normal(ks[8], (N, Cin, H, W), jnp.float32)

    fwd_f32 = jax.jit(lambda xx, pp: deep_down_projection_block(
        xx, pp, kernel_size, stride, padding, jnp.float32))
    fwd_bf16 = jax.jit(lambda xx, pp: deep_down_projection_block(
        xx, pp, kernel_size, stride, padding, jnp.bfloat16))

    ref = jax.block_until_ready(ref_forward(x, params, kernel_size, stride,
                                            padding))

    out_f32 = jax.block_until_ready(fwd_f32(x, params))
    assert out_f32.shape == (N, channels, H // stride, W // stride), out_f32.shape
    err = float(jnp.max(jnp.abs(out_f32 - ref)))
    assert jnp.allclose(out_f32, ref, rtol=2e-4, atol=2e-4), err

    # bf16 MXU operands + bf16 inter-stage activations (f32 epilogue): looser.
    out_bf16 = jax.block_until_ready(fwd_bf16(x, params))
    err_bf = float(jnp.max(jnp.abs(out_bf16 - ref)))
    assert jnp.allclose(out_bf16, ref, rtol=5e-2, atol=5e-2), err_bf

    print("KERNEL_OK")
</pallas_src>

<mosaic_0001>
module attributes {stable_mosaic.version = 11 : i64} {
  func.func @kernel(%arg0: i32, %arg1: memref<1x4x8x100xf32, #tpu.memory_space<vmem>>, %arg2: memref<4x8xf32, #tpu.memory_space<vmem>>, %arg3: memref<36x4x4xf32, #tpu.memory_space<vmem>>, %arg4: memref<36x4x4xf32, #tpu.memory_space<vmem>>, %arg5: memref<36x4x4xf32, #tpu.memory_space<vmem>>, %arg6: memref<4x1xf32, #tpu.memory_space<vmem>>, %arg7: memref<4x1xf32, #tpu.memory_space<vmem>>, %arg8: memref<4x1xf32, #tpu.memory_space<vmem>>, %arg9: memref<4x1xf32, #tpu.memory_space<vmem>>, %arg10: memref<4xf32, #tpu.memory_space<smem>>, %arg11: memref<1x100xf32, #tpu.memory_space<vmem>>, %arg12: memref<1x4x100xf32, #tpu.memory_space<vmem>>, %arg13: memref<4x4x122xf32, #tpu.memory_space<vmem>>, %arg14: memref<4x122xf32, #tpu.memory_space<vmem>>, %arg15: memref<4x4x122xf32, #tpu.memory_space<vmem>>) attributes {dimension_semantics = [#tpu.dimension_semantics<parallel>], iteration_bounds = array<i64: 2>, scalar_prefetch = 0 : i64, scratch_operands = 3 : i64, tpu.core_type = #tpu.core_type<tc>, window_params = [{transform_indices = @transform_0, window_bounds = array<i64: 1, 4, 8, 100>}, {pipeline_mode = #tpu.pipeline_mode<synchronous>, transform_indices = @transform_1, window_bounds = array<i64: 4, 8>}, {pipeline_mode = #tpu.pipeline_mode<synchronous>, transform_indices = @transform_2, window_bounds = array<i64: 36, 4, 4>}, {pipeline_mode = #tpu.pipeline_mode<synchronous>, transform_indices = @transform_3, window_bounds = array<i64: 36, 4, 4>}, {pipeline_mode = #tpu.pipeline_mode<synchronous>, transform_indices = @transform_4, window_bounds = array<i64: 36, 4, 4>}, {pipeline_mode = #tpu.pipeline_mode<synchronous>, transform_indices = @transform_5, window_bounds = array<i64: 4, 1>}, {pipeline_mode = #tpu.pipeline_mode<synchronous>, transform_indices = @transform_6, window_bounds = array<i64: 4, 1>}, {pipeline_mode = #tpu.pipeline_mode<synchronous>, transform_indices = @transform_7, window_bounds = array<i64: 4, 1>}, {pipeline_mode = #tpu.pipeline_mode<synchronous>, transform_indices = @transform_8, window_bounds = array<i64: 4, 1>}, {transform_indices = @transform_9, window_bounds = array<i64: 4>}, {pipeline_mode = #tpu.pipeline_mode<synchronous>, transform_indices = @transform_10, window_bounds = array<i64: 1, 100>}, {transform_indices = @transform_11, window_bounds = array<i64: 1, 4, 100>}]} {
    %cst = arith.constant 0.000000e+00 : f32
    %0 = vector.broadcast %cst : f32 to vector<4x4x122xf32>
    %c0 = arith.constant 0 : index
    %c0_0 = arith.constant 0 : index
    %c0_1 = arith.constant 0 : index
    %1 = vector.load %arg13[%c0, %c0_0, %c0_1] : memref<4x4x122xf32, #tpu.memory_space<vmem>>, vector<4x4x122xf32>
    tpu.vector_store %arg13[%c0, %c0_0, %c0_1], %0 {strides = array<i32>} : memref<4x4x122xf32, #tpu.memory_space<vmem>>, vector<4x4x122xf32>,
    %cst_2 = arith.constant 0.000000e+00 : f32
    %2 = vector.broadcast %cst_2 : f32 to vector<4x122xf32>
    %c0_3 = arith.constant 0 : index
    %c0_4 = arith.constant 0 : index
    %3 = vector.load %arg14[%c0_3, %c0_4] : memref<4x122xf32, #tpu.memory_space<vmem>>, vector<4x122xf32>
    tpu.vector_store %arg14[%c0_3, %c0_4], %2 {strides = array<i32>} : memref<4x122xf32, #tpu.memory_space<vmem>>, vector<4x122xf32>,
    %cst_5 = arith.constant 0.000000e+00 : f32
    %4 = vector.broadcast %cst_5 : f32 to vector<4x4x122xf32>
    %c0_6 = arith.constant 0 : index
    %c0_7 = arith.constant 0 : index
    %c0_8 = arith.constant 0 : index
    %5 = vector.load %arg15[%c0_6, %c0_7, %c0_8] : memref<4x4x122xf32, #tpu.memory_space<vmem>>, vector<4x4x122xf32>
    tpu.vector_store %arg15[%c0_6, %c0_7, %c0_8], %4 {strides = array<i32>} : memref<4x4x122xf32, #tpu.memory_space<vmem>>, vector<4x4x122xf32>,
    %c0_9 = arith.constant 0 : index
    %c0_10 = arith.constant 0 : index
    %6 = vector.load %arg11[%c0_9, %c0_10] : memref<1x100xf32, #tpu.memory_space<vmem>>, vector<1x100xf32>
    %c0_11 = arith.constant 0 : index
    %7 = memref.load %arg10[%c0_11] : memref<4xf32, #tpu.memory_space<smem>>
    %c1 = arith.constant 1 : index
    %8 = memref.load %arg10[%c1] : memref<4xf32, #tpu.memory_space<smem>>
    %c2 = arith.constant 2 : index
    %9 = memref.load %arg10[%c2] : memref<4xf32, #tpu.memory_space<smem>>
    %c3 = arith.constant 3 : index
    %10 = memref.load %arg10[%c3] : memref<4xf32, #tpu.memory_space<smem>>
    %c0_12 = arith.constant 0 : index
    %c0_13 = arith.constant 0 : index
    %c0_14 = arith.constant 0 : index
    %c0_15 = arith.constant 0 : index
    %11 = vector.load %arg1[%c0_12, %c0_13, %c0_14, %c0_15] : memref<1x4x8x100xf32, #tpu.memory_space<vmem>>, vector<1x1x8x100xf32>
    %12 = vector.shape_cast %11 : vector<1x1x8x100xf32> to vector<8x100xf32>
    %c0_16 = arith.constant 0 : index
    %c0_17 = arith.constant 0 : index
    %13 = vector.load %arg2[%c0_16, %c0_17] : memref<4x8xf32, #tpu.memory_space<vmem>>, vector<4x8xf32>
    %cst_18 = arith.constant dense<0.000000e+00> : vector<4x100xf32>
    %14 = tpu.matmul %13, %12, %cst_18 {dimension_numbers = #tpu.dot_dimension_numbers<[1], [0], [0], [1], [0, 0, 1, 1], [], []>} : vector<4x8xf32>, vector<8x100xf32>, vector<4x100xf32> -> vector<4x100xf32>
    %c0_19 = arith.constant 0 : index
    %c0_20 = arith.constant 0 : index
    %15 = vector.load %arg6[%c0_19, %c0_20] : memref<4x1xf32, #tpu.memory_space<vmem>>, vector<4x1xf32>
    %16 = vector.broadcast %15 : vector<4x1xf32> to vector<4x100xf32>
    %17 = arith.addf %14, %16 : vector<4x100xf32>
    %cst_21 = arith.constant 0.000000e+00 : f32
    %18 = vector.broadcast %cst_21 : f32 to vector<4x100xf32>
    %19 = arith.cmpf oge, %17, %18 : vector<4x100xf32>
    %20 = vector.broadcast %7 : f32 to vector<4x100xf32>
    %21 = arith.mulf %20, %17 : vector<4x100xf32>
    %22 = arith.select %19, %17, %21 : vector<4x100xi1>, vector<4x100xf32>
    %23 = vector.broadcast %6 : vector<1x100xf32> to vector<4x100xf32>
    %24 = arith.mulf %22, %23 : vector<4x100xf32>
    %c0_22 = arith.constant 0 : index
    %c0_23 = arith.constant 0 : index
    %c11 = arith.constant 11 : index
    %25 = vector.load %arg13[%c0_22, %c0_23, %c11] : memref<4x4x122xf32, #tpu.memory_space<vmem>>, vector<1x4x100xf32>
    %26 = vector.shape_cast %25 : vector<1x4x100xf32> to vector<4x100xf32>
    %27 = vector.shape_cast %24 : vector<4x100xf32> to vector<1x4x100xf32>
    tpu.vector_store %arg13[%c0_22, %c0_23, %c11], %27 {strides = array<i32>} : memref<4x4x122xf32, #tpu.memory_space<vmem>>, vector<1x4x100xf32>,
    %c0_24 = arith.constant 0 : index
    %c1_25 = arith.constant 1 : index
    %c0_26 = arith.constant 0 : index
    %c0_27 = arith.constant 0 : index
    %28 = vector.load %arg1[%c0_24, %c1_25, %c0_26, %c0_27] : memref<1x4x8x100xf32, #tpu.memory_space<vmem>>, vector<1x1x8x100xf32>
    %29 = vector.shape_cast %28 : vector<1x1x8x100xf32> to vector<8x100xf32>
    %c0_28 = arith.constant 0 : index
    %c0_29 = arith.constant 0 : index
    %30 = vector.load %arg2[%c0_28, %c0_29] : memref<4x8xf32, #tpu.memory_space<vmem>>, vector<4x8xf32>
    %cst_30 = arith.constant dense<0.000000e+00> : vector<4x100xf32>
    %31 = tpu.matmul %30, %29, %cst_30 {dimension_numbers = #tpu.dot_dimension_numbers<[1], [0], [0], [1], [0, 0, 1, 1], [], []>} : vector<4x8xf32>, vector<8x100xf32>, vector<4x100xf32> -> vector<4x100xf32>
    %c0_31 = arith.constant 0 : index
    %c0_32 = arith.constant 0 : index
    %32 = vector.load %arg6[%c0_31, %c0_32] : memref<4x1xf32, #tpu.memory_space<vmem>>, vector<4x1xf32>
    %33 = vector.broadcast %32 : vector<4x1xf32> to vector<4x100xf32>
    %34 = arith.addf %31, %33 : vector<4x100xf32>
    %cst_33 = arith.constant 0.000000e+00 : f32
    %35 = vector.broadcast %cst_33 : f32 to vector<4x100xf32>
    %36 = arith.cmpf oge, %34, %35 : vector<4x100xf32>
    %37 = vector.broadcast %7 : f32 to vector<4x100xf32>
    %38 = arith.mulf %37, %34 : vector<4x100xf32>
    %39 = arith.select %36, %34, %38 : vector<4x100xi1>, vector<4x100xf32>
    %40 = vector.broadcast %6 : vector<1x100xf32> to vector<4x100xf32>
    %41 = arith.mulf %39, %40 : vector<4x100xf32>
    %c1_34 = arith.constant 1 : index
    %c0_35 = arith.constant 0 : index
    %c11_36 = arith.constant 11 : index
    %42 = vector.load %arg13[%c1_34, %c0_35, %c11_36] : memref<4x4x122xf32, #tpu.memory_space<vmem>>, vector<1x4x100xf32>
    %43 = vector.shape_cast %42 : vector<1x4x100xf32> to vector<4x100xf32>
    %44 = vector.shape_cast %41 : vector<4x100xf32> to vector<1x4x100xf32>
    tpu.vector_store %arg13[%c1_34, %c0_35, %c11_36], %44 {strides = array<i32>} : memref<4x4x122xf32, #tpu.memory_space<vmem>>, vector<1x4x100xf32>,
    %c0_37 = arith.constant 0 : index
    %c2_38 = arith.constant 2 : index
    %c0_39 = arith.constant 0 : index
    %c0_40 = arith.constant 0 : index
    %45 = vector.load %arg1[%c0_37, %c2_38, %c0_39, %c0_40] : memref<1x4x8x100xf32, #tpu.memory_space<vmem>>, vector<1x1x8x100xf32>
    %46 = vector.shape_cast %45 : vector<1x1x8x100xf32> to vector<8x100xf32>
    %c0_41 = arith.constant 0 : index
    %c0_42 = arith.constant 0 : index
    %47 = vector.load %arg2[%c0_41, %c0_42] : memref<4x8xf32, #tpu.memory_space<vmem>>, vector<4x8xf32>
    %cst_43 = arith.constant dense<0.000000e+00> : vector<4x100xf32>
    %48 = tpu.matmul %47, %46, %cst_43 {dimension_numbers = #tpu.dot_dimension_numbers<[1], [0], [0], [1], [0, 0, 1, 1], [], []>} : vector<4x8xf32>, vector<8x100xf32>, vector<4x100xf32> -> vector<4x100xf32>
    %c0_44 = arith.constant 0 : index
    %c0_45 = arith.constant 0 : index
    %49 = vector.load %arg6[%c0_44, %c0_45] : memref<4x1xf32, #tpu.memory_space<vmem>>, vector<4x1xf32>
    %50 = vector.broadcast %49 : vector<4x1xf32> to vector<4x100xf32>
    %51 = arith.addf %48, %50 : vector<4x100xf32>
    %cst_46 = arith.constant 0.000000e+00 : f32
    %52 = vector.broadcast %cst_46 : f32 to vector<4x100xf32>
    %53 = arith.cmpf oge, %51, %52 : vector<4x100xf32>
    %54 = vector.broadcast %7 : f32 to vector<4x100xf32>
    %55 = arith.mulf %54, %51 : vector<4x100xf32>
    %56 = arith.select %53, %51, %55 : vector<4x100xi1>, vector<4x100xf32>
    %57 = vector.broadcast %6 : vector<1x100xf32> to vector<4x100xf32>
    %58 = arith.mulf %56, %57 : vector<4x100xf32>
    %c2_47 = arith.constant 2 : index
    %c0_48 = arith.constant 0 : index
    %c11_49 = arith.constant 11 : index
    %59 = vector.load %arg13[%c2_47, %c0_48, %c11_49] : memref<4x4x122xf32, #tpu.memory_space<vmem>>, vector<1x4x100xf32>
    %60 = vector.shape_cast %59 : vector<1x4x100xf32> to vector<4x100xf32>
    %61 = vector.shape_cast %58 : vector<4x100xf32> to vector<1x4x100xf32>
    tpu.vector_store %arg13[%c2_47, %c0_48, %c11_49], %61 {strides = array<i32>} : memref<4x4x122xf32, #tpu.memory_space<vmem>>, vector<1x4x100xf32>,
    %c0_50 = arith.constant 0 : index
    %c3_51 = arith.constant 3 : index
    %c0_52 = arith.constant 0 : index
    %c0_53 = arith.constant 0 : index
    %62 = vector.load %arg1[%c0_50, %c3_51, %c0_52, %c0_53] : memref<1x4x8x100xf32, #tpu.memory_space<vmem>>, vector<1x1x8x100xf32>
    %63 = vector.shape_cast %62 : vector<1x1x8x100xf32> to vector<8x100xf32>
    %c0_54 = arith.constant 0 : index
    %c0_55 = arith.constant 0 : index
    %64 = vector.load %arg2[%c0_54, %c0_55] : memref<4x8xf32, #tpu.memory_space<vmem>>, vector<4x8xf32>
    %cst_56 = arith.constant dense<0.000000e+00> : vector<4x100xf32>
    %65 = tpu.matmul %64, %63, %cst_56 {dimension_numbers = #tpu.dot_dimension_numbers<[1], [0], [0], [1], [0, 0, 1, 1], [], []>} : vector<4x8xf32>, vector<8x100xf32>, vector<4x100xf32> -> vector<4x100xf32>
    %c0_57 = arith.constant 0 : index
    %c0_58 = arith.constant 0 : index
    %66 = vector.load %arg6[%c0_57, %c0_58] : memref<4x1xf32, #tpu.memory_space<vmem>>, vector<4x1xf32>
    %67 = vector.broadcast %66 : vector<4x1xf32> to vector<4x100xf32>
    %68 = arith.addf %65, %67 : vector<4x100xf32>
    %cst_59 = arith.constant 0.000000e+00 : f32
    %69 = vector.broadcast %cst_59 : f32 to vector<4x100xf32>
    %70 = arith.cmpf oge, %68, %69 : vector<4x100xf32>
    %71 = vector.broadcast %7 : f32 to vector<4x100xf32>
    %72 = arith.mulf %71, %68 : vector<4x100xf32>
    %73 = arith.select %70, %68, %72 : vector<4x100xi1>, vector<4x100xf32>
    %74 = vector.broadcast %6 : vector<1x100xf32> to vector<4x100xf32>
    %75 = arith.mulf %73, %74 : vector<4x100xf32>
    %c3_60 = arith.constant 3 : index
    %c0_61 = arith.constant 0 : index
    %c11_62 = arith.constant 11 : index
    %76 = vector.load %arg13[%c3_60, %c0_61, %c11_62] : memref<4x4x122xf32, #tpu.memory_space<vmem>>, vector<1x4x100xf32>
    %77 = vector.shape_cast %76 : vector<1x4x100xf32> to vector<4x100xf32>
    %78 = vector.shape_cast %75 : vector<4x100xf32> to vector<1x4x100xf32>
    tpu.vector_store %arg13[%c3_60, %c0_61, %c11_62], %78 {strides = array<i32>} : memref<4x4x122xf32, #tpu.memory_space<vmem>>, vector<1x4x100xf32>,
    %cst_63 = arith.constant 0.000000e+00 : f32
    %79 = vector.broadcast %cst_63 : f32 to vector<4x100xf32>
    %c0_64 = arith.constant 0 : index
    %c0_65 = arith.constant 0 : index
    %c0_66 = arith.constant 0 : index
    %80 = vector.load %arg13[%c0_64, %c0_65, %c0_66] : memref<4x4x122xf32, #tpu.memory_space<vmem>>, vector<1x4x100xf32>
    %81 = vector.shape_cast %80 : vector<1x4x100xf32> to vector<4x100xf32>
    %c0_67 = arith.constant 0 : index
    %c0_68 = arith.constant 0 : index
    %c0_69 = arith.constant 0 : index
    %82 = vector.load %arg3[%c0_67, %c0_68, %c0_69] : memref<36x4x4xf32, #tpu.memory_space<vmem>>, vector<1x4x4xf32>
    %83 = vector.shape_cast %82 : vector<1x4x4xf32> to vector<4x4xf32>
    %cst_70 = arith.constant dense<0.000000e+00> : vector<4x100xf32>
    %84 = tpu.matmul %83, %81, %cst_70 {dimension_numbers = #tpu.dot_dimension_numbers<[1], [0], [0], [1], [0, 0, 1, 1], [], []>} : vector<4x4xf32>, vector<4x100xf32>, vector<4x100xf32> -> vector<4x100xf32>
    %85 = arith.addf %79, %84 : vector<4x100xf32>
    %c1_71 = arith.constant 1 : index
    %c0_72 = arith.constant 0 : index
    %c0_73 = arith.constant 0 : index
    %86 = vector.load %arg13[%c1_71, %c0_72, %c0_73] : memref<4x4x122xf32, #tpu.memory_space<vmem>>, vector<1x4x100xf32>
    %87 = vector.shape_cast %86 : vector<1x4x100xf32> to vector<4x100xf32>
    %c1_74 = arith.constant 1 : index
    %c0_75 = arith.constant 0 : index
    %c0_76 = arith.constant 0 : index
    %88 = vector.load %arg3[%c1_74, %c0_75, %c0_76] : memref<36x4x4xf32, #tpu.memory_space<vmem>>, vector<1x4x4xf32>
    %89 = vector.shape_cast %88 : vector<1x4x4xf32> to vector<4x4xf32>
    %cst_77 = arith.constant dense<0.000000e+00> : vector<4x100xf32>
    %90 = tpu.matmul %89, %87, %cst_77 {dimension_numbers = #tpu.dot_dimension_numbers<[1], [0], [0], [1], [0, 0, 1, 1], [], []>} : vector<4x4xf32>, vector<4x100xf32>, vector<4x100xf32> -> vector<4x100xf32>
    %91 = arith.addf %85, %90 : vector<4x100xf32>
    %c0_78 = arith.constant 0 : index
    %c0_79 = arith.constant 0 : index
    %c1_80 = arith.constant 1 : index
    %92 = vector.load %arg13[%c0_78, %c0_79, %c1_80] : memref<4x4x122xf32, #tpu.memory_space<vmem>>, vector<1x4x100xf32>
    %93 = vector.shape_cast %92 : vector<1x4x100xf32> to vector<4x100xf32>
    %c2_81 = arith.constant 2 : index
    %c0_82 = arith.constant 0 : index
    %c0_83 = arith.constant 0 : index
    %94 = vector.load %arg3[%c2_81, %c0_82, %c0_83] : memref<36x4x4xf32, #tpu.memory_space<vmem>>, vector<1x4x4xf32>
    %95 = vector.shape_cast %94 : vector<1x4x4xf32> to vector<4x4xf32>
    %cst_84 = arith.constant dense<0.000000e+00> : vector<4x100xf32>
    %96 = tpu.matmul %95, %93, %cst_84 {dimension_numbers = #tpu.dot_dimension_numbers<[1], [0], [0], [1], [0, 0, 1, 1], [], []>} : vector<4x4xf32>, vector<4x100xf32>, vector<4x100xf32> -> vector<4x100xf32>
    %97 = arith.addf %91, %96 : vector<4x100xf32>
    %c1_85 = arith.constant 1 : index
    %c0_86 = arith.constant 0 : index
    %c1_87 = arith.constant 1 : index
    %98 = vector.load %arg13[%c1_85, %c0_86, %c1_87] : memref<4x4x122xf32, #tpu.memory_space<vmem>>, vector<1x4x100xf32>
    %99 = vector.shape_cast %98 : vector<1x4x100xf32> to vector<4x100xf32>
    %c3_88 = arith.constant 3 : index
    %c0_89 = arith.constant 0 : index
    %c0_90 = arith.constant 0 : index
    %100 = vector.load %arg3[%c3_88, %c0_89, %c0_90] : memref<36x4x4xf32, #tpu.memory_space<vmem>>, vector<1x4x4xf32>
    %101 = vector.shape_cast %100 : vector<1x4x4xf32> to vector<4x4xf32>
    %cst_91 = arith.constant dense<0.000000e+00> : vector<4x100xf32>
    %102 = tpu.matmul %101, %99, %cst_91 {dimension_numbers = #tpu.dot_dimension_numbers<[1], [0], [0], [1], [0, 0, 1, 1], [], []>} : vector<4x4xf32>, vector<4x100xf32>, vector<4x100xf32> -> vector<4x100xf32>
    %103 = arith.addf %97, %102 : vector<4x100xf32>
    %c0_92 = arith.constant 0 : index
    %c0_93 = arith.constant 0 : index
    %c2_94 = arith.constant 2 : index
    %104 = vector.load %arg13[%c0_92, %c0_93, %c2_94] : memref<4x4x122xf32, #tpu.memory_space<vmem>>, vector<1x4x100xf32>
    %105 = vector.shape_cast %104 : vector<1x4x100xf32> to vector<4x100xf32>
    %c4 = arith.constant 4 : index
    %c0_95 = arith.constant 0 : index
    %c0_96 = arith.constant 0 : index
    %106 = vector.load %arg3[%c4, %c0_95, %c0_96] : memref<36x4x4xf32, #tpu.memory_space<vmem>>, vector<1x4x4xf32>
    %107 = vector.shape_cast %106 : vector<1x4x4xf32> to vector<4x4xf32>
    %cst_97 = arith.constant dense<0.000000e+00> : vector<4x100xf32>
    %108 = tpu.matmul %107, %105, %cst_97 {dimension_numbers = #tpu.dot_dimension_numbers<[1], [0], [0], [1], [0, 0, 1, 1], [], []>} : vector<4x4xf32>, vector<4x100xf32>, vector<4x100xf32> -> vector<4x100xf32>
    %109 = arith.addf %103, %108 : vector<4x100xf32>
    %c1_98 = arith.constant 1 : index
    %c0_99 = arith.constant 0 : index
    %c2_100 = arith.constant 2 : index
    %110 = vector.load %arg13[%c1_98, %c0_99, %c2_100] : memref<4x4x122xf32, #tpu.memory_space<vmem>>, vector<1x4x100xf32>
    %111 = vector.shape_cast %110 : vector<1x4x100xf32> to vector<4x100xf32>
    %c5 = arith.constant 5 : index
    %c0_101 = arith.constant 0 : index
    %c0_102 = arith.constant 0 : index
    %112 = vector.load %arg3[%c5, %c0_101, %c0_102] : memref<36x4x4xf32, #tpu.memory_space<vmem>>, vector<1x4x4xf32>
    %113 = vector.shape_cast %112 : vector<1x4x4xf32> to vector<4x4xf32>
    %cst_103 = arith.constant dense<0.000000e+00> : vector<4x100xf32>
    %114 = tpu.matmul %113, %111, %cst_103 {dimension_numbers = #tpu.dot_dimension_numbers<[1], [0], [0], [1], [0, 0, 1, 1], [], []>} : vector<4x4xf32>, vector<4x100xf32>, vector<4x100xf32> -> vector<4x100xf32>
    %115 = arith.addf %109, %114 : vector<4x100xf32>
    %c2_104 = arith.constant 2 : index
    %c0_105 = arith.constant 0 : index
    %c0_106 = arith.constant 0 : index
    %116 = vector.load %arg13[%c2_104, %c0_105, %c0_106] : memref<4x4x122xf32, #tpu.memory_space<vmem>>, vector<1x4x100xf32>
    %117 = vector.shape_cast %116 : vector<1x4x100xf32> to vector<4x100xf32>
    %c6 = arith.constant 6 : index
    %c0_107 = arith.constant 0 : index
    %c0_108 = arith.constant 0 : index
    %118 = vector.load %arg3[%c6, %c0_107, %c0_108] : memref<36x4x4xf32, #tpu.memory_space<vmem>>, vector<1x4x4xf32>
    %119 = vector.shape_cast %118 : vector<1x4x4xf32> to vector<4x4xf32>
    %cst_109 = arith.constant dense<0.000000e+00> : vector<4x100xf32>
    %120 = tpu.matmul %119, %117, %cst_109 {dimension_numbers = #tpu.dot_dimension_numbers<[1], [0], [0], [1], [0, 0, 1, 1], [], []>} : vector<4x4xf32>, vector<4x100xf32>, vector<4x100xf32> -> vector<4x100xf32>
    %121 = arith.addf %115, %120 : vector<4x100xf32>
    %c3_110 = arith.constant 3 : index
    %c0_111 = arith.constant 0 : index
    %c0_112 = arith.constant 0 : index
    %122 = vector.load %arg13[%c3_110, %c0_111, %c0_112] : memref<4x4x122xf32, #tpu.memory_space<vmem>>, vector<1x4x100xf32>
    %123 = vector.shape_cast %122 : vector<1x4x100xf32> to vector<4x100xf32>
    %c7 = arith.constant 7 : index
    %c0_113 = arith.constant 0 : index
    %c0_114 = arith.constant 0 : index
    %124 = vector.load %arg3[%c7, %c0_113, %c0_114] : memref<36x4x4xf32, #tpu.memory_space<vmem>>, vector<1x4x4xf32>
    %125 = vector.shape_cast %124 : vector<1x4x4xf32> to vector<4x4xf32>
    %cst_115 = arith.constant dense<0.000000e+00> : vector<4x100xf32>
    %126 = tpu.matmul %125, %123, %cst_115 {dimension_numbers = #tpu.dot_dimension_numbers<[1], [0], [0], [1], [0, 0, 1, 1], [], []>} : vector<4x4xf32>, vector<4x100xf32>, vector<4x100xf32> -> vector<4x100xf32>
    %127 = arith.addf %121, %126 : vector<4x100xf32>
    %c2_116 = arith.constant 2 : index
    %c0_117 = arith.constant 0 : index
    %c1_118 = arith.constant 1 : index
    %128 = vector.load %arg13[%c2_116, %c0_117, %c1_118] : memref<4x4x122xf32, #tpu.memory_space<vmem>>, vector<1x4x100xf32>
    %129 = vector.shape_cast %128 : vector<1x4x100xf32> to vector<4x100xf32>
    %c8 = arith.constant 8 : index
    %c0_119 = arith.constant 0 : index
    %c0_120 = arith.constant 0 : index
    %130 = vector.load %arg3[%c8, %c0_119, %c0_120] : memref<36x4x4xf32, #tpu.memory_space<vmem>>, vector<1x4x4xf32>
    %131 = vector.shape_cast %130 : vector<1x4x4xf32> to vector<4x4xf32>
    %cst_121 = arith.constant dense<0.000000e+00> : vector<4x100xf32>
    %132 = tpu.matmul %131, %129, %cst_121 {dimension_numbers = #tpu.dot_dimension_numbers<[1], [0], [0], [1], [0, 0, 1, 1], [], []>} : vector<4x4xf32>, vector<4x100xf32>, vector<4x100xf32> -> vector<4x100xf32>
    %133 = arith.addf %127, %132 : vector<4x100xf32>
    %c3_122 = arith.constant 3 : index
    %c0_123 = arith.constant 0 : index
    %c1_124 = arith.constant 1 : index
    %134 = vector.load %arg13[%c3_122, %c0_123, %c1_124] : memref<4x4x122xf32, #tpu.memory_space<vmem>>, vector<1x4x100xf32>
    %135 = vector.shape_cast %134 : vector<1x4x100xf32> to vector<4x100xf32>
    %c9 = arith.constant 9 : index
    %c0_125 = arith.constant 0 : index
    %c0_126 = arith.constant 0 : index
    %136 = vector.load %arg3[%c9, %c0_125, %c0_126] : memref<36x4x4xf32, #tpu.memory_space<vmem>>, vector<1x4x4xf32>
    %137 = vector.shape_cast %136 : vector<1x4x4xf32> to vector<4x4xf32>
    %cst_127 = arith.constant dense<0.000000e+00> : vector<4x100xf32>
    %138 = tpu.matmul %137, %135, %cst_127 {dimension_numbers = #tpu.dot_dimension_numbers<[1], [0], [0], [1], [0, 0, 1, 1], [], []>} : vector<4x4xf32>, vector<4x100xf32>, vector<4x100xf32> -> vector<4x100xf32>
    %139 = arith.addf %133, %138 : vector<4x100xf32>
    %c2_128 = arith.constant 2 : index
    %c0_129 = arith.constant 0 : index
    %c2_130 = arith.constant 2 : index
    %140 = vector.load %arg13[%c2_128, %c0_129, %c2_130] : memref<4x4x122xf32, #tpu.memory_space<vmem>>, vector<1x4x100xf32>
    %141 = vector.shape_cast %140 : vector<1x4x100xf32> to vector<4x100xf32>
    %c10 = arith.constant 10 : index
    %c0_131 = arith.constant 0 : index
    %c0_132 = arith.constant 0 : index
    %142 = vector.load %arg3[%c10, %c0_131, %c0_132] : memref<36x4x4xf32, #tpu.memory_space<vmem>>, vector<1x4x4xf32>
    %143 = vector.shape_cast %142 : vector<1x4x4xf32> to vector<4x4xf32>
    %cst_133 = arith.constant dense<0.000000e+00> : vector<4x100xf32>
    %144 = tpu.matmul %143, %141, %cst_133 {dimension_numbers = #tpu.dot_dimension_numbers<[1], [0], [0], [1], [0, 0, 1, 1], [], []>} : vector<4x4xf32>, vector<4x100xf32>, vector<4x100xf32> -> vector<4x100xf32>
    %145 = arith.addf %139, %144 : vector<4x100xf32>
    %c3_134 = arith.constant 3 : index
    %c0_135 = arith.constant 0 : index
    %c2_136 = arith.constant 2 : index
    %146 = vector.load %arg13[%c3_134, %c0_135, %c2_136] : memref<4x4x122xf32, #tpu.memory_space<vmem>>, vector<1x4x100xf32>
    %147 = vector.shape_cast %146 : vector<1x4x100xf32> to vector<4x100xf32>
    %c11_137 = arith.constant 11 : index
    %c0_138 = arith.constant 0 : index
    %c0_139 = arith.constant 0 : index
    %148 = vector.load %arg3[%c11_137, %c0_138, %c0_139] : memref<36x4x4xf32, #tpu.memory_space<vmem>>, vector<1x4x4xf32>
    %149 = vector.shape_cast %148 : vector<1x4x4xf32> to vector<4x4xf32>
    %cst_140 = arith.constant dense<0.000000e+00> : vector<4x100xf32>
    %150 = tpu.matmul %149, %147, %cst_140 {dimension_numbers = #tpu.dot_dimension_numbers<[1], [0], [0], [1], [0, 0, 1, 1], [], []>} : vector<4x4xf32>, vector<4x100xf32>, vector<4x100xf32> -> vector<4x100xf32>
    %151 = arith.addf %145, %150 : vector<4x100xf32>
    %c0_141 = arith.constant 0 : index
    %c0_142 = arith.constant 0 : index
    %c10_143 = arith.constant 10 : index
    %152 = vector.load %arg13[%c0_141, %c0_142, %c10_143] : memref<4x4x122xf32, #tpu.memory_space<vmem>>, vector<1x4x100xf32>
    %153 = vector.shape_cast %152 : vector<1x4x100xf32> to vector<4x100xf32>
    %c12 = arith.constant 12 : index
    %c0_144 = arith.constant 0 : index
    %c0_145 = arith.constant 0 : index
    %154 = vector.load %arg3[%c12, %c0_144, %c0_145] : memref<36x4x4xf32, #tpu.memory_space<vmem>>, vector<1x4x4xf32>
    %155 = vector.shape_cast %154 : vector<1x4x4xf32> to vector<4x4xf32>
    %cst_146 = arith.constant dense<0.000000e+00> : vector<4x100xf32>
    %156 = tpu.matmul %155, %153, %cst_146 {dimension_numbers = #tpu.dot_dimension_numbers<[1], [0], [0], [1], [0, 0, 1, 1], [], []>} : vector<4x4xf32>, vector<4x100xf32>, vector<4x100xf32> -> vector<4x100xf32>
    %157 = arith.addf %151, %156 : vector<4x100xf32>
    %c1_147 = arith.constant 1 : index
    %c0_148 = arith.constant 0 : index
    %c10_149 = arith.constant 10 : index
    %158 = vector.load %arg13[%c1_147, %c0_148, %c10_149] : memref<4x4x122xf32, #tpu.memory_space<vmem>>, vector<1x4x100xf32>
    %159 = vector.shape_cast %158 : vector<1x4x100xf32> to vector<4x100xf32>
    %c13 = arith.constant 13 : index
    %c0_150 = arith.constant 0 : index
    %c0_151 = arith.constant 0 : index
    %160 = vector.load %arg3[%c13, %c0_150, %c0_151] : memref<36x4x4xf32, #tpu.memory_space<vmem>>, vector<1x4x4xf32>
    %161 = vector.shape_cast %160 : vector<1x4x4xf32> to vector<4x4xf32>
    %cst_152 = arith.constant dense<0.000000e+00> : vector<4x100xf32>
    %162 = tpu.matmul %161, %159, %cst_152 {dimension_numbers = #tpu.dot_dimension_numbers<[1], [0], [0], [1], [0, 0, 1, 1], [], []>} : vector<4x4xf32>, vector<4x100xf32>, vector<4x100xf32> -> vector<4x100xf32>
    %163 = arith.addf %157, %162 : vector<4x100xf32>
    %c0_153 = arith.constant 0 : index
    %c0_154 = arith.constant 0 : index
    %c11_155 = arith.constant 11 : index
    %164 = vector.load %arg13[%c0_153, %c0_154, %c11_155] : memref<4x4x122xf32, #tpu.memory_space<vmem>>, vector<1x4x100xf32>
    %165 = vector.shape_cast %164 : vector<1x4x100xf32> to vector<4x100xf32>
    %c14 = arith.constant 14 : index
    %c0_156 = arith.constant 0 : index
    %c0_157 = arith.constant 0 : index
    %166 = vector.load %arg3[%c14, %c0_156, %c0_157] : memref<36x4x4xf32, #tpu.memory_space<vmem>>, vector<1x4x4xf32>
    %167 = vector.shape_cast %166 : vector<1x4x4xf32> to vector<4x4xf32>
    %cst_158 = arith.constant dense<0.000000e+00> : vector<4x100xf32>
    %168 = tpu.matmul %167, %165, %cst_158 {dimension_numbers = #tpu.dot_dimension_numbers<[1], [0], [0], [1], [0, 0, 1, 1], [], []>} : vector<4x4xf32>, vector<4x100xf32>, vector<4x100xf32> -> vector<4x100xf32>
    %169 = arith.addf %163, %168 : vector<4x100xf32>
    %c1_159 = arith.constant 1 : index
    %c0_160 = arith.constant 0 : index
    %c11_161 = arith.constant 11 : index
    %170 = vector.load %arg13[%c1_159, %c0_160, %c11_161] : memref<4x4x122xf32, #tpu.memory_space<vmem>>, vector<1x4x100xf32>
    %171 = vector.shape_cast %170 : vector<1x4x100xf32> to vector<4x100xf32>
    %c15 = arith.constant 15 : index
    %c0_162 = arith.constant 0 : index
    %c0_163 = arith.constant 0 : index
    %172 = vector.load %arg3[%c15, %c0_162, %c0_163] : memref<36x4x4xf32, #tpu.memory_space<vmem>>, vector<1x4x4xf32>
    %173 = vector.shape_cast %172 : vector<1x4x4xf32> to vector<4x4xf32>
    %cst_164 = arith.constant dense<0.000000e+00> : vector<4x100xf32>
    %174 = tpu.matmul %173, %171, %cst_164 {dimension_numbers = #tpu.dot_dimension_numbers<[1], [0], [0], [1], [0, 0, 1, 1], [], []>} : vector<4x4xf32>, vector<4x100xf32>, vector<4x100xf32> -> vector<4x100xf32>
    %175 = arith.addf %169, %174 : vector<4x100xf32>
    %c0_165 = arith.constant 0 : index
    %c0_166 = arith.constant 0 : index
    %c12_167 = arith.constant 12 : index
    %176 = vector.load %arg13[%c0_165, %c0_166, %c12_167] : memref<4x4x122xf32, #tpu.memory_space<vmem>>, vector<1x4x100xf32>
    %177 = vector.shape_cast %176 : vector<1x4x100xf32> to vector<4x100xf32>
    %c16 = arith.constant 16 : index
    %c0_168 = arith.constant 0 : index
    %c0_169 = arith.constant 0 : index
    %178 = vector.load %arg3[%c16, %c0_168, %c0_169] : memref<36x4x4xf32, #tpu.memory_space<vmem>>, vector<1x4x4xf32>
    %179 = vector.shape_cast %178 : vector<1x4x4xf32> to vector<4x4xf32>
    %cst_170 = arith.constant dense<0.000000e+00> : vector<4x100xf32>
    %180 = tpu.matmul %179, %177, %cst_170 {dimension_numbers = #tpu.dot_dimension_numbers<[1], [0], [0], [1], [0, 0, 1, 1], [], []>} : vector<4x4xf32>, vector<4x100xf32>, vector<4x100xf32> -> vector<4x100xf32>
    %181 = arith.addf %175, %180 : vector<4x100xf32>
    %c1_171 = arith.constant 1 : index
    %c0_172 = arith.constant 0 : index
    %c12_173 = arith.constant 12 : index
    %182 = vector.load %arg13[%c1_171, %c0_172, %c12_173] : memref<4x4x122xf32, #tpu.memory_space<vmem>>, vector<1x4x100xf32>
    %183 = vector.shape_cast %182 : vector<1x4x100xf32> to vector<4x100xf32>
    %c17 = arith.constant 17 : index
    %c0_174 = arith.constant 0 : index
    %c0_175 = arith.constant 0 : index
    %184 = vector.load %arg3[%c17, %c0_174, %c0_175] : memref<36x4x4xf32, #tpu.memory_space<vmem>>, vector<1x4x4xf32>
    %185 = vector.shape_cast %184 : vector<1x4x4xf32> to vector<4x4xf32>
    %cst_176 = arith.constant dense<0.000000e+00> : vector<4x100xf32>
    %186 = tpu.matmul %185, %183, %cst_176 {dimension_numbers = #tpu.dot_dimension_numbers<[1], [0], [0], [1], [0, 0, 1, 1], [], []>} : vector<4x4xf32>, vector<4x100xf32>, vector<4x100xf32> -> vector<4x100xf32>
    %187 = arith.addf %181, %186 : vector<4x100xf32>
    %c2_177 = arith.constant 2 : index
    %c0_178 = arith.constant 0 : index
    %c10_179 = arith.constant 10 : index
    %188 = vector.load %arg13[%c2_177, %c0_178, %c10_179] : memref<4x4x122xf32, #tpu.memory_space<vmem>>, vector<1x4x100xf32>
    %189 = vector.shape_cast %188 : vector<1x4x100xf32> to vector<4x100xf32>
    %c18 = arith.constant 18 : index
    %c0_180 = arith.constant 0 : index
    %c0_181 = arith.constant 0 : index
    %190 = vector.load %arg3[%c18, %c0_180, %c0_181] : memref<36x4x4xf32, #tpu.memory_space<vmem>>, vector<1x4x4xf32>
    %191 = vector.shape_cast %190 : vector<1x4x4xf32> to vector<4x4xf32>
    %cst_182 = arith.constant dense<0.000000e+00> : vector<4x100xf32>
    %192 = tpu.matmul %191, %189, %cst_182 {dimension_numbers = #tpu.dot_dimension_numbers<[1], [0], [0], [1], [0, 0, 1, 1], [], []>} : vector<4x4xf32>, vector<4x100xf32>, vector<4x100xf32> -> vector<4x100xf32>
    %193 = arith.addf %187, %192 : vector<4x100xf32>
    %c3_183 = arith.constant 3 : index
    %c0_184 = arith.constant 0 : index
    %c10_185 = arith.constant 10 : index
    %194 = vector.load %arg13[%c3_183, %c0_184, %c10_185] : memref<4x4x122xf32, #tpu.memory_space<vmem>>, vector<1x4x100xf32>
    %195 = vector.shape_cast %194 : vector<1x4x100xf32> to vector<4x100xf32>
    %c19 = arith.constant 19 : index
    %c0_186 = arith.constant 0 : index
    %c0_187 = arith.constant 0 : index
    %196 = vector.load %arg3[%c19, %c0_186, %c0_187] : memref<36x4x4xf32, #tpu.memory_space<vmem>>, vector<1x4x4xf32>
    %197 = vector.shape_cast %196 : vector<1x4x4xf32> to vector<4x4xf32>
    %cst_188 = arith.constant dense<0.000000e+00> : vector<4x100xf32>
    %198 = tpu.matmul %197, %195, %cst_188 {dimension_numbers = #tpu.dot_dimension_numbers<[1], [0], [0], [1], [0, 0, 1, 1], [], []>} : vector<4x4xf32>, vector<4x100xf32>, vector<4x100xf32> -> vector<4x100xf32>
    %199 = arith.addf %193, %198 : vector<4x100xf32>
    %c2_189 = arith.constant 2 : index
    %c0_190 = arith.constant 0 : index
    %c11_191 = arith.constant 11 : index
    %200 = vector.load %arg13[%c2_189, %c0_190, %c11_191] : memref<4x4x122xf32, #tpu.memory_space<vmem>>, vector<1x4x100xf32>
    %201 = vector.shape_cast %200 : vector<1x4x100xf32> to vector<4x100xf32>
    %c20 = arith.constant 20 : index
    %c0_192 = arith.constant 0 : index
    %c0_193 = arith.constant 0 : index
    %202 = vector.load %arg3[%c20, %c0_192, %c0_193] : memref<36x4x4xf32, #tpu.memory_space<vmem>>, vector<1x4x4xf32>
    %203 = vector.shape_cast %202 : vector<1x4x4xf32> to vector<4x4xf32>
    %cst_194 = arith.constant dense<0.000000e+00> : vector<4x100xf32>
    %204 = tpu.matmul %203, %201, %cst_194 {dimension_numbers = #tpu.dot_dimension_numbers<[1], [0], [0], [1], [0, 0, 1, 1], [], []>} : vector<4x4xf32>, vector<4x100xf32>, vector<4x100xf32> -> vector<4x100xf32>
    %205 = arith.addf %199, %204 : vector<4x100xf32>
    %c3_195 = arith.constant 3 : index
    %c0_196 = arith.constant 0 : index
    %c11_197 = arith.constant 11 : index
    %206 = vector.load %arg13[%c3_195, %c0_196, %c11_197] : memref<4x4x122xf32, #tpu.memory_space<vmem>>, vector<1x4x100xf32>
    %207 = vector.shape_cast %206 : vector<1x4x100xf32> to vector<4x100xf32>
    %c21 = arith.constant 21 : index
    %c0_198 = arith.constant 0 : index
    %c0_199 = arith.constant 0 : index
    %208 = vector.load %arg3[%c21, %c0_198, %c0_199] : memref<36x4x4xf32, #tpu.memory_space<vmem>>, vector<1x4x4xf32>
    %209 = vector.shape_cast %208 : vector<1x4x4xf32> to vector<4x4xf32>
    %cst_200 = arith.constant dense<0.000000e+00> : vector<4x100xf32>
    %210 = tpu.matmul %209, %207, %cst_200 {dimension_numbers = #tpu.dot_dimension_numbers<[1], [0], [0], [1], [0, 0, 1, 1], [], []>} : vector<4x4xf32>, vector<4x100xf32>, vector<4x100xf32> -> vector<4x100xf32>
    %211 = arith.addf %205, %210 : vector<4x100xf32>
    %c2_201 = arith.constant 2 : index
    %c0_202 = arith.constant 0 : index
    %c12_203 = arith.constant 12 : index
    %212 = vector.load %arg13[%c2_201, %c0_202, %c12_203] : memref<4x4x122xf32, #tpu.memory_space<vmem>>, vector<1x4x100xf32>
    %213 = vector.shape_cast %212 : vector<1x4x100xf32> to vector<4x100xf32>
    %c22 = arith.constant 22 : index
    %c0_204 = arith.constant 0 : index
    %c0_205 = arith.constant 0 : index
    %214 = vector.load %arg3[%c22, %c0_204, %c0_205] : memref<36x4x4xf32, #tpu.memory_space<vmem>>, vector<1x4x4xf32>
    %215 = vector.shape_cast %214 : vector<1x4x4xf32> to vector<4x4xf32>
    %cst_206 = arith.constant dense<0.000000e+00> : vector<4x100xf32>
    %216 = tpu.matmul %215, %213, %cst_206 {dimension_numbers = #tpu.dot_dimension_numbers<[1], [0], [0], [1], [0, 0, 1, 1], [], []>} : vector<4x4xf32>, vector<4x100xf32>, vector<4x100xf32> -> vector<4x100xf32>
    %217 = arith.addf %211, %216 : vector<4x100xf32>
    %c3_207 = arith.constant 3 : index
    %c0_208 = arith.constant 0 : index
    %c12_209 = arith.constant 12 : index
    %218 = vector.load %arg13[%c3_207, %c0_208, %c12_209] : memref<4x4x122xf32, #tpu.memory_space<vmem>>, vector<1x4x100xf32>
    %219 = vector.shape_cast %218 : vector<1x4x100xf32> to vector<4x100xf32>
    %c23 = arith.constant 23 : index
    %c0_210 = arith.constant 0 : index
    %c0_211 = arith.constant 0 : index
    %220 = vector.load %arg3[%c23, %c0_210, %c0_211] : memref<36x4x4xf32, #tpu.memory_space<vmem>>, vector<1x4x4xf32>
    %221 = vector.shape_cast %220 : vector<1x4x4xf32> to vector<4x4xf32>
    %cst_212 = arith.constant dense<0.000000e+00> : vector<4x100xf32>
    %222 = tpu.matmul %221, %219, %cst_212 {dimension_numbers = #tpu.dot_dimension_numbers<[1], [0], [0], [1], [0, 0, 1, 1], [], []>} : vector<4x4xf32>, vector<4x100xf32>, vector<4x100xf32> -> vector<4x100xf32>
    %223 = arith.addf %217, %222 : vector<4x100xf32>
    %c0_213 = arith.constant 0 : index
    %c0_214 = arith.constant 0 : index
    %c20_215 = arith.constant 20 : index
    %224 = vector.load %arg13[%c0_213, %c0_214, %c20_215] : memref<4x4x122xf32, #tpu.memory_space<vmem>>, vector<1x4x100xf32>
    %225 = vector.shape_cast %224 : vector<1x4x100xf32> to vector<4x100xf32>
    %c24 = arith.constant 24 : index
    %c0_216 = arith.constant 0 : index
    %c0_217 = arith.constant 0 : index
    %226 = vector.load %arg3[%c24, %c0_216, %c0_217] : memref<36x4x4xf32, #tpu.memory_space<vmem>>, vector<1x4x4xf32>
    %227 = vector.shape_cast %226 : vector<1x4x4xf32> to vector<4x4xf32>
    %cst_218 = arith.constant dense<0.000000e+00> : vector<4x100xf32>
    %228 = tpu.matmul %227, %225, %cst_218 {dimension_numbers = #tpu.dot_dimension_numbers<[1], [0], [0], [1], [0, 0, 1, 1], [], []>} : vector<4x4xf32>, vector<4x100xf32>, vector<4x100xf32> -> vector<4x100xf32>
    %229 = arith.addf %223, %228 : vector<4x100xf32>
    %c1_219 = arith.constant 1 : index
    %c0_220 = arith.constant 0 : index
    %c20_221 = arith.constant 20 : index
    %230 = vector.load %arg13[%c1_219, %c0_220, %c20_221] : memref<4x4x122xf32, #tpu.memory_space<vmem>>, vector<1x4x100xf32>
    %231 = vector.shape_cast %230 : vector<1x4x100xf32> to vector<4x100xf32>
    %c25 = arith.constant 25 : index
    %c0_222 = arith.constant 0 : index
    %c0_223 = arith.constant 0 : index
    %232 = vector.load %arg3[%c25, %c0_222, %c0_223] : memref<36x4x4xf32, #tpu.memory_space<vmem>>, vector<1x4x4xf32>
    %233 = vector.shape_cast %232 : vector<1x4x4xf32> to vector<4x4xf32>
    %cst_224 = arith.constant dense<0.000000e+00> : vector<4x100xf32>
    %234 = tpu.matmul %233, %231, %cst_224 {dimension_numbers = #tpu.dot_dimension_numbers<[1], [0], [0], [1], [0, 0, 1, 1], [], []>} : vector<4x4xf32>, vector<4x100xf32>, vector<4x100xf32> -> vector<4x100xf32>
    %235 = arith.addf %229, %234 : vector<4x100xf32>
    %c0_225 = arith.constant 0 : index
    %c0_226 = arith.constant 0 : index
    %c21_227 = arith.constant 21 : index
    %236 = vector.load %arg13[%c0_225, %c0_226, %c21_227] : memref<4x4x122xf32, #tpu.memory_space<vmem>>, vector<1x4x100xf32>
    %237 = vector.shape_cast %236 : vector<1x4x100xf32> to vector<4x100xf32>
    %c26 = arith.constant 26 : index
    %c0_228 = arith.constant 0 : index
    %c0_229 = arith.constant 0 : index
    %238 = vector.load %arg3[%c26, %c0_228, %c0_229] : memref<36x4x4xf32, #tpu.memory_space<vmem>>, vector<1x4x4xf32>
    %239 = vector.shape_cast %238 : vector<1x4x4xf32> to vector<4x4xf32>
    %cst_230 = arith.constant dense<0.000000e+00> : vector<4x100xf32>
    %240 = tpu.matmul %239, %237, %cst_230 {dimension_numbers = #tpu.dot_dimension_numbers<[1], [0], [0], [1], [0, 0, 1, 1], [], []>} : vector<4x4xf32>, vector<4x100xf32>, vector<4x100xf32> -> vector<4x100xf32>
    %241 = arith.addf %235, %240 : vector<4x100xf32>
    %c1_231 = arith.constant 1 : index
    %c0_232 = arith.constant 0 : index
    %c21_233 = arith.constant 21 : index
    %242 = vector.load %arg13[%c1_231, %c0_232, %c21_233] : memref<4x4x122xf32, #tpu.memory_space<vmem>>, vector<1x4x100xf32>
    %243 = vector.shape_cast %242 : vector<1x4x100xf32> to vector<4x100xf32>
    %c27 = arith.constant 27 : index
    %c0_234 = arith.constant 0 : index
    %c0_235 = arith.constant 0 : index
    %244 = vector.load %arg3[%c27, %c0_234, %c0_235] : memref<36x4x4xf32, #tpu.memory_space<vmem>>, vector<1x4x4xf32>
    %245 = vector.shape_cast %244 : vector<1x4x4xf32> to vector<4x4xf32>
    %cst_236 = arith.constant dense<0.000000e+00> : vector<4x100xf32>
    %246 = tpu.matmul %245, %243, %cst_236 {dimension_numbers = #tpu.dot_dimension_numbers<[1], [0], [0], [1], [0, 0, 1, 1], [], []>} : vector<4x4xf32>, vector<4x100xf32>, vector<4x100xf32> -> vector<4x100xf32>
    %247 = arith.addf %241, %246 : vector<4x100xf32>
    %c0_237 = arith.constant 0 : index
    %c0_238 = arith.constant 0 : index
    %c22_239 = arith.constant 22 : index
    %248 = vector.load %arg13[%c0_237, %c0_238, %c22_239] : memref<4x4x122xf32, #tpu.memory_space<vmem>>, vector<1x4x100xf32>
    %249 = vector.shape_cast %248 : vector<1x4x100xf32> to vector<4x100xf32>
    %c28 = arith.constant 28 : index
    %c0_240 = arith.constant 0 : index
    %c0_241 = arith.constant 0 : index
    %250 = vector.load %arg3[%c28, %c0_240, %c0_241] : memref<36x4x4xf32, #tpu.memory_space<vmem>>, vector<1x4x4xf32>
    %251 = vector.shape_cast %250 : vector<1x4x4xf32> to vector<4x4xf32>
    %cst_242 = arith.constant dense<0.000000e+00> : vector<4x100xf32>
    %252 = tpu.matmul %251, %249, %cst_242 {dimension_numbers = #tpu.dot_dimension_numbers<[1], [0], [0], [1], [0, 0, 1, 1], [], []>} : vector<4x4xf32>, vector<4x100xf32>, vector<4x100xf32> -> vector<4x100xf32>
    %253 = arith.addf %247, %252 : vector<4x100xf32>
    %c1_243 = arith.constant 1 : index
    %c0_244 = arith.constant 0 : index
    %c22_245 = arith.constant 22 : index
    %254 = vector.load %arg13[%c1_243, %c0_244, %c22_245] : memref<4x4x122xf32, #tpu.memory_space<vmem>>, vector<1x4x100xf32>
    %255 = vector.shape_cast %254 : vector<1x4x100xf32> to vector<4x100xf32>
    %c29 = arith.constant 29 : index
    %c0_246 = arith.constant 0 : index
    %c0_247 = arith.constant 0 : index
    %256 = vector.load %arg3[%c29, %c0_246, %c0_247] : memref<36x4x4xf32, #tpu.memory_space<vmem>>, vector<1x4x4xf32>
    %257 = vector.shape_cast %256 : vector<1x4x4xf32> to vector<4x4xf32>
    %cst_248 = arith.constant dense<0.000000e+00> : vector<4x100xf32>
    %258 = tpu.matmul %257, %255, %cst_248 {dimension_numbers = #tpu.dot_dimension_numbers<[1], [0], [0], [1], [0, 0, 1, 1], [], []>} : vector<4x4xf32>, vector<4x100xf32>, vector<4x100xf32> -> vector<4x100xf32>
    %259 = arith.addf %253, %258 : vector<4x100xf32>
    %c2_249 = arith.constant 2 : index
    %c0_250 = arith.constant 0 : index
    %c20_251 = arith.constant 20 : index
    %260 = vector.load %arg13[%c2_249, %c0_250, %c20_251] : memref<4x4x122xf32, #tpu.memory_space<vmem>>, vector<1x4x100xf32>
    %261 = vector.shape_cast %260 : vector<1x4x100xf32> to vector<4x100xf32>
    %c30 = arith.constant 30 : index
    %c0_252 = arith.constant 0 : index
    %c0_253 = arith.constant 0 : index
    %262 = vector.load %arg3[%c30, %c0_252, %c0_253] : memref<36x4x4xf32, #tpu.memory_space<vmem>>, vector<1x4x4xf32>
    %263 = vector.shape_cast %262 : vector<1x4x4xf32> to vector<4x4xf32>
    %cst_254 = arith.constant dense<0.000000e+00> : vector<4x100xf32>
    %264 = tpu.matmul %263, %261, %cst_254 {dimension_numbers = #tpu.dot_dimension_numbers<[1], [0], [0], [1], [0, 0, 1, 1], [], []>} : vector<4x4xf32>, vector<4x100xf32>, vector<4x100xf32> -> vector<4x100xf32>
    %265 = arith.addf %259, %264 : vector<4x100xf32>
    %c3_255 = arith.constant 3 : index
    %c0_256 = arith.constant 0 : index
    %c20_257 = arith.constant 20 : index
    %266 = vector.load %arg13[%c3_255, %c0_256, %c20_257] : memref<4x4x122xf32, #tpu.memory_space<vmem>>, vector<1x4x100xf32>
    %267 = vector.shape_cast %266 : vector<1x4x100xf32> to vector<4x100xf32>
    %c31 = arith.constant 31 : index
    %c0_258 = arith.constant 0 : index
    %c0_259 = arith.constant 0 : index
    %268 = vector.load %arg3[%c31, %c0_258, %c0_259] : memref<36x4x4xf32, #tpu.memory_space<vmem>>, vector<1x4x4xf32>
    %269 = vector.shape_cast %268 : vector<1x4x4xf32> to vector<4x4xf32>
    %cst_260 = arith.constant dense<0.000000e+00> : vector<4x100xf32>
    %270 = tpu.matmul %269, %267, %cst_260 {dimension_numbers = #tpu.dot_dimension_numbers<[1], [0], [0], [1], [0, 0, 1, 1], [], []>} : vector<4x4xf32>, vector<4x100xf32>, vector<4x100xf32> -> vector<4x100xf32>
    %271 = arith.addf %265, %270 : vector<4x100xf32>
    %c2_261 = arith.constant 2 : index
    %c0_262 = arith.constant 0 : index
    %c21_263 = arith.constant 21 : index
    %272 = vector.load %arg13[%c2_261, %c0_262, %c21_263] : memref<4x4x122xf32, #tpu.memory_space<vmem>>, vector<1x4x100xf32>
    %273 = vector.shape_cast %272 : vector<1x4x100xf32> to vector<4x100xf32>
    %c32 = arith.constant 32 : index
    %c0_264 = arith.constant 0 : index
    %c0_265 = arith.constant 0 : index
    %274 = vector.load %arg3[%c32, %c0_264, %c0_265] : memref<36x4x4xf32, #tpu.memory_space<vmem>>, vector<1x4x4xf32>
    %275 = vector.shape_cast %274 : vector<1x4x4xf32> to vector<4x4xf32>
    %cst_266 = arith.constant dense<0.000000e+00> : vector<4x100xf32>
    %276 = tpu.matmul %275, %273, %cst_266 {dimension_numbers = #tpu.dot_dimension_numbers<[1], [0], [0], [1], [0, 0, 1, 1], [], []>} : vector<4x4xf32>, vector<4x100xf32>, vector<4x100xf32> -> vector<4x100xf32>
    %277 = arith.addf %271, %276 : vector<4x100xf32>
    %c3_267 = arith.constant 3 : index
    %c0_268 = arith.constant 0 : index
    %c21_269 = arith.constant 21 : index
    %278 = vector.load %arg13[%c3_267, %c0_268, %c21_269] : memref<4x4x122xf32, #tpu.memory_space<vmem>>, vector<1x4x100xf32>
    %279 = vector.shape_cast %278 : vector<1x4x100xf32> to vector<4x100xf32>
    %c33 = arith.constant 33 : index
    %c0_270 = arith.constant 0 : index
    %c0_271 = arith.constant 0 : index
    %280 = vector.load %arg3[%c33, %c0_270, %c0_271] : memref<36x4x4xf32, #tpu.memory_space<vmem>>, vector<1x4x4xf32>
    %281 = vector.shape_cast %280 : vector<1x4x4xf32> to vector<4x4xf32>
    %cst_272 = arith.constant dense<0.000000e+00> : vector<4x100xf32>
    %282 = tpu.matmul %281, %279, %cst_272 {dimension_numbers = #tpu.dot_dimension_numbers<[1], [0], [0], [1], [0, 0, 1, 1], [], []>} : vector<4x4xf32>, vector<4x100xf32>, vector<4x100xf32> -> vector<4x100xf32>
    %283 = arith.addf %277, %282 : vector<4x100xf32>
    %c2_273 = arith.constant 2 : index
    %c0_274 = arith.constant 0 : index
    %c22_275 = arith.constant 22 : index
    %284 = vector.load %arg13[%c2_273, %c0_274, %c22_275] : memref<4x4x122xf32, #tpu.memory_space<vmem>>, vector<1x4x100xf32>
    %285 = vector.shape_cast %284 : vector<1x4x100xf32> to vector<4x100xf32>
    %c34 = arith.constant 34 : index
    %c0_276 = arith.constant 0 : index
    %c0_277 = arith.constant 0 : index
    %286 = vector.load %arg3[%c34, %c0_276, %c0_277] : memref<36x4x4xf32, #tpu.memory_space<vmem>>, vector<1x4x4xf32>
    %287 = vector.shape_cast %286 : vector<1x4x4xf32> to vector<4x4xf32>
    %cst_278 = arith.constant dense<0.000000e+00> : vector<4x100xf32>
    %288 = tpu.matmul %287, %285, %cst_278 {dimension_numbers = #tpu.dot_dimension_numbers<[1], [0], [0], [1], [0, 0, 1, 1], [], []>} : vector<4x4xf32>, vector<4x100xf32>, vector<4x100xf32> -> vector<4x100xf32>
    %289 = arith.addf %283, %288 : vector<4x100xf32>
    %c3_279 = arith.constant 3 : index
    %c0_280 = arith.constant 0 : index
    %c22_281 = arith.constant 22 : index
    %290 = vector.load %arg13[%c3_279, %c0_280, %c22_281] : memref<4x4x122xf32, #tpu.memory_space<vmem>>, vector<1x4x100xf32>
    %291 = vector.shape_cast %290 : vector<1x4x100xf32> to vector<4x100xf32>
    %c35 = arith.constant 35 : index
    %c0_282 = arith.constant 0 : index
    %c0_283 = arith.constant 0 : index
    %292 = vector.load %arg3[%c35, %c0_282, %c0_283] : memref<36x4x4xf32, #tpu.memory_space<vmem>>, vector<1x4x4xf32>
    %293 = vector.shape_cast %292 : vector<1x4x4xf32> to vector<4x4xf32>
    %cst_284 = arith.constant dense<0.000000e+00> : vector<4x100xf32>
    %294 = tpu.matmul %293, %291, %cst_284 {dimension_numbers = #tpu.dot_dimension_numbers<[1], [0], [0], [1], [0, 0, 1, 1], [], []>} : vector<4x4xf32>, vector<4x100xf32>, vector<4x100xf32> -> vector<4x100xf32>
    %295 = arith.addf %289, %294 : vector<4x100xf32>
    %c0_285 = arith.constant 0 : index
    %c0_286 = arith.constant 0 : index
    %296 = vector.load %arg7[%c0_285, %c0_286] : memref<4x1xf32, #tpu.memory_space<vmem>>, vector<4x1xf32>
    %297 = vector.broadcast %296 : vector<4x1xf32> to vector<4x100xf32>
    %298 = arith.addf %295, %297 : vector<4x100xf32>
    %cst_287 = arith.constant 0.000000e+00 : f32
    %299 = vector.broadcast %cst_287 : f32 to vector<4x100xf32>
    %300 = arith.cmpf oge, %298, %299 : vector<4x100xf32>
    %301 = vector.broadcast %8 : f32 to vector<4x100xf32>
    %302 = arith.mulf %301, %298 : vector<4x100xf32>
    %303 = arith.select %300, %298, %302 : vector<4x100xi1>, vector<4x100xf32>
    %304 = vector.broadcast %6 : vector<1x100xf32> to vector<4x100xf32>
    %305 = arith.mulf %303, %304 : vector<4x100xf32>
    %c0_288 = arith.constant 0 : index
    %c11_289 = arith.constant 11 : index
    %306 = vector.load %arg14[%c0_288, %c11_289] : memref<4x122xf32, #tpu.memory_space<vmem>>, vector<4x100xf32>
    tpu.vector_store %arg14[%c0_288, %c11_289], %305 {strides = array<i32>} : memref<4x122xf32, #tpu.memory_space<vmem>>, vector<4x100xf32>,
    %cst_290 = arith.constant 0.000000e+00 : f32
    %307 = vector.broadcast %cst_290 : f32 to vector<4x100xf32>
    %c0_291 = arith.constant 0 : index
    %c22_292 = arith.constant 22 : index
    %308 = vector.load %arg14[%c0_291, %c22_292] : memref<4x122xf32, #tpu.memory_space<vmem>>, vector<4x100xf32>
    %c0_293 = arith.constant 0 : index
    %c0_294 = arith.constant 0 : index
    %c0_295 = arith.constant 0 : index
    %309 = vector.load %arg4[%c0_293, %c0_294, %c0_295] : memref<36x4x4xf32, #tpu.memory_space<vmem>>, vector<1x4x4xf32>
    %310 = vector.shape_cast %309 : vector<1x4x4xf32> to vector<4x4xf32>
    %cst_296 = arith.constant dense<0.000000e+00> : vector<4x100xf32>
    %311 = tpu.matmul %310, %308, %cst_296 {dimension_numbers = #tpu.dot_dimension_numbers<[1], [0], [0], [1], [0, 0, 1, 1], [], []>} : vector<4x4xf32>, vector<4x100xf32>, vector<4x100xf32> -> vector<4x100xf32>
    %312 = arith.addf %307, %311 : vector<4x100xf32>
    %c0_297 = arith.constant 0 : index
    %c21_298 = arith.constant 21 : index
    %313 = vector.load %arg14[%c0_297, %c21_298] : memref<4x122xf32, #tpu.memory_space<vmem>>, vector<4x100xf32>
    %c2_299 = arith.constant 2 : index
    %c0_300 = arith.constant 0 : index
    %c0_301 = arith.constant 0 : index
    %314 = vector.load %arg4[%c2_299, %c0_300, %c0_301] : memref<36x4x4xf32, #tpu.memory_space<vmem>>, vector<1x4x4xf32>
    %315 = vector.shape_cast %314 : vector<1x4x4xf32> to vector<4x4xf32>
    %cst_302 = arith.constant dense<0.000000e+00> : vector<4x100xf32>
    %316 = tpu.matmul %315, %313, %cst_302 {dimension_numbers = #tpu.dot_dimension_numbers<[1], [0], [0], [1], [0, 0, 1, 1], [], []>} : vector<4x4xf32>, vector<4x100xf32>, vector<4x100xf32> -> vector<4x100xf32>
    %317 = arith.addf %312, %316 : vector<4x100xf32>
    %c0_303 = arith.constant 0 : index
    %c20_304 = arith.constant 20 : index
    %318 = vector.load %arg14[%c0_303, %c20_304] : memref<4x122xf32, #tpu.memory_space<vmem>>, vector<4x100xf32>
    %c4_305 = arith.constant 4 : index
    %c0_306 = arith.constant 0 : index
    %c0_307 = arith.constant 0 : index
    %319 = vector.load %arg4[%c4_305, %c0_306, %c0_307] : memref<36x4x4xf32, #tpu.memory_space<vmem>>, vector<1x4x4xf32>
    %320 = vector.shape_cast %319 : vector<1x4x4xf32> to vector<4x4xf32>
    %cst_308 = arith.constant dense<0.000000e+00> : vector<4x100xf32>
    %321 = tpu.matmul %320, %318, %cst_308 {dimension_numbers = #tpu.dot_dimension_numbers<[1], [0], [0], [1], [0, 0, 1, 1], [], []>} : vector<4x4xf32>, vector<4x100xf32>, vector<4x100xf32> -> vector<4x100xf32>
    %322 = arith.addf %317, %321 : vector<4x100xf32>
    %c0_309 = arith.constant 0 : index
    %c12_310 = arith.constant 12 : index
    %323 = vector.load %arg14[%c0_309, %c12_310] : memref<4x122xf32, #tpu.memory_space<vmem>>, vector<4x100xf32>
    %c12_311 = arith.constant 12 : index
    %c0_312 = arith.constant 0 : index
    %c0_313 = arith.constant 0 : index
    %324 = vector.load %arg4[%c12_311, %c0_312, %c0_313] : memref<36x4x4xf32, #tpu.memory_space<vmem>>, vector<1x4x4xf32>
    %325 = vector.shape_cast %324 : vector<1x4x4xf32> to vector<4x4xf32>
    %cst_314 = arith.constant dense<0.000000e+00> : vector<4x100xf32>
    %326 = tpu.matmul %325, %323, %cst_314 {dimension_numbers = #tpu.dot_dimension_numbers<[1], [0], [0], [1], [0, 0, 1, 1], [], []>} : vector<4x4xf32>, vector<4x100xf32>, vector<4x100xf32> -> vector<4x100xf32>
    %327 = arith.addf %322, %326 : vector<4x100xf32>
    %c0_315 = arith.constant 0 : index
    %c11_316 = arith.constant 11 : index
    %328 = vector.load %arg14[%c0_315, %c11_316] : memref<4x122xf32, #tpu.memory_space<vmem>>, vector<4x100xf32>
    %c14_317 = arith.constant 14 : index
    %c0_318 = arith.constant 0 : index
    %c0_319 = arith.constant 0 : index
    %329 = vector.load %arg4[%c14_317, %c0_318, %c0_319] : memref<36x4x4xf32, #tpu.memory_space<vmem>>, vector<1x4x4xf32>
    %330 = vector.shape_cast %329 : vector<1x4x4xf32> to vector<4x4xf32>
    %cst_320 = arith.constant dense<0.000000e+00> : vector<4x100xf32>
    %331 = tpu.matmul %330, %328, %cst_320 {dimension_numbers = #tpu.dot_dimension_numbers<[1], [0], [0], [1], [0, 0, 1, 1], [], []>} : vector<4x4xf32>, vector<4x100xf32>, vector<4x100xf32> -> vector<4x100xf32>
    %332 = arith.addf %327, %331 : vector<4x100xf32>
    %c0_321 = arith.constant 0 : index
    %c10_322 = arith.constant 10 : index
    %333 = vector.load %arg14[%c0_321, %c10_322] : memref<4x122xf32, #tpu.memory_space<vmem>>, vector<4x100xf32>
    %c16_323 = arith.constant 16 : index
    %c0_324 = arith.constant 0 : index
    %c0_325 = arith.constant 0 : index
    %334 = vector.load %arg4[%c16_323, %c0_324, %c0_325] : memref<36x4x4xf32, #tpu.memory_space<vmem>>, vector<1x4x4xf32>
    %335 = vector.shape_cast %334 : vector<1x4x4xf32> to vector<4x4xf32>
    %cst_326 = arith.constant dense<0.000000e+00> : vector<4x100xf32>
    %336 = tpu.matmul %335, %333, %cst_326 {dimension_numbers = #tpu.dot_dimension_numbers<[1], [0], [0], [1], [0, 0, 1, 1], [], []>} : vector<4x4xf32>, vector<4x100xf32>, vector<4x100xf32> -> vector<4x100xf32>
    %337 = arith.addf %332, %336 : vector<4x100xf32>
    %c0_327 = arith.constant 0 : index
    %c2_328 = arith.constant 2 : index
    %338 = vector.load %arg14[%c0_327, %c2_328] : memref<4x122xf32, #tpu.memory_space<vmem>>, vector<4x100xf32>
    %c24_329 = arith.constant 24 : index
    %c0_330 = arith.constant 0 : index
    %c0_331 = arith.constant 0 : index
    %339 = vector.load %arg4[%c24_329, %c0_330, %c0_331] : memref<36x4x4xf32, #tpu.memory_space<vmem>>, vector<1x4x4xf32>
    %340 = vector.shape_cast %339 : vector<1x4x4xf32> to vector<4x4xf32>
    %cst_332 = arith.constant dense<0.000000e+00> : vector<4x100xf32>
    %341 = tpu.matmul %340, %338, %cst_332 {dimension_numbers = #tpu.dot_dimension_numbers<[1], [0], [0], [1], [0, 0, 1, 1], [], []>} : vector<4x4xf32>, vector<4x100xf32>, vector<4x100xf32> -> vector<4x100xf32>
    %342 = arith.addf %337, %341 : vector<4x100xf32>
    %c0_333 = arith.constant 0 : index
    %c1_334 = arith.constant 1 : index
    %343 = vector.load %arg14[%c0_333, %c1_334] : memref<4x122xf32, #tpu.memory_space<vmem>>, vector<4x100xf32>
    %c26_335 = arith.constant 26 : index
    %c0_336 = arith.constant 0 : index
    %c0_337 = arith.constant 0 : index
    %344 = vector.load %arg4[%c26_335, %c0_336, %c0_337] : memref<36x4x4xf32, #tpu.memory_space<vmem>>, vector<1x4x4xf32>
    %345 = vector.shape_cast %344 : vector<1x4x4xf32> to vector<4x4xf32>
    %cst_338 = arith.constant dense<0.000000e+00> : vector<4x100xf32>
    %346 = tpu.matmul %345, %343, %cst_338 {dimension_numbers = #tpu.dot_dimension_numbers<[1], [0], [0], [1], [0, 0, 1, 1], [], []>} : vector<4x4xf32>, vector<4x100xf32>, vector<4x100xf32> -> vector<4x100xf32>
    %347 = arith.addf %342, %346 : vector<4x100xf32>
    %c0_339 = arith.constant 0 : index
    %c0_340 = arith.constant 0 : index
    %348 = vector.load %arg14[%c0_339, %c0_340] : memref<4x122xf32, #tpu.memory_space<vmem>>, vector<4x100xf32>
    %c28_341 = arith.constant 28 : index
    %c0_342 = arith.constant 0 : index
    %c0_343 = arith.constant 0 : index
    %349 = vector.load %arg4[%c28_341, %c0_342, %c0_343] : memref<36x4x4xf32, #tpu.memory_space<vmem>>, vector<1x4x4xf32>
    %350 = vector.shape_cast %349 : vector<1x4x4xf32> to vector<4x4xf32>
    %cst_344 = arith.constant dense<0.000000e+00> : vector<4x100xf32>
    %351 = tpu.matmul %350, %348, %cst_344 {dimension_numbers = #tpu.dot_dimension_numbers<[1], [0], [0], [1], [0, 0, 1, 1], [], []>} : vector<4x4xf32>, vector<4x100xf32>, vector<4x100xf32> -> vector<4x100xf32>
    %352 = arith.addf %347, %351 : vector<4x100xf32>
    %c0_345 = arith.constant 0 : index
    %c0_346 = arith.constant 0 : index
    %353 = vector.load %arg8[%c0_345, %c0_346] : memref<4x1xf32, #tpu.memory_space<vmem>>, vector<4x1xf32>
    %354 = vector.broadcast %353 : vector<4x1xf32> to vector<4x100xf32>
    %355 = arith.addf %352, %354 : vector<4x100xf32>
    %cst_347 = arith.constant 0.000000e+00 : f32
    %356 = vector.broadcast %cst_347 : f32 to vector<4x100xf32>
    %357 = arith.cmpf oge, %355, %356 : vector<4x100xf32>
    %358 = vector.broadcast %9 : f32 to vector<4x100xf32>
    %359 = arith.mulf %358, %355 : vector<4x100xf32>
    %360 = arith.select %357, %355, %359 : vector<4x100xi1>, vector<4x100xf32>
    %c0_348 = arith.constant 0 : index
    %c0_349 = arith.constant 0 : index
    %c11_350 = arith.constant 11 : index
    %361 = vector.load %arg13[%c0_348, %c0_349, %c11_350] : memref<4x4x122xf32, #tpu.memory_space<vmem>>, vector<1x4x100xf32>
    %362 = vector.shape_cast %361 : vector<1x4x100xf32> to vector<4x100xf32>
    %363 = arith.subf %360, %362 : vector<4x100xf32>
    %364 = vector.broadcast %6 : vector<1x100xf32> to vector<4x100xf32>
    %365 = arith.mulf %363, %364 : vector<4x100xf32>
    %c0_351 = arith.constant 0 : index
    %c0_352 = arith.constant 0 : index
    %c11_353 = arith.constant 11 : index
    %366 = vector.load %arg15[%c0_351, %c0_352, %c11_353] : memref<4x4x122xf32, #tpu.memory_space<vmem>>, vector<1x4x100xf32>
    %367 = vector.shape_cast %366 : vector<1x4x100xf32> to vector<4x100xf32>
    %368 = vector.shape_cast %365 : vector<4x100xf32> to vector<1x4x100xf32>
    tpu.vector_store %arg15[%c0_351, %c0_352, %c11_353], %368 {strides = array<i32>} : memref<4x4x122xf32, #tpu.memory_space<vmem>>, vector<1x4x100xf32>,
    %cst_354 = arith.constant 0.000000e+00 : f32
    %369 = vector.broadcast %cst_354 : f32 to vector<4x100xf32>
    %c0_355 = arith.constant 0 : index
    %c22_356 = arith.constant 22 : index
    %370 = vector.load %arg14[%c0_355, %c22_356] : memref<4x122xf32, #tpu.memory_space<vmem>>, vector<4x100xf32>
    %c1_357 = arith.constant 1 : index
    %c0_358 = arith.constant 0 : index
    %c0_359 = arith.constant 0 : index
    %371 = vector.load %arg4[%c1_357, %c0_358, %c0_359] : memref<36x4x4xf32, #tpu.memory_space<vmem>>, vector<1x4x4xf32>
    %372 = vector.shape_cast %371 : vector<1x4x4xf32> to vector<4x4xf32>
    %cst_360 = arith.constant dense<0.000000e+00> : vector<4x100xf32>
    %373 = tpu.matmul %372, %370, %cst_360 {dimension_numbers = #tpu.dot_dimension_numbers<[1], [0], [0], [1], [0, 0, 1, 1], [], []>} : vector<4x4xf32>, vector<4x100xf32>, vector<4x100xf32> -> vector<4x100xf32>
    %374 = arith.addf %369, %373 : vector<4x100xf32>
    %c0_361 = arith.constant 0 : index
    %c21_362 = arith.constant 21 : index
    %375 = vector.load %arg14[%c0_361, %c21_362] : memref<4x122xf32, #tpu.memory_space<vmem>>, vector<4x100xf32>
    %c3_363 = arith.constant 3 : index
    %c0_364 = arith.constant 0 : index
    %c0_365 = arith.constant 0 : index
    %376 = vector.load %arg4[%c3_363, %c0_364, %c0_365] : memref<36x4x4xf32, #tpu.memory_space<vmem>>, vector<1x4x4xf32>
    %377 = vector.shape_cast %376 : vector<1x4x4xf32> to vector<4x4xf32>
    %cst_366 = arith.constant dense<0.000000e+00> : vector<4x100xf32>
    %378 = tpu.matmul %377, %375, %cst_366 {dimension_numbers = #tpu.dot_dimension_numbers<[1], [0], [0], [1], [0, 0, 1, 1], [], []>} : vector<4x4xf32>, vector<4x100xf32>, vector<4x100xf32> -> vector<4x100xf32>
    %379 = arith.addf %374, %378 : vector<4x100xf32>
    %c0_367 = arith.constant 0 : index
    %c20_368 = arith.constant 20 : index
    %380 = vector.load %arg14[%c0_367, %c20_368] : memref<4x122xf32, #tpu.memory_space<vmem>>, vector<4x100xf32>
    %c5_369 = arith.constant 5 : index
    %c0_370 = arith.constant 0 : index
    %c0_371 = arith.constant 0 : index
    %381 = vector.load %arg4[%c5_369, %c0_370, %c0_371] : memref<36x4x4xf32, #tpu.memory_space<vmem>>, vector<1x4x4xf32>
    %382 = vector.shape_cast %381 : vector<1x4x4xf32> to vector<4x4xf32>
    %cst_372 = arith.constant dense<0.000000e+00> : vector<4x100xf32>
    %383 = tpu.matmul %382, %380, %cst_372 {dimension_numbers = #tpu.dot_dimension_numbers<[1], [0], [0], [1], [0, 0, 1, 1], [], []>} : vector<4x4xf32>, vector<4x100xf32>, vector<4x100xf32> -> vector<4x100xf32>
    %384 = arith.addf %379, %383 : vector<4x100xf32>
    %c0_373 = arith.constant 0 : index
    %c12_374 = arith.constant 12 : index
    %385 = vector.load %arg14[%c0_373, %c12_374] : memref<4x122xf32, #tpu.memory_space<vmem>>, vector<4x100xf32>
    %c13_375 = arith.constant 13 : index
    %c0_376 = arith.constant 0 : index
    %c0_377 = arith.constant 0 : index
    %386 = vector.load %arg4[%c13_375, %c0_376, %c0_377] : memref<36x4x4xf32, #tpu.memory_space<vmem>>, vector<1x4x4xf32>
    %387 = vector.shape_cast %386 : vector<1x4x4xf32> to vector<4x4xf32>
    %cst_378 = arith.constant dense<0.000000e+00> : vector<4x100xf32>
    %388 = tpu.matmul %387, %385, %cst_378 {dimension_numbers = #tpu.dot_dimension_numbers<[1], [0], [0], [1], [0, 0, 1, 1], [], []>} : vector<4x4xf32>, vector<4x100xf32>, vector<4x100xf32> -> vector<4x100xf32>
    %389 = arith.addf %384, %388 : vector<4x100xf32>
    %c0_379 = arith.constant 0 : index
    %c11_380 = arith.constant 11 : index
    %390 = vector.load %arg14[%c0_379, %c11_380] : memref<4x122xf32, #tpu.memory_space<vmem>>, vector<4x100xf32>
    %c15_381 = arith.constant 15 : index
    %c0_382 = arith.constant 0 : index
    %c0_383 = arith.constant 0 : index
    %391 = vector.load %arg4[%c15_381, %c0_382, %c0_383] : memref<36x4x4xf32, #tpu.memory_space<vmem>>, vector<1x4x4xf32>
    %392 = vector.shape_cast %391 : vector<1x4x4xf32> to vector<4x4xf32>
    %cst_384 = arith.constant dense<0.000000e+00> : vector<4x100xf32>
    %393 = tpu.matmul %392, %390, %cst_384 {dimension_numbers = #tpu.dot_dimension_numbers<[1], [0], [0], [1], [0, 0, 1, 1], [], []>} : vector<4x4xf32>, vector<4x100xf32>, vector<4x100xf32> -> vector<4x100xf32>
    %394 = arith.addf %389, %393 : vector<4x100xf32>
    %c0_385 = arith.constant 0 : index
    %c10_386 = arith.constant 10 : index
    %395 = vector.load %arg14[%c0_385, %c10_386] : memref<4x122xf32, #tpu.memory_space<vmem>>, vector<4x100xf32>
    %c17_387 = arith.constant 17 : index
    %c0_388 = arith.constant 0 : index
    %c0_389 = arith.constant 0 : index
    %396 = vector.load %arg4[%c17_387, %c0_388, %c0_389] : memref<36x4x4xf32, #tpu.memory_space<vmem>>, vector<1x4x4xf32>
    %397 = vector.shape_cast %396 : vector<1x4x4xf32> to vector<4x4xf32>
    %cst_390 = arith.constant dense<0.000000e+00> : vector<4x100xf32>
    %398 = tpu.matmul %397, %395, %cst_390 {dimension_numbers = #tpu.dot_dimension_numbers<[1], [0], [0], [1], [0, 0, 1, 1], [], []>} : vector<4x4xf32>, vector<4x100xf32>, vector<4x100xf32> -> vector<4x100xf32>
    %399 = arith.addf %394, %398 : vector<4x100xf32>
    %c0_391 = arith.constant 0 : index
    %c2_392 = arith.constant 2 : index
    %400 = vector.load %arg14[%c0_391, %c2_392] : memref<4x122xf32, #tpu.memory_space<vmem>>, vector<4x100xf32>
    %c25_393 = arith.constant 25 : index
    %c0_394 = arith.constant 0 : index
    %c0_395 = arith.constant 0 : index
    %401 = vector.load %arg4[%c25_393, %c0_394, %c0_395] : memref<36x4x4xf32, #tpu.memory_space<vmem>>, vector<1x4x4xf32>
    %402 = vector.shape_cast %401 : vector<1x4x4xf32> to vector<4x4xf32>
    %cst_396 = arith.constant dense<0.000000e+00> : vector<4x100xf32>
    %403 = tpu.matmul %402, %400, %cst_396 {dimension_numbers = #tpu.dot_dimension_numbers<[1], [0], [0], [1], [0, 0, 1, 1], [], []>} : vector<4x4xf32>, vector<4x100xf32>, vector<4x100xf32> -> vector<4x100xf32>
    %404 = arith.addf %399, %403 : vector<4x100xf32>
    %c0_397 = arith.constant 0 : index
    %c1_398 = arith.constant 1 : index
    %405 = vector.load %arg14[%c0_397, %c1_398] : memref<4x122xf32, #tpu.memory_space<vmem>>, vector<4x100xf32>
    %c27_399 = arith.constant 27 : index
    %c0_400 = arith.constant 0 : index
    %c0_401 = arith.constant 0 : index
    %406 = vector.load %arg4[%c27_399, %c0_400, %c0_401] : memref<36x4x4xf32, #tpu.memory_space<vmem>>, vector<1x4x4xf32>
    %407 = vector.shape_cast %406 : vector<1x4x4xf32> to vector<4x4xf32>
    %cst_402 = arith.constant dense<0.000000e+00> : vector<4x100xf32>
    %408 = tpu.matmul %407, %405, %cst_402 {dimension_numbers = #tpu.dot_dimension_numbers<[1], [0], [0], [1], [0, 0, 1, 1], [], []>} : vector<4x4xf32>, vector<4x100xf32>, vector<4x100xf32> -> vector<4x100xf32>
    %409 = arith.addf %404, %408 : vector<4x100xf32>
    %c0_403 = arith.constant 0 : index
    %c0_404 = arith.constant 0 : index
    %410 = vector.load %arg14[%c0_403, %c0_404] : memref<4x122xf32, #tpu.memory_space<vmem>>, vector<4x100xf32>
    %c29_405 = arith.constant 29 : index
    %c0_406 = arith.constant 0 : index
    %c0_407 = arith.constant 0 : index
    %411 = vector.load %arg4[%c29_405, %c0_406, %c0_407] : memref<36x4x4xf32, #tpu.memory_space<vmem>>, vector<1x4x4xf32>
    %412 = vector.shape_cast %411 : vector<1x4x4xf32> to vector<4x4xf32>
    %cst_408 = arith.constant dense<0.000000e+00> : vector<4x100xf32>
    %413 = tpu.matmul %412, %410, %cst_408 {dimension_numbers = #tpu.dot_dimension_numbers<[1], [0], [0], [1], [0, 0, 1, 1], [], []>} : vector<4x4xf32>, vector<4x100xf32>, vector<4x100xf32> -> vector<4x100xf32>
    %414 = arith.addf %409, %413 : vector<4x100xf32>
    %c0_409 = arith.constant 0 : index
    %c0_410 = arith.constant 0 : index
    %415 = vector.load %arg8[%c0_409, %c0_410] : memref<4x1xf32, #tpu.memory_space<vmem>>, vector<4x1xf32>
    %416 = vector.broadcast %415 : vector<4x1xf32> to vector<4x100xf32>
    %417 = arith.addf %414, %416 : vector<4x100xf32>
    %cst_411 = arith.constant 0.000000e+00 : f32
    %418 = vector.broadcast %cst_411 : f32 to vector<4x100xf32>
    %419 = arith.cmpf oge, %417, %418 : vector<4x100xf32>
    %420 = vector.broadcast %9 : f32 to vector<4x100xf32>
    %421 = arith.mulf %420, %417 : vector<4x100xf32>
    %422 = arith.select %419, %417, %421 : vector<4x100xi1>, vector<4x100xf32>
    %c1_412 = arith.constant 1 : index
    %c0_413 = arith.constant 0 : index
    %c11_414 = arith.constant 11 : index
    %423 = vector.load %arg13[%c1_412, %c0_413, %c11_414] : memref<4x4x122xf32, #tpu.memory_space<vmem>>, vector<1x4x100xf32>
    %424 = vector.shape_cast %423 : vector<1x4x100xf32> to vector<4x100xf32>
    %425 = arith.subf %422, %424 : vector<4x100xf32>
    %426 = vector.broadcast %6 : vector<1x100xf32> to vector<4x100xf32>
    %427 = arith.mulf %425, %426 : vector<4x100xf32>
    %c1_415 = arith.constant 1 : index
    %c0_416 = arith.constant 0 : index
    %c11_417 = arith.constant 11 : index
    %428 = vector.load %arg15[%c1_415, %c0_416, %c11_417] : memref<4x4x122xf32, #tpu.memory_space<vmem>>, vector<1x4x100xf32>
    %429 = vector.shape_cast %428 : vector<1x4x100xf32> to vector<4x100xf32>
    %430 = vector.shape_cast %427 : vector<4x100xf32> to vector<1x4x100xf32>
    tpu.vector_store %arg15[%c1_415, %c0_416, %c11_417], %430 {strides = array<i32>} : memref<4x4x122xf32, #tpu.memory_space<vmem>>, vector<1x4x100xf32>,
    %cst_418 = arith.constant 0.000000e+00 : f32
    %431 = vector.broadcast %cst_418 : f32 to vector<4x100xf32>
    %c0_419 = arith.constant 0 : index
    %c22_420 = arith.constant 22 : index
    %432 = vector.load %arg14[%c0_419, %c22_420] : memref<4x122xf32, #tpu.memory_space<vmem>>, vector<4x100xf32>
    %c6_421 = arith.constant 6 : index
    %c0_422 = arith.constant 0 : index
    %c0_423 = arith.constant 0 : index
    %433 = vector.load %arg4[%c6_421, %c0_422, %c0_423] : memref<36x4x4xf32, #tpu.memory_space<vmem>>, vector<1x4x4xf32>
    %434 = vector.shape_cast %433 : vector<1x4x4xf32> to vector<4x4xf32>
    %cst_424 = arith.constant dense<0.000000e+00> : vector<4x100xf32>
    %435 = tpu.matmul %434, %432, %cst_424 {dimension_numbers = #tpu.dot_dimension_numbers<[1], [0], [0], [1], [0, 0, 1, 1], [], []>} : vector<4x4xf32>, vector<4x100xf32>, vector<4x100xf32> -> vector<4x100xf32>
    %436 = arith.addf %431, %435 : vector<4x100xf32>
    %c0_425 = arith.constant 0 : index
    %c21_426 = arith.constant 21 : index
    %437 = vector.load %arg14[%c0_425, %c21_426] : memref<4x122xf32, #tpu.memory_space<vmem>>, vector<4x100xf32>
    %c8_427 = arith.constant 8 : index
    %c0_428 = arith.constant 0 : index
    %c0_429 = arith.constant 0 : index
    %438 = vector.load %arg4[%c8_427, %c0_428, %c0_429] : memref<36x4x4xf32, #tpu.memory_space<vmem>>, vector<1x4x4xf32>
    %439 = vector.shape_cast %438 : vector<1x4x4xf32> to vector<4x4xf32>
    %cst_430 = arith.constant dense<0.000000e+00> : vector<4x100xf32>
    %440 = tpu.matmul %439, %437, %cst_430 {dimension_numbers = #tpu.dot_dimension_numbers<[1], [0], [0], [1], [0, 0, 1, 1], [], []>} : vector<4x4xf32>, vector<4x100xf32>, vector<4x100xf32> -> vector<4x100xf32>
    %441 = arith.addf %436, %440 : vector<4x100xf32>
    %c0_431 = arith.constant 0 : index
    %c20_432 = arith.constant 20 : index
    %442 = vector.load %arg14[%c0_431, %c20_432] : memref<4x122xf32, #tpu.memory_space<vmem>>, vector<4x100xf32>
    %c10_433 = arith.constant 10 : index
    %c0_434 = arith.constant 0 : index
    %c0_435 = arith.constant 0 : index
    %443 = vector.load %arg4[%c10_433, %c0_434, %c0_435] : memref<36x4x4xf32, #tpu.memory_space<vmem>>, vector<1x4x4xf32>
    %444 = vector.shape_cast %443 : vector<1x4x4xf32> to vector<4x4xf32>
    %cst_436 = arith.constant dense<0.000000e+00> : vector<4x100xf32>
    %445 = tpu.matmul %444, %442, %cst_436 {dimension_numbers = #tpu.dot_dimension_numbers<[1], [0], [0], [1], [0, 0, 1, 1], [], []>} : vector<4x4xf32>, vector<4x100xf32>, vector<4x100xf32> -> vector<4x100xf32>
    %446 = arith.addf %441, %445 : vector<4x100xf32>
    %c0_437 = arith.constant 0 : index
    %c12_438 = arith.constant 12 : index
    %447 = vector.load %arg14[%c0_437, %c12_438] : memref<4x122xf32, #tpu.memory_space<vmem>>, vector<4x100xf32>
    %c18_439 = arith.constant 18 : index
    %c0_440 = arith.constant 0 : index
    %c0_441 = arith.constant 0 : index
    %448 = vector.load %arg4[%c18_439, %c0_440, %c0_441] : memref<36x4x4xf32, #tpu.memory_space<vmem>>, vector<1x4x4xf32>
    %449 = vector.shape_cast %448 : vector<1x4x4xf32> to vector<4x4xf32>
    %cst_442 = arith.constant dense<0.000000e+00> : vector<4x100xf32>
    %450 = tpu.matmul %449, %447, %cst_442 {dimension_numbers = #tpu.dot_dimension_numbers<[1], [0], [0], [1], [0, 0, 1, 1], [], []>} : vector<4x4xf32>, vector<4x100xf32>, vector<4x100xf32> -> vector<4x100xf32>
    %451 = arith.addf %446, %450 : vector<4x100xf32>
    %c0_443 = arith.constant 0 : index
    %c11_444 = arith.constant 11 : index
    %452 = vector.load %arg14[%c0_443, %c11_444] : memref<4x122xf32, #tpu.memory_space<vmem>>, vector<4x100xf32>
    %c20_445 = arith.constant 20 : index
    %c0_446 = arith.constant 0 : index
    %c0_447 = arith.constant 0 : index
    %453 = vector.load %arg4[%c20_445, %c0_446, %c0_447] : memref<36x4x4xf32, #tpu.memory_space<vmem>>, vector<1x4x4xf32>
    %454 = vector.shape_cast %453 : vector<1x4x4xf32> to vector<4x4xf32>
    %cst_448 = arith.constant dense<0.000000e+00> : vector<4x100xf32>
    %455 = tpu.matmul %454, %452, %cst_448 {dimension_numbers = #tpu.dot_dimension_numbers<[1], [0], [0], [1], [0, 0, 1, 1], [], []>} : vector<4x4xf32>, vector<4x100xf32>, vector<4x100xf32> -> vector<4x100xf32>
    %456 = arith.addf %451, %455 : vector<4x100xf32>
    %c0_449 = arith.constant 0 : index
    %c10_450 = arith.constant 10 : index
    %457 = vector.load %arg14[%c0_449, %c10_450] : memref<4x122xf32, #tpu.memory_space<vmem>>, vector<4x100xf32>
    %c22_451 = arith.constant 22 : index
    %c0_452 = arith.constant 0 : index
    %c0_453 = arith.constant 0 : index
    %458 = vector.load %arg4[%c22_451, %c0_452, %c0_453] : memref<36x4x4xf32, #tpu.memory_space<vmem>>, vector<1x4x4xf32>
    %459 = vector.shape_cast %458 : vector<1x4x4xf32> to vector<4x4xf32>
    %cst_454 = arith.constant dense<0.000000e+00> : vector<4x100xf32>
    %460 = tpu.matmul %459, %457, %cst_454 {dimension_numbers = #tpu.dot_dimension_numbers<[1], [0], [0], [1], [0, 0, 1, 1], [], []>} : vector<4x4xf32>, vector<4x100xf32>, vector<4x100xf32> -> vector<4x100xf32>
    %461 = arith.addf %456, %460 : vector<4x100xf32>
    %c0_455 = arith.constant 0 : index
    %c2_456 = arith.constant 2 : index
    %462 = vector.load %arg14[%c0_455, %c2_456] : memref<4x122xf32, #tpu.memory_space<vmem>>, vector<4x100xf32>
    %c30_457 = arith.constant 30 : index
    %c0_458 = arith.constant 0 : index
    %c0_459 = arith.constant 0 : index
    %463 = vector.load %arg4[%c30_457, %c0_458, %c0_459] : memref<36x4x4xf32, #tpu.memory_space<vmem>>, vector<1x4x4xf32>
    %464 = vector.shape_cast %463 : vector<1x4x4xf32> to vector<4x4xf32>
    %cst_460 = arith.constant dense<0.000000e+00> : vector<4x100xf32>
    %465 = tpu.matmul %464, %462, %cst_460 {dimension_numbers = #tpu.dot_dimension_numbers<[1], [0], [0], [1], [0, 0, 1, 1], [], []>} : vector<4x4xf32>, vector<4x100xf32>, vector<4x100xf32> -> vector<4x100xf32>
    %466 = arith.addf %461, %465 : vector<4x100xf32>
    %c0_461 = arith.constant 0 : index
    %c1_462 = arith.constant 1 : index
    %467 = vector.load %arg14[%c0_461, %c1_462] : memref<4x122xf32, #tpu.memory_space<vmem>>, vector<4x100xf32>
    %c32_463 = arith.constant 32 : index
    %c0_464 = arith.constant 0 : index
    %c0_465 = arith.constant 0 : index
    %468 = vector.load %arg4[%c32_463, %c0_464, %c0_465] : memref<36x4x4xf32, #tpu.memory_space<vmem>>, vector<1x4x4xf32>
    %469 = vector.shape_cast %468 : vector<1x4x4xf32> to vector<4x4xf32>
    %cst_466 = arith.constant dense<0.000000e+00> : vector<4x100xf32>
    %470 = tpu.matmul %469, %467, %cst_466 {dimension_numbers = #tpu.dot_dimension_numbers<[1], [0], [0], [1], [0, 0, 1, 1], [], []>} : vector<4x4xf32>, vector<4x100xf32>, vector<4x100xf32> -> vector<4x100xf32>
    %471 = arith.addf %466, %470 : vector<4x100xf32>
    %c0_467 = arith.constant 0 : index
    %c0_468 = arith.constant 0 : index
    %472 = vector.load %arg14[%c0_467, %c0_468] : memref<4x122xf32, #tpu.memory_space<vmem>>, vector<4x100xf32>
    %c34_469 = arith.constant 34 : index
    %c0_470 = arith.constant 0 : index
    %c0_471 = arith.constant 0 : index
    %473 = vector.load %arg4[%c34_469, %c0_470, %c0_471] : memref<36x4x4xf32, #tpu.memory_space<vmem>>, vector<1x4x4xf32>
    %474 = vector.shape_cast %473 : vector<1x4x4xf32> to vector<4x4xf32>
    %cst_472 = arith.constant dense<0.000000e+00> : vector<4x100xf32>
    %475 = tpu.matmul %474, %472, %cst_472 {dimension_numbers = #tpu.dot_dimension_numbers<[1], [0], [0], [1], [0, 0, 1, 1], [], []>} : vector<4x4xf32>, vector<4x100xf32>, vector<4x100xf32> -> vector<4x100xf32>
    %476 = arith.addf %471, %475 : vector<4x100xf32>
    %c0_473 = arith.constant 0 : index
    %c0_474 = arith.constant 0 : index
    %477 = vector.load %arg8[%c0_473, %c0_474] : memref<4x1xf32, #tpu.memory_space<vmem>>, vector<4x1xf32>
    %478 = vector.broadcast %477 : vector<4x1xf32> to vector<4x100xf32>
    %479 = arith.addf %476, %478 : vector<4x100xf32>
    %cst_475 = arith.constant 0.000000e+00 : f32
    %480 = vector.broadcast %cst_475 : f32 to vector<4x100xf32>
    %481 = arith.cmpf oge, %479, %480 : vector<4x100xf32>
    %482 = vector.broadcast %9 : f32 to vector<4x100xf32>
    %483 = arith.mulf %482, %479 : vector<4x100xf32>
    %484 = arith.select %481, %479, %483 : vector<4x100xi1>, vector<4x100xf32>
    %c2_476 = arith.constant 2 : index
    %c0_477 = arith.constant 0 : index
    %c11_478 = arith.constant 11 : index
    %485 = vector.load %arg13[%c2_476, %c0_477, %c11_478] : memref<4x4x122xf32, #tpu.memory_space<vmem>>, vector<1x4x100xf32>
    %486 = vector.shape_cast %485 : vector<1x4x100xf32> to vector<4x100xf32>
    %487 = arith.subf %484, %486 : vector<4x100xf32>
    %488 = vector.broadcast %6 : vector<1x100xf32> to vector<4x100xf32>
    %489 = arith.mulf %487, %488 : vector<4x100xf32>
    %c2_479 = arith.constant 2 : index
    %c0_480 = arith.constant 0 : index
    %c11_481 = arith.constant 11 : index
    %490 = vector.load %arg15[%c2_479, %c0_480, %c11_481] : memref<4x4x122xf32, #tpu.memory_space<vmem>>, vector<1x4x100xf32>
    %491 = vector.shape_cast %490 : vector<1x4x100xf32> to vector<4x100xf32>
    %492 = vector.shape_cast %489 : vector<4x100xf32> to vector<1x4x100xf32>
    tpu.vector_store %arg15[%c2_479, %c0_480, %c11_481], %492 {strides = array<i32>} : memref<4x4x122xf32, #tpu.memory_space<vmem>>, vector<1x4x100xf32>,
    %cst_482 = arith.constant 0.000000e+00 : f32
    %493 = vector.broadcast %cst_482 : f32 to vector<4x100xf32>
    %c0_483 = arith.constant 0 : index
    %c22_484 = arith.constant 22 : index
    %494 = vector.load %arg14[%c0_483, %c22_484] : memref<4x122xf32, #tpu.memory_space<vmem>>, vector<4x100xf32>
    %c7_485 = arith.constant 7 : index
    %c0_486 = arith.constant 0 : index
    %c0_487 = arith.constant 0 : index
    %495 = vector.load %arg4[%c7_485, %c0_486, %c0_487] : memref<36x4x4xf32, #tpu.memory_space<vmem>>, vector<1x4x4xf32>
    %496 = vector.shape_cast %495 : vector<1x4x4xf32> to vector<4x4xf32>
    %cst_488 = arith.constant dense<0.000000e+00> : vector<4x100xf32>
    %497 = tpu.matmul %496, %494, %cst_488 {dimension_numbers = #tpu.dot_dimension_numbers<[1], [0], [0], [1], [0, 0, 1, 1], [], []>} : vector<4x4xf32>, vector<4x100xf32>, vector<4x100xf32> -> vector<4x100xf32>
    %498 = arith.addf %493, %497 : vector<4x100xf32>
    %c0_489 = arith.constant 0 : index
    %c21_490 = arith.constant 21 : index
    %499 = vector.load %arg14[%c0_489, %c21_490] : memref<4x122xf32, #tpu.memory_space<vmem>>, vector<4x100xf32>
    %c9_491 = arith.constant 9 : index
    %c0_492 = arith.constant 0 : index
    %c0_493 = arith.constant 0 : index
    %500 = vector.load %arg4[%c9_491, %c0_492, %c0_493] : memref<36x4x4xf32, #tpu.memory_space<vmem>>, vector<1x4x4xf32>
    %501 = vector.shape_cast %500 : vector<1x4x4xf32> to vector<4x4xf32>
    %cst_494 = arith.constant dense<0.000000e+00> : vector<4x100xf32>
    %502 = tpu.matmul %501, %499, %cst_494 {dimension_numbers = #tpu.dot_dimension_numbers<[1], [0], [0], [1], [0, 0, 1, 1], [], []>} : vector<4x4xf32>, vector<4x100xf32>, vector<4x100xf32> -> vector<4x100xf32>
    %503 = arith.addf %498, %502 : vector<4x100xf32>
    %c0_495 = arith.constant 0 : index
    %c20_496 = arith.constant 20 : index
    %504 = vector.load %arg14[%c0_495, %c20_496] : memref<4x122xf32, #tpu.memory_space<vmem>>, vector<4x100xf32>
    %c11_497 = arith.constant 11 : index
    %c0_498 = arith.constant 0 : index
    %c0_499 = arith.constant 0 : index
    %505 = vector.load %arg4[%c11_497, %c0_498, %c0_499] : memref<36x4x4xf32, #tpu.memory_space<vmem>>, vector<1x4x4xf32>
    %506 = vector.shape_cast %505 : vector<1x4x4xf32> to vector<4x4xf32>
    %cst_500 = arith.constant dense<0.000000e+00> : vector<4x100xf32>
    %507 = tpu.matmul %506, %504, %cst_500 {dimension_numbers = #tpu.dot_dimension_numbers<[1], [0], [0], [1], [0, 0, 1, 1], [], []>} : vector<4x4xf32>, vector<4x100xf32>, vector<4x100xf32> -> vector<4x100xf32>
    %508 = arith.addf %503, %507 : vector<4x100xf32>
    %c0_501 = arith.constant 0 : index
    %c12_502 = arith.constant 12 : index
    %509 = vector.load %arg14[%c0_501, %c12_502] : memref<4x122xf32, #tpu.memory_space<vmem>>, vector<4x100xf32>
    %c19_503 = arith.constant 19 : index
    %c0_504 = arith.constant 0 : index
    %c0_505 = arith.constant 0 : index
    %510 = vector.load %arg4[%c19_503, %c0_504, %c0_505] : memref<36x4x4xf32, #tpu.memory_space<vmem>>, vector<1x4x4xf32>
    %511 = vector.shape_cast %510 : vector<1x4x4xf32> to vector<4x4xf32>
    %cst_506 = arith.constant dense<0.000000e+00> : vector<4x100xf32>
    %512 = tpu.matmul %511, %509, %cst_506 {dimension_numbers = #tpu.dot_dimension_numbers<[1], [0], [0], [1], [0, 0, 1, 1], [], []>} : vector<4x4xf32>, vector<4x100xf32>, vector<4x100xf32> -> vector<4x100xf32>
    %513 = arith.addf %508, %512 : vector<4x100xf32>
    %c0_507 = arith.constant 0 : index
    %c11_508 = arith.constant 11 : index
    %514 = vector.load %arg14[%c0_507, %c11_508] : memref<4x122xf32, #tpu.memory_space<vmem>>, vector<4x100xf32>
    %c21_509 = arith.constant 21 : index
    %c0_510 = arith.constant 0 : index
    %c0_511 = arith.constant 0 : index
    %515 = vector.load %arg4[%c21_509, %c0_510, %c0_511] : memref<36x4x4xf32, #tpu.memory_space<vmem>>, vector<1x4x4xf32>
    %516 = vector.shape_cast %515 : vector<1x4x4xf32> to vector<4x4xf32>
    %cst_512 = arith.constant dense<0.000000e+00> : vector<4x100xf32>
    %517 = tpu.matmul %516, %514, %cst_512 {dimension_numbers = #tpu.dot_dimension_numbers<[1], [0], [0], [1], [0, 0, 1, 1], [], []>} : vector<4x4xf32>, vector<4x100xf32>, vector<4x100xf32> -> vector<4x100xf32>
    %518 = arith.addf %513, %517 : vector<4x100xf32>
    %c0_513 = arith.constant 0 : index
    %c10_514 = arith.constant 10 : index
    %519 = vector.load %arg14[%c0_513, %c10_514] : memref<4x122xf32, #tpu.memory_space<vmem>>, vector<4x100xf32>
    %c23_515 = arith.constant 23 : index
    %c0_516 = arith.constant 0 : index
    %c0_517 = arith.constant 0 : index
    %520 = vector.load %arg4[%c23_515, %c0_516, %c0_517] : memref<36x4x4xf32, #tpu.memory_space<vmem>>, vector<1x4x4xf32>
    %521 = vector.shape_cast %520 : vector<1x4x4xf32> to vector<4x4xf32>
    %cst_518 = arith.constant dense<0.000000e+00> : vector<4x100xf32>
    %522 = tpu.matmul %521, %519, %cst_518 {dimension_numbers = #tpu.dot_dimension_numbers<[1], [0], [0], [1], [0, 0, 1, 1], [], []>} : vector<4x4xf32>, vector<4x100xf32>, vector<4x100xf32> -> vector<4x100xf32>
    %523 = arith.addf %518, %522 : vector<4x100xf32>
    %c0_519 = arith.constant 0 : index
    %c2_520 = arith.constant 2 : index
    %524 = vector.load %arg14[%c0_519, %c2_520] : memref<4x122xf32, #tpu.memory_space<vmem>>, vector<4x100xf32>
    %c31_521 = arith.constant 31 : index
    %c0_522 = arith.constant 0 : index
    %c0_523 = arith.constant 0 : index
    %525 = vector.load %arg4[%c31_521, %c0_522, %c0_523] : memref<36x4x4xf32, #tpu.memory_space<vmem>>, vector<1x4x4xf32>
    %526 = vector.shape_cast %525 : vector<1x4x4xf32> to vector<4x4xf32>
    %cst_524 = arith.constant dense<0.000000e+00> : vector<4x100xf32>
    %527 = tpu.matmul %526, %524, %cst_524 {dimension_numbers = #tpu.dot_dimension_numbers<[1], [0], [0], [1], [0, 0, 1, 1], [], []>} : vector<4x4xf32>, vector<4x100xf32>, vector<4x100xf32> -> vector<4x100xf32>
    %528 = arith.addf %523, %527 : vector<4x100xf32>
    %c0_525 = arith.constant 0 : index
    %c1_526 = arith.constant 1 : index
    %529 = vector.load %arg14[%c0_525, %c1_526] : memref<4x122xf32, #tpu.memory_space<vmem>>, vector<4x100xf32>
    %c33_527 = arith.constant 33 : index
    %c0_528 = arith.constant 0 : index
    %c0_529 = arith.constant 0 : index
    %530 = vector.load %arg4[%c33_527, %c0_528, %c0_529] : memref<36x4x4xf32, #tpu.memory_space<vmem>>, vector<1x4x4xf32>
    %531 = vector.shape_cast %530 : vector<1x4x4xf32> to vector<4x4xf32>
    %cst_530 = arith.constant dense<0.000000e+00> : vector<4x100xf32>
    %532 = tpu.matmul %531, %529, %cst_530 {dimension_numbers = #tpu.dot_dimension_numbers<[1], [0], [0], [1], [0, 0, 1, 1], [], []>} : vector<4x4xf32>, vector<4x100xf32>, vector<4x100xf32> -> vector<4x100xf32>
    %533 = arith.addf %528, %532 : vector<4x100xf32>
    %c0_531 = arith.constant 0 : index
    %c0_532 = arith.constant 0 : index
    %534 = vector.load %arg14[%c0_531, %c0_532] : memref<4x122xf32, #tpu.memory_space<vmem>>, vector<4x100xf32>
    %c35_533 = arith.constant 35 : index
    %c0_534 = arith.constant 0 : index
    %c0_535 = arith.constant 0 : index
    %535 = vector.load %arg4[%c35_533, %c0_534, %c0_535] : memref<36x4x4xf32, #tpu.memory_space<vmem>>, vector<1x4x4xf32>
    %536 = vector.shape_cast %535 : vector<1x4x4xf32> to vector<4x4xf32>
    %cst_536 = arith.constant dense<0.000000e+00> : vector<4x100xf32>
    %537 = tpu.matmul %536, %534, %cst_536 {dimension_numbers = #tpu.dot_dimension_numbers<[1], [0], [0], [1], [0, 0, 1, 1], [], []>} : vector<4x4xf32>, vector<4x100xf32>, vector<4x100xf32> -> vector<4x100xf32>
    %538 = arith.addf %533, %537 : vector<4x100xf32>
    %c0_537 = arith.constant 0 : index
    %c0_538 = arith.constant 0 : index
    %539 = vector.load %arg8[%c0_537, %c0_538] : memref<4x1xf32, #tpu.memory_space<vmem>>, vector<4x1xf32>
    %540 = vector.broadcast %539 : vector<4x1xf32> to vector<4x100xf32>
    %541 = arith.addf %538, %540 : vector<4x100xf32>
    %cst_539 = arith.constant 0.000000e+00 : f32
    %542 = vector.broadcast %cst_539 : f32 to vector<4x100xf32>
    %543 = arith.cmpf oge, %541, %542 : vector<4x100xf32>
    %544 = vector.broadcast %9 : f32 to vector<4x100xf32>
    %545 = arith.mulf %544, %541 : vector<4x100xf32>
    %546 = arith.select %543, %541, %545 : vector<4x100xi1>, vector<4x100xf32>
    %c3_540 = arith.constant 3 : index
    %c0_541 = arith.constant 0 : index
    %c11_542 = arith.constant 11 : index
    %547 = vector.load %arg13[%c3_540, %c0_541, %c11_542] : memref<4x4x122xf32, #tpu.memory_space<vmem>>, vector<1x4x100xf32>
    %548 = vector.shape_cast %547 : vector<1x4x100xf32> to vector<4x100xf32>
    %549 = arith.subf %546, %548 : vector<4x100xf32>
    %550 = vector.broadcast %6 : vector<1x100xf32> to vector<4x100xf32>
    %551 = arith.mulf %549, %550 : vector<4x100xf32>
    %c3_543 = arith.constant 3 : index
    %c0_544 = arith.constant 0 : index
    %c11_545 = arith.constant 11 : index
    %552 = vector.load %arg15[%c3_543, %c0_544, %c11_545] : memref<4x4x122xf32, #tpu.memory_space<vmem>>, vector<1x4x100xf32>
    %553 = vector.shape_cast %552 : vector<1x4x100xf32> to vector<4x100xf32>
    %554 = vector.shape_cast %551 : vector<4x100xf32> to vector<1x4x100xf32>
    tpu.vector_store %arg15[%c3_543, %c0_544, %c11_545], %554 {strides = array<i32>} : memref<4x4x122xf32, #tpu.memory_space<vmem>>, vector<1x4x100xf32>,
    %cst_546 = arith.constant 0.000000e+00 : f32
    %555 = vector.broadcast %cst_546 : f32 to vector<4x100xf32>
    %c0_547 = arith.constant 0 : index
    %c0_548 = arith.constant 0 : index
    %c0_549 = arith.constant 0 : index
    %556 = vector.load %arg15[%c0_547, %c0_548, %c0_549] : memref<4x4x122xf32, #tpu.memory_space<vmem>>, vector<1x4x100xf32>
    %557 = vector.shape_cast %556 : vector<1x4x100xf32> to vector<4x100xf32>
    %c0_550 = arith.constant 0 : index
    %c0_551 = arith.constant 0 : index
    %c0_552 = arith.constant 0 : index
    %558 = vector.load %arg5[%c0_550, %c0_551, %c0_552] : memref<36x4x4xf32, #tpu.memory_space<vmem>>, vector<1x4x4xf32>
    %559 = vector.shape_cast %558 : vector<1x4x4xf32> to vector<4x4xf32>
    %cst_553 = arith.constant dense<0.000000e+00> : vector<4x100xf32>
    %560 = tpu.matmul %559, %557, %cst_553 {dimension_numbers = #tpu.dot_dimension_numbers<[1], [0], [0], [1], [0, 0, 1, 1], [], []>} : vector<4x4xf32>, vector<4x100xf32>, vector<4x100xf32> -> vector<4x100xf32>
    %561 = arith.addf %555, %560 : vector<4x100xf32>
    %c1_554 = arith.constant 1 : index
    %c0_555 = arith.constant 0 : index
    %c0_556 = arith.constant 0 : index
    %562 = vector.load %arg15[%c1_554, %c0_555, %c0_556] : memref<4x4x122xf32, #tpu.memory_space<vmem>>, vector<1x4x100xf32>
    %563 = vector.shape_cast %562 : vector<1x4x100xf32> to vector<4x100xf32>
    %c1_557 = arith.constant 1 : index
    %c0_558 = arith.constant 0 : index
    %c0_559 = arith.constant 0 : index
    %564 = vector.load %arg5[%c1_557, %c0_558, %c0_559] : memref<36x4x4xf32, #tpu.memory_space<vmem>>, vector<1x4x4xf32>
    %565 = vector.shape_cast %564 : vector<1x4x4xf32> to vector<4x4xf32>
    %cst_560 = arith.constant dense<0.000000e+00> : vector<4x100xf32>
    %566 = tpu.matmul %565, %563, %cst_560 {dimension_numbers = #tpu.dot_dimension_numbers<[1], [0], [0], [1], [0, 0, 1, 1], [], []>} : vector<4x4xf32>, vector<4x100xf32>, vector<4x100xf32> -> vector<4x100xf32>
    %567 = arith.addf %561, %566 : vector<4x100xf32>
    %c0_561 = arith.constant 0 : index
    %c0_562 = arith.constant 0 : index
    %c1_563 = arith.constant 1 : index
    %568 = vector.load %arg15[%c0_561, %c0_562, %c1_563] : memref<4x4x122xf32, #tpu.memory_space<vmem>>, vector<1x4x100xf32>
    %569 = vector.shape_cast %568 : vector<1x4x100xf32> to vector<4x100xf32>
    %c2_564 = arith.constant 2 : index
    %c0_565 = arith.constant 0 : index
    %c0_566 = arith.constant 0 : index
    %570 = vector.load %arg5[%c2_564, %c0_565, %c0_566] : memref<36x4x4xf32, #tpu.memory_space<vmem>>, vector<1x4x4xf32>
    %571 = vector.shape_cast %570 : vector<1x4x4xf32> to vector<4x4xf32>
    %cst_567 = arith.constant dense<0.000000e+00> : vector<4x100xf32>
    %572 = tpu.matmul %571, %569, %cst_567 {dimension_numbers = #tpu.dot_dimension_numbers<[1], [0], [0], [1], [0, 0, 1, 1], [], []>} : vector<4x4xf32>, vector<4x100xf32>, vector<4x100xf32> -> vector<4x100xf32>
    %573 = arith.addf %567, %572 : vector<4x100xf32>
    %c1_568 = arith.constant 1 : index
    %c0_569 = arith.constant 0 : index
    %c1_570 = arith.constant 1 : index
    %574 = vector.load %arg15[%c1_568, %c0_569, %c1_570] : memref<4x4x122xf32, #tpu.memory_space<vmem>>, vector<1x4x100xf32>
    %575 = vector.shape_cast %574 : vector<1x4x100xf32> to vector<4x100xf32>
    %c3_571 = arith.constant 3 : index
    %c0_572 = arith.constant 0 : index
    %c0_573 = arith.constant 0 : index
    %576 = vector.load %arg5[%c3_571, %c0_572, %c0_573] : memref<36x4x4xf32, #tpu.memory_space<vmem>>, vector<1x4x4xf32>
    %577 = vector.shape_cast %576 : vector<1x4x4xf32> to vector<4x4xf32>
    %cst_574 = arith.constant dense<0.000000e+00> : vector<4x100xf32>
    %578 = tpu.matmul %577, %575, %cst_574 {dimension_numbers = #tpu.dot_dimension_numbers<[1], [0], [0], [1], [0, 0, 1, 1], [], []>} : vector<4x4xf32>, vector<4x100xf32>, vector<4x100xf32> -> vector<4x100xf32>
    %579 = arith.addf %573, %578 : vector<4x100xf32>
    %c0_575 = arith.constant 0 : index
    %c0_576 = arith.constant 0 : index
    %c2_577 = arith.constant 2 : index
    %580 = vector.load %arg15[%c0_575, %c0_576, %c2_577] : memref<4x4x122xf32, #tpu.memory_space<vmem>>, vector<1x4x100xf32>
    %581 = vector.shape_cast %580 : vector<1x4x100xf32> to vector<4x100xf32>
    %c4_578 = arith.constant 4 : index
    %c0_579 = arith.constant 0 : index
    %c0_580 = arith.constant 0 : index
    %582 = vector.load %arg5[%c4_578, %c0_579, %c0_580] : memref<36x4x4xf32, #tpu.memory_space<vmem>>, vector<1x4x4xf32>
    %583 = vector.shape_cast %582 : vector<1x4x4xf32> to vector<4x4xf32>
    %cst_581 = arith.constant dense<0.000000e+00> : vector<4x100xf32>
    %584 = tpu.matmul %583, %581, %cst_581 {dimension_numbers = #tpu.dot_dimension_numbers<[1], [0], [0], [1], [0, 0, 1, 1], [], []>} : vector<4x4xf32>, vector<4x100xf32>, vector<4x100xf32> -> vector<4x100xf32>
    %585 = arith.addf %579, %584 : vector<4x100xf32>
    %c1_582 = arith.constant 1 : index
    %c0_583 = arith.constant 0 : index
    %c2_584 = arith.constant 2 : index
    %586 = vector.load %arg15[%c1_582, %c0_583, %c2_584] : memref<4x4x122xf32, #tpu.memory_space<vmem>>, vector<1x4x100xf32>
    %587 = vector.shape_cast %586 : vector<1x4x100xf32> to vector<4x100xf32>
    %c5_585 = arith.constant 5 : index
    %c0_586 = arith.constant 0 : index
    %c0_587 = arith.constant 0 : index
    %588 = vector.load %arg5[%c5_585, %c0_586, %c0_587] : memref<36x4x4xf32, #tpu.memory_space<vmem>>, vector<1x4x4xf32>
    %589 = vector.shape_cast %588 : vector<1x4x4xf32> to vector<4x4xf32>
    %cst_588 = arith.constant dense<0.000000e+00> : vector<4x100xf32>
    %590 = tpu.matmul %589, %587, %cst_588 {dimension_numbers = #tpu.dot_dimension_numbers<[1], [0], [0], [1], [0, 0, 1, 1], [], []>} : vector<4x4xf32>, vector<4x100xf32>, vector<4x100xf32> -> vector<4x100xf32>
    %591 = arith.addf %585, %590 : vector<4x100xf32>
    %c2_589 = arith.constant 2 : index
    %c0_590 = arith.constant 0 : index
    %c0_591 = arith.constant 0 : index
    %592 = vector.load %arg15[%c2_589, %c0_590, %c0_591] : memref<4x4x122xf32, #tpu.memory_space<vmem>>, vector<1x4x100xf32>
    %593 = vector.shape_cast %592 : vector<1x4x100xf32> to vector<4x100xf32>
    %c6_592 = arith.constant 6 : index
    %c0_593 = arith.constant 0 : index
    %c0_594 = arith.constant 0 : index
    %594 = vector.load %arg5[%c6_592, %c0_593, %c0_594] : memref<36x4x4xf32, #tpu.memory_space<vmem>>, vector<1x4x4xf32>
    %595 = vector.shape_cast %594 : vector<1x4x4xf32> to vector<4x4xf32>
    %cst_595 = arith.constant dense<0.000000e+00> : vector<4x100xf32>
    %596 = tpu.matmul %595, %593, %cst_595 {dimension_numbers = #tpu.dot_dimension_numbers<[1], [0], [0], [1], [0, 0, 1, 1], [], []>} : vector<4x4xf32>, vector<4x100xf32>, vector<4x100xf32> -> vector<4x100xf32>
    %597 = arith.addf %591, %596 : vector<4x100xf32>
    %c3_596 = arith.constant 3 : index
    %c0_597 = arith.constant 0 : index
    %c0_598 = arith.constant 0 : index
    %598 = vector.load %arg15[%c3_596, %c0_597, %c0_598] : memref<4x4x122xf32, #tpu.memory_space<vmem>>, vector<1x4x100xf32>
    %599 = vector.shape_cast %598 : vector<1x4x100xf32> to vector<4x100xf32>
    %c7_599 = arith.constant 7 : index
    %c0_600 = arith.constant 0 : index
    %c0_601 = arith.constant 0 : index
    %600 = vector.load %arg5[%c7_599, %c0_600, %c0_601] : memref<36x4x4xf32, #tpu.memory_space<vmem>>, vector<1x4x4xf32>
    %601 = vector.shape_cast %600 : vector<1x4x4xf32> to vector<4x4xf32>
    %cst_602 = arith.constant dense<0.000000e+00> : vector<4x100xf32>
    %602 = tpu.matmul %601, %599, %cst_602 {dimension_numbers = #tpu.dot_dimension_numbers<[1], [0], [0], [1], [0, 0, 1, 1], [], []>} : vector<4x4xf32>, vector<4x100xf32>, vector<4x100xf32> -> vector<4x100xf32>
    %603 = arith.addf %597, %602 : vector<4x100xf32>
    %c2_603 = arith.constant 2 : index
    %c0_604 = arith.constant 0 : index
    %c1_605 = arith.constant 1 : index
    %604 = vector.load %arg15[%c2_603, %c0_604, %c1_605] : memref<4x4x122xf32, #tpu.memory_space<vmem>>, vector<1x4x100xf32>
    %605 = vector.shape_cast %604 : vector<1x4x100xf32> to vector<4x100xf32>
    %c8_606 = arith.constant 8 : index
    %c0_607 = arith.constant 0 : index
    %c0_608 = arith.constant 0 : index
    %606 = vector.load %arg5[%c8_606, %c0_607, %c0_608] : memref<36x4x4xf32, #tpu.memory_space<vmem>>, vector<1x4x4xf32>
    %607 = vector.shape_cast %606 : vector<1x4x4xf32> to vector<4x4xf32>
    %cst_609 = arith.constant dense<0.000000e+00> : vector<4x100xf32>
    %608 = tpu.matmul %607, %605, %cst_609 {dimension_numbers = #tpu.dot_dimension_numbers<[1], [0], [0], [1], [0, 0, 1, 1], [], []>} : vector<4x4xf32>, vector<4x100xf32>, vector<4x100xf32> -> vector<4x100xf32>
    %609 = arith.addf %603, %608 : vector<4x100xf32>
    %c3_610 = arith.constant 3 : index
    %c0_611 = arith.constant 0 : index
    %c1_612 = arith.constant 1 : index
    %610 = vector.load %arg15[%c3_610, %c0_611, %c1_612] : memref<4x4x122xf32, #tpu.memory_space<vmem>>, vector<1x4x100xf32>
    %611 = vector.shape_cast %610 : vector<1x4x100xf32> to vector<4x100xf32>
    %c9_613 = arith.constant 9 : index
    %c0_614 = arith.constant 0 : index
    %c0_615 = arith.constant 0 : index
    %612 = vector.load %arg5[%c9_613, %c0_614, %c0_615] : memref<36x4x4xf32, #tpu.memory_space<vmem>>, vector<1x4x4xf32>
    %613 = vector.shape_cast %612 : vector<1x4x4xf32> to vector<4x4xf32>
    %cst_616 = arith.constant dense<0.000000e+00> : vector<4x100xf32>
    %614 = tpu.matmul %613, %611, %cst_616 {dimension_numbers = #tpu.dot_dimension_numbers<[1], [0], [0], [1], [0, 0, 1, 1], [], []>} : vector<4x4xf32>, vector<4x100xf32>, vector<4x100xf32> -> vector<4x100xf32>
    %615 = arith.addf %609, %614 : vector<4x100xf32>
    %c2_617 = arith.constant 2 : index
    %c0_618 = arith.constant 0 : index
    %c2_619 = arith.constant 2 : index
    %616 = vector.load %arg15[%c2_617, %c0_618, %c2_619] : memref<4x4x122xf32, #tpu.memory_space<vmem>>, vector<1x4x100xf32>
    %617 = vector.shape_cast %616 : vector<1x4x100xf32> to vector<4x100xf32>
    %c10_620 = arith.constant 10 : index
    %c0_621 = arith.constant 0 : index
    %c0_622 = arith.constant 0 : index
    %618 = vector.load %arg5[%c10_620, %c0_621, %c0_622] : memref<36x4x4xf32, #tpu.memory_space<vmem>>, vector<1x4x4xf32>
    %619 = vector.shape_cast %618 : vector<1x4x4xf32> to vector<4x4xf32>
    %cst_623 = arith.constant dense<0.000000e+00> : vector<4x100xf32>
    %620 = tpu.matmul %619, %617, %cst_623 {dimension_numbers = #tpu.dot_dimension_numbers<[1], [0], [0], [1], [0, 0, 1, 1], [], []>} : vector<4x4xf32>, vector<4x100xf32>, vector<4x100xf32> -> vector<4x100xf32>
    %621 = arith.addf %615, %620 : vector<4x100xf32>
    %c3_624 = arith.constant 3 : index
    %c0_625 = arith.constant 0 : index
    %c2_626 = arith.constant 2 : index
    %622 = vector.load %arg15[%c3_624, %c0_625, %c2_626] : memref<4x4x122xf32, #tpu.memory_space<vmem>>, vector<1x4x100xf32>
    %623 = vector.shape_cast %622 : vector<1x4x100xf32> to vector<4x100xf32>
    %c11_627 = arith.constant 11 : index
    %c0_628 = arith.constant 0 : index
    %c0_629 = arith.constant 0 : index
    %624 = vector.load %arg5[%c11_627, %c0_628, %c0_629] : memref<36x4x4xf32, #tpu.memory_space<vmem>>, vector<1x4x4xf32>
    %625 = vector.shape_cast %624 : vector<1x4x4xf32> to vector<4x4xf32>
    %cst_630 = arith.constant dense<0.000000e+00> : vector<4x100xf32>
    %626 = tpu.matmul %625, %623, %cst_630 {dimension_numbers = #tpu.dot_dimension_numbers<[1], [0], [0], [1], [0, 0, 1, 1], [], []>} : vector<4x4xf32>, vector<4x100xf32>, vector<4x100xf32> -> vector<4x100xf32>
    %627 = arith.addf %621, %626 : vector<4x100xf32>
    %c0_631 = arith.constant 0 : index
    %c0_632 = arith.constant 0 : index
    %c10_633 = arith.constant 10 : index
    %628 = vector.load %arg15[%c0_631, %c0_632, %c10_633] : memref<4x4x122xf32, #tpu.memory_space<vmem>>, vector<1x4x100xf32>
    %629 = vector.shape_cast %628 : vector<1x4x100xf32> to vector<4x100xf32>
    %c12_634 = arith.constant 12 : index
    %c0_635 = arith.constant 0 : index
    %c0_636 = arith.constant 0 : index
    %630 = vector.load %arg5[%c12_634, %c0_635, %c0_636] : memref<36x4x4xf32, #tpu.memory_space<vmem>>, vector<1x4x4xf32>
    %631 = vector.shape_cast %630 : vector<1x4x4xf32> to vector<4x4xf32>
    %cst_637 = arith.constant dense<0.000000e+00> : vector<4x100xf32>
    %632 = tpu.matmul %631, %629, %cst_637 {dimension_numbers = #tpu.dot_dimension_numbers<[1], [0], [0], [1], [0, 0, 1, 1], [], []>} : vector<4x4xf32>, vector<4x100xf32>, vector<4x100xf32> -> vector<4x100xf32>
    %633 = arith.addf %627, %632 : vector<4x100xf32>
    %c1_638 = arith.constant 1 : index
    %c0_639 = arith.constant 0 : index
    %c10_640 = arith.constant 10 : index
    %634 = vector.load %arg15[%c1_638, %c0_639, %c10_640] : memref<4x4x122xf32, #tpu.memory_space<vmem>>, vector<1x4x100xf32>
    %635 = vector.shape_cast %634 : vector<1x4x100xf32> to vector<4x100xf32>
    %c13_641 = arith.constant 13 : index
    %c0_642 = arith.constant 0 : index
    %c0_643 = arith.constant 0 : index
    %636 = vector.load %arg5[%c13_641, %c0_642, %c0_643] : memref<36x4x4xf32, #tpu.memory_space<vmem>>, vector<1x4x4xf32>
    %637 = vector.shape_cast %636 : vector<1x4x4xf32> to vector<4x4xf32>
    %cst_644 = arith.constant dense<0.000000e+00> : vector<4x100xf32>
    %638 = tpu.matmul %637, %635, %cst_644 {dimension_numbers = #tpu.dot_dimension_numbers<[1], [0], [0], [1], [0, 0, 1, 1], [], []>} : vector<4x4xf32>, vector<4x100xf32>, vector<4x100xf32> -> vector<4x100xf32>
    %639 = arith.addf %633, %638 : vector<4x100xf32>
    %c0_645 = arith.constant 0 : index
    %c0_646 = arith.constant 0 : index
    %c11_647 = arith.constant 11 : index
    %640 = vector.load %arg15[%c0_645, %c0_646, %c11_647] : memref<4x4x122xf32, #tpu.memory_space<vmem>>, vector<1x4x100xf32>
    %641 = vector.shape_cast %640 : vector<1x4x100xf32> to vector<4x100xf32>
    %c14_648 = arith.constant 14 : index
    %c0_649 = arith.constant 0 : index
    %c0_650 = arith.constant 0 : index
    %642 = vector.load %arg5[%c14_648, %c0_649, %c0_650] : memref<36x4x4xf32, #tpu.memory_space<vmem>>, vector<1x4x4xf32>
    %643 = vector.shape_cast %642 : vector<1x4x4xf32> to vector<4x4xf32>
    %cst_651 = arith.constant dense<0.000000e+00> : vector<4x100xf32>
    %644 = tpu.matmul %643, %641, %cst_651 {dimension_numbers = #tpu.dot_dimension_numbers<[1], [0], [0], [1], [0, 0, 1, 1], [], []>} : vector<4x4xf32>, vector<4x100xf32>, vector<4x100xf32> -> vector<4x100xf32>
    %645 = arith.addf %639, %644 : vector<4x100xf32>
    %c1_652 = arith.constant 1 : index
    %c0_653 = arith.constant 0 : index
    %c11_654 = arith.constant 11 : index
    %646 = vector.load %arg15[%c1_652, %c0_653, %c11_654] : memref<4x4x122xf32, #tpu.memory_space<vmem>>, vector<1x4x100xf32>
    %647 = vector.shape_cast %646 : vector<1x4x100xf32> to vector<4x100xf32>
    %c15_655 = arith.constant 15 : index
    %c0_656 = arith.constant 0 : index
    %c0_657 = arith.constant 0 : index
    %648 = vector.load %arg5[%c15_655, %c0_656, %c0_657] : memref<36x4x4xf32, #tpu.memory_space<vmem>>, vector<1x4x4xf32>
    %649 = vector.shape_cast %648 : vector<1x4x4xf32> to vector<4x4xf32>
    %cst_658 = arith.constant dense<0.000000e+00> : vector<4x100xf32>
    %650 = tpu.matmul %649, %647, %cst_658 {dimension_numbers = #tpu.dot_dimension_numbers<[1], [0], [0], [1], [0, 0, 1, 1], [], []>} : vector<4x4xf32>, vector<4x100xf32>, vector<4x100xf32> -> vector<4x100xf32>
    %651 = arith.addf %645, %650 : vector<4x100xf32>
    %c0_659 = arith.constant 0 : index
    %c0_660 = arith.constant 0 : index
    %c12_661 = arith.constant 12 : index
    %652 = vector.load %arg15[%c0_659, %c0_660, %c12_661] : memref<4x4x122xf32, #tpu.memory_space<vmem>>, vector<1x4x100xf32>
    %653 = vector.shape_cast %652 : vector<1x4x100xf32> to vector<4x100xf32>
    %c16_662 = arith.constant 16 : index
    %c0_663 = arith.constant 0 : index
    %c0_664 = arith.constant 0 : index
    %654 = vector.load %arg5[%c16_662, %c0_663, %c0_664] : memref<36x4x4xf32, #tpu.memory_space<vmem>>, vector<1x4x4xf32>
    %655 = vector.shape_cast %654 : vector<1x4x4xf32> to vector<4x4xf32>
    %cst_665 = arith.constant dense<0.000000e+00> : vector<4x100xf32>
    %656 = tpu.matmul %655, %653, %cst_665 {dimension_numbers = #tpu.dot_dimension_numbers<[1], [0], [0], [1], [0, 0, 1, 1], [], []>} : vector<4x4xf32>, vector<4x100xf32>, vector<4x100xf32> -> vector<4x100xf32>
    %657 = arith.addf %651, %656 : vector<4x100xf32>
    %c1_666 = arith.constant 1 : index
    %c0_667 = arith.constant 0 : index
    %c12_668 = arith.constant 12 : index
    %658 = vector.load %arg15[%c1_666, %c0_667, %c12_668] : memref<4x4x122xf32, #tpu.memory_space<vmem>>, vector<1x4x100xf32>
    %659 = vector.shape_cast %658 : vector<1x4x100xf32> to vector<4x100xf32>
    %c17_669 = arith.constant 17 : index
    %c0_670 = arith.constant 0 : index
    %c0_671 = arith.constant 0 : index
    %660 = vector.load %arg5[%c17_669, %c0_670, %c0_671] : memref<36x4x4xf32, #tpu.memory_space<vmem>>, vector<1x4x4xf32>
    %661 = vector.shape_cast %660 : vector<1x4x4xf32> to vector<4x4xf32>
    %cst_672 = arith.constant dense<0.000000e+00> : vector<4x100xf32>
    %662 = tpu.matmul %661, %659, %cst_672 {dimension_numbers = #tpu.dot_dimension_numbers<[1], [0], [0], [1], [0, 0, 1, 1], [], []>} : vector<4x4xf32>, vector<4x100xf32>, vector<4x100xf32> -> vector<4x100xf32>
    %663 = arith.addf %657, %662 : vector<4x100xf32>
    %c2_673 = arith.constant 2 : index
    %c0_674 = arith.constant 0 : index
    %c10_675 = arith.constant 10 : index
    %664 = vector.load %arg15[%c2_673, %c0_674, %c10_675] : memref<4x4x122xf32, #tpu.memory_space<vmem>>, vector<1x4x100xf32>
    %665 = vector.shape_cast %664 : vector<1x4x100xf32> to vector<4x100xf32>
    %c18_676 = arith.constant 18 : index
    %c0_677 = arith.constant 0 : index
    %c0_678 = arith.constant 0 : index
    %666 = vector.load %arg5[%c18_676, %c0_677, %c0_678] : memref<36x4x4xf32, #tpu.memory_space<vmem>>, vector<1x4x4xf32>
    %667 = vector.shape_cast %666 : vector<1x4x4xf32> to vector<4x4xf32>
    %cst_679 = arith.constant dense<0.000000e+00> : vector<4x100xf32>
    %668 = tpu.matmul %667, %665, %cst_679 {dimension_numbers = #tpu.dot_dimension_numbers<[1], [0], [0], [1], [0, 0, 1, 1], [], []>} : vector<4x4xf32>, vector<4x100xf32>, vector<4x100xf32> -> vector<4x100xf32>
    %669 = arith.addf %663, %668 : vector<4x100xf32>
    %c3_680 = arith.constant 3 : index
    %c0_681 = arith.constant 0 : index
    %c10_682 = arith.constant 10 : index
    %670 = vector.load %arg15[%c3_680, %c0_681, %c10_682] : memref<4x4x122xf32, #tpu.memory_space<vmem>>, vector<1x4x100xf32>
    %671 = vector.shape_cast %670 : vector<1x4x100xf32> to vector<4x100xf32>
    %c19_683 = arith.constant 19 : index
    %c0_684 = arith.constant 0 : index
    %c0_685 = arith.constant 0 : index
    %672 = vector.load %arg5[%c19_683, %c0_684, %c0_685] : memref<36x4x4xf32, #tpu.memory_space<vmem>>, vector<1x4x4xf32>
    %673 = vector.shape_cast %672 : vector<1x4x4xf32> to vector<4x4xf32>
    %cst_686 = arith.constant dense<0.000000e+00> : vector<4x100xf32>
    %674 = tpu.matmul %673, %671, %cst_686 {dimension_numbers = #tpu.dot_dimension_numbers<[1], [0], [0], [1], [0, 0, 1, 1], [], []>} : vector<4x4xf32>, vector<4x100xf32>, vector<4x100xf32> -> vector<4x100xf32>
    %675 = arith.addf %669, %674 : vector<4x100xf32>
    %c2_687 = arith.constant 2 : index
    %c0_688 = arith.constant 0 : index
    %c11_689 = arith.constant 11 : index
    %676 = vector.load %arg15[%c2_687, %c0_688, %c11_689] : memref<4x4x122xf32, #tpu.memory_space<vmem>>, vector<1x4x100xf32>
    %677 = vector.shape_cast %676 : vector<1x4x100xf32> to vector<4x100xf32>
    %c20_690 = arith.constant 20 : index
    %c0_691 = arith.constant 0 : index
    %c0_692 = arith.constant 0 : index
    %678 = vector.load %arg5[%c20_690, %c0_691, %c0_692] : memref<36x4x4xf32, #tpu.memory_space<vmem>>, vector<1x4x4xf32>
    %679 = vector.shape_cast %678 : vector<1x4x4xf32> to vector<4x4xf32>
    %cst_693 = arith.constant dense<0.000000e+00> : vector<4x100xf32>
    %680 = tpu.matmul %679, %677, %cst_693 {dimension_numbers = #tpu.dot_dimension_numbers<[1], [0], [0], [1], [0, 0, 1, 1], [], []>} : vector<4x4xf32>, vector<4x100xf32>, vector<4x100xf32> -> vector<4x100xf32>
    %681 = arith.addf %675, %680 : vector<4x100xf32>
    %c3_694 = arith.constant 3 : index
    %c0_695 = arith.constant 0 : index
    %c11_696 = arith.constant 11 : index
    %682 = vector.load %arg15[%c3_694, %c0_695, %c11_696] : memref<4x4x122xf32, #tpu.memory_space<vmem>>, vector<1x4x100xf32>
    %683 = vector.shape_cast %682 : vector<1x4x100xf32> to vector<4x100xf32>
    %c21_697 = arith.constant 21 : index
    %c0_698 = arith.constant 0 : index
    %c0_699 = arith.constant 0 : index
    %684 = vector.load %arg5[%c21_697, %c0_698, %c0_699] : memref<36x4x4xf32, #tpu.memory_space<vmem>>, vector<1x4x4xf32>
    %685 = vector.shape_cast %684 : vector<1x4x4xf32> to vector<4x4xf32>
    %cst_700 = arith.constant dense<0.000000e+00> : vector<4x100xf32>
    %686 = tpu.matmul %685, %683, %cst_700 {dimension_numbers = #tpu.dot_dimension_numbers<[1], [0], [0], [1], [0, 0, 1, 1], [], []>} : vector<4x4xf32>, vector<4x100xf32>, vector<4x100xf32> -> vector<4x100xf32>
    %687 = arith.addf %681, %686 : vector<4x100xf32>
    %c2_701 = arith.constant 2 : index
    %c0_702 = arith.constant 0 : index
    %c12_703 = arith.constant 12 : index
    %688 = vector.load %arg15[%c2_701, %c0_702, %c12_703] : memref<4x4x122xf32, #tpu.memory_space<vmem>>, vector<1x4x100xf32>
    %689 = vector.shape_cast %688 : vector<1x4x100xf32> to vector<4x100xf32>
    %c22_704 = arith.constant 22 : index
    %c0_705 = arith.constant 0 : index
    %c0_706 = arith.constant 0 : index
    %690 = vector.load %arg5[%c22_704, %c0_705, %c0_706] : memref<36x4x4xf32, #tpu.memory_space<vmem>>, vector<1x4x4xf32>
    %691 = vector.shape_cast %690 : vector<1x4x4xf32> to vector<4x4xf32>
    %cst_707 = arith.constant dense<0.000000e+00> : vector<4x100xf32>
    %692 = tpu.matmul %691, %689, %cst_707 {dimension_numbers = #tpu.dot_dimension_numbers<[1], [0], [0], [1], [0, 0, 1, 1], [], []>} : vector<4x4xf32>, vector<4x100xf32>, vector<4x100xf32> -> vector<4x100xf32>
    %693 = arith.addf %687, %692 : vector<4x100xf32>
    %c3_708 = arith.constant 3 : index
    %c0_709 = arith.constant 0 : index
    %c12_710 = arith.constant 12 : index
    %694 = vector.load %arg15[%c3_708, %c0_709, %c12_710] : memref<4x4x122xf32, #tpu.memory_space<vmem>>, vector<1x4x100xf32>
    %695 = vector.shape_cast %694 : vector<1x4x100xf32> to vector<4x100xf32>
    %c23_711 = arith.constant 23 : index
    %c0_712 = arith.constant 0 : index
    %c0_713 = arith.constant 0 : index
    %696 = vector.load %arg5[%c23_711, %c0_712, %c0_713] : memref<36x4x4xf32, #tpu.memory_space<vmem>>, vector<1x4x4xf32>
    %697 = vector.shape_cast %696 : vector<1x4x4xf32> to vector<4x4xf32>
    %cst_714 = arith.constant dense<0.000000e+00> : vector<4x100xf32>
    %698 = tpu.matmul %697, %695, %cst_714 {dimension_numbers = #tpu.dot_dimension_numbers<[1], [0], [0], [1], [0, 0, 1, 1], [], []>} : vector<4x4xf32>, vector<4x100xf32>, vector<4x100xf32> -> vector<4x100xf32>
    %699 = arith.addf %693, %698 : vector<4x100xf32>
    %c0_715 = arith.constant 0 : index
    %c0_716 = arith.constant 0 : index
    %c20_717 = arith.constant 20 : index
    %700 = vector.load %arg15[%c0_715, %c0_716, %c20_717] : memref<4x4x122xf32, #tpu.memory_space<vmem>>, vector<1x4x100xf32>
    %701 = vector.shape_cast %700 : vector<1x4x100xf32> to vector<4x100xf32>
    %c24_718 = arith.constant 24 : index
    %c0_719 = arith.constant 0 : index
    %c0_720 = arith.constant 0 : index
    %702 = vector.load %arg5[%c24_718, %c0_719, %c0_720] : memref<36x4x4xf32, #tpu.memory_space<vmem>>, vector<1x4x4xf32>
    %703 = vector.shape_cast %702 : vector<1x4x4xf32> to vector<4x4xf32>
    %cst_721 = arith.constant dense<0.000000e+00> : vector<4x100xf32>
    %704 = tpu.matmul %703, %701, %cst_721 {dimension_numbers = #tpu.dot_dimension_numbers<[1], [0], [0], [1], [0, 0, 1, 1], [], []>} : vector<4x4xf32>, vector<4x100xf32>, vector<4x100xf32> -> vector<4x100xf32>
    %705 = arith.addf %699, %704 : vector<4x100xf32>
    %c1_722 = arith.constant 1 : index
    %c0_723 = arith.constant 0 : index
    %c20_724 = arith.constant 20 : index
    %706 = vector.load %arg15[%c1_722, %c0_723, %c20_724] : memref<4x4x122xf32, #tpu.memory_space<vmem>>, vector<1x4x100xf32>
    %707 = vector.shape_cast %706 : vector<1x4x100xf32> to vector<4x100xf32>
    %c25_725 = arith.constant 25 : index
    %c0_726 = arith.constant 0 : index
    %c0_727 = arith.constant 0 : index
    %708 = vector.load %arg5[%c25_725, %c0_726, %c0_727] : memref<36x4x4xf32, #tpu.memory_space<vmem>>, vector<1x4x4xf32>
    %709 = vector.shape_cast %708 : vector<1x4x4xf32> to vector<4x4xf32>
    %cst_728 = arith.constant dense<0.000000e+00> : vector<4x100xf32>
    %710 = tpu.matmul %709, %707, %cst_728 {dimension_numbers = #tpu.dot_dimension_numbers<[1], [0], [0], [1], [0, 0, 1, 1], [], []>} : vector<4x4xf32>, vector<4x100xf32>, vector<4x100xf32> -> vector<4x100xf32>
    %711 = arith.addf %705, %710 : vector<4x100xf32>
    %c0_729 = arith.constant 0 : index
    %c0_730 = arith.constant 0 : index
    %c21_731 = arith.constant 21 : index
    %712 = vector.load %arg15[%c0_729, %c0_730, %c21_731] : memref<4x4x122xf32, #tpu.memory_space<vmem>>, vector<1x4x100xf32>
    %713 = vector.shape_cast %712 : vector<1x4x100xf32> to vector<4x100xf32>
    %c26_732 = arith.constant 26 : index
    %c0_733 = arith.constant 0 : index
    %c0_734 = arith.constant 0 : index
    %714 = vector.load %arg5[%c26_732, %c0_733, %c0_734] : memref<36x4x4xf32, #tpu.memory_space<vmem>>, vector<1x4x4xf32>
    %715 = vector.shape_cast %714 : vector<1x4x4xf32> to vector<4x4xf32>
    %cst_735 = arith.constant dense<0.000000e+00> : vector<4x100xf32>
    %716 = tpu.matmul %715, %713, %cst_735 {dimension_numbers = #tpu.dot_dimension_numbers<[1], [0], [0], [1], [0, 0, 1, 1], [], []>} : vector<4x4xf32>, vector<4x100xf32>, vector<4x100xf32> -> vector<4x100xf32>
    %717 = arith.addf %711, %716 : vector<4x100xf32>
    %c1_736 = arith.constant 1 : index
    %c0_737 = arith.constant 0 : index
    %c21_738 = arith.constant 21 : index
    %718 = vector.load %arg15[%c1_736, %c0_737, %c21_738] : memref<4x4x122xf32, #tpu.memory_space<vmem>>, vector<1x4x100xf32>
    %719 = vector.shape_cast %718 : vector<1x4x100xf32> to vector<4x100xf32>
    %c27_739 = arith.constant 27 : index
    %c0_740 = arith.constant 0 : index
    %c0_741 = arith.constant 0 : index
    %720 = vector.load %arg5[%c27_739, %c0_740, %c0_741] : memref<36x4x4xf32, #tpu.memory_space<vmem>>, vector<1x4x4xf32>
    %721 = vector.shape_cast %720 : vector<1x4x4xf32> to vector<4x4xf32>
    %cst_742 = arith.constant dense<0.000000e+00> : vector<4x100xf32>
    %722 = tpu.matmul %721, %719, %cst_742 {dimension_numbers = #tpu.dot_dimension_numbers<[1], [0], [0], [1], [0, 0, 1, 1], [], []>} : vector<4x4xf32>, vector<4x100xf32>, vector<4x100xf32> -> vector<4x100xf32>
    %723 = arith.addf %717, %722 : vector<4x100xf32>
    %c0_743 = arith.constant 0 : index
    %c0_744 = arith.constant 0 : index
    %c22_745 = arith.constant 22 : index
    %724 = vector.load %arg15[%c0_743, %c0_744, %c22_745] : memref<4x4x122xf32, #tpu.memory_space<vmem>>, vector<1x4x100xf32>
    %725 = vector.shape_cast %724 : vector<1x4x100xf32> to vector<4x100xf32>
    %c28_746 = arith.constant 28 : index
    %c0_747 = arith.constant 0 : index
    %c0_748 = arith.constant 0 : index
    %726 = vector.load %arg5[%c28_746, %c0_747, %c0_748] : memref<36x4x4xf32, #tpu.memory_space<vmem>>, vector<1x4x4xf32>
    %727 = vector.shape_cast %726 : vector<1x4x4xf32> to vector<4x4xf32>
    %cst_749 = arith.constant dense<0.000000e+00> : vector<4x100xf32>
    %728 = tpu.matmul %727, %725, %cst_749 {dimension_numbers = #tpu.dot_dimension_numbers<[1], [0], [0], [1], [0, 0, 1, 1], [], []>} : vector<4x4xf32>, vector<4x100xf32>, vector<4x100xf32> -> vector<4x100xf32>
    %729 = arith.addf %723, %728 : vector<4x100xf32>
    %c1_750 = arith.constant 1 : index
    %c0_751 = arith.constant 0 : index
    %c22_752 = arith.constant 22 : index
    %730 = vector.load %arg15[%c1_750, %c0_751, %c22_752] : memref<4x4x122xf32, #tpu.memory_space<vmem>>, vector<1x4x100xf32>
    %731 = vector.shape_cast %730 : vector<1x4x100xf32> to vector<4x100xf32>
    %c29_753 = arith.constant 29 : index
    %c0_754 = arith.constant 0 : index
    %c0_755 = arith.constant 0 : index
    %732 = vector.load %arg5[%c29_753, %c0_754, %c0_755] : memref<36x4x4xf32, #tpu.memory_space<vmem>>, vector<1x4x4xf32>
    %733 = vector.shape_cast %732 : vector<1x4x4xf32> to vector<4x4xf32>
    %cst_756 = arith.constant dense<0.000000e+00> : vector<4x100xf32>
    %734 = tpu.matmul %733, %731, %cst_756 {dimension_numbers = #tpu.dot_dimension_numbers<[1], [0], [0], [1], [0, 0, 1, 1], [], []>} : vector<4x4xf32>, vector<4x100xf32>, vector<4x100xf32> -> vector<4x100xf32>
    %735 = arith.addf %729, %734 : vector<4x100xf32>
    %c2_757 = arith.constant 2 : index
    %c0_758 = arith.constant 0 : index
    %c20_759 = arith.constant 20 : index
    %736 = vector.load %arg15[%c2_757, %c0_758, %c20_759] : memref<4x4x122xf32, #tpu.memory_space<vmem>>, vector<1x4x100xf32>
    %737 = vector.shape_cast %736 : vector<1x4x100xf32> to vector<4x100xf32>
    %c30_760 = arith.constant 30 : index
    %c0_761 = arith.constant 0 : index
    %c0_762 = arith.constant 0 : index
    %738 = vector.load %arg5[%c30_760, %c0_761, %c0_762] : memref<36x4x4xf32, #tpu.memory_space<vmem>>, vector<1x4x4xf32>
    %739 = vector.shape_cast %738 : vector<1x4x4xf32> to vector<4x4xf32>
    %cst_763 = arith.constant dense<0.000000e+00> : vector<4x100xf32>
    %740 = tpu.matmul %739, %737, %cst_763 {dimension_numbers = #tpu.dot_dimension_numbers<[1], [0], [0], [1], [0, 0, 1, 1], [], []>} : vector<4x4xf32>, vector<4x100xf32>, vector<4x100xf32> -> vector<4x100xf32>
    %741 = arith.addf %735, %740 : vector<4x100xf32>
    %c3_764 = arith.constant 3 : index
    %c0_765 = arith.constant 0 : index
    %c20_766 = arith.constant 20 : index
    %742 = vector.load %arg15[%c3_764, %c0_765, %c20_766] : memref<4x4x122xf32, #tpu.memory_space<vmem>>, vector<1x4x100xf32>
    %743 = vector.shape_cast %742 : vector<1x4x100xf32> to vector<4x100xf32>
    %c31_767 = arith.constant 31 : index
    %c0_768 = arith.constant 0 : index
    %c0_769 = arith.constant 0 : index
    %744 = vector.load %arg5[%c31_767, %c0_768, %c0_769] : memref<36x4x4xf32, #tpu.memory_space<vmem>>, vector<1x4x4xf32>
    %745 = vector.shape_cast %744 : vector<1x4x4xf32> to vector<4x4xf32>
    %cst_770 = arith.constant dense<0.000000e+00> : vector<4x100xf32>
    %746 = tpu.matmul %745, %743, %cst_770 {dimension_numbers = #tpu.dot_dimension_numbers<[1], [0], [0], [1], [0, 0, 1, 1], [], []>} : vector<4x4xf32>, vector<4x100xf32>, vector<4x100xf32> -> vector<4x100xf32>
    %747 = arith.addf %741, %746 : vector<4x100xf32>
    %c2_771 = arith.constant 2 : index
    %c0_772 = arith.constant 0 : index
    %c21_773 = arith.constant 21 : index
    %748 = vector.load %arg15[%c2_771, %c0_772, %c21_773] : memref<4x4x122xf32, #tpu.memory_space<vmem>>, vector<1x4x100xf32>
    %749 = vector.shape_cast %748 : vector<1x4x100xf32> to vector<4x100xf32>
    %c32_774 = arith.constant 32 : index
    %c0_775 = arith.constant 0 : index
    %c0_776 = arith.constant 0 : index
    %750 = vector.load %arg5[%c32_774, %c0_775, %c0_776] : memref<36x4x4xf32, #tpu.memory_space<vmem>>, vector<1x4x4xf32>
    %751 = vector.shape_cast %750 : vector<1x4x4xf32> to vector<4x4xf32>
    %cst_777 = arith.constant dense<0.000000e+00> : vector<4x100xf32>
    %752 = tpu.matmul %751, %749, %cst_777 {dimension_numbers = #tpu.dot_dimension_numbers<[1], [0], [0], [1], [0, 0, 1, 1], [], []>} : vector<4x4xf32>, vector<4x100xf32>, vector<4x100xf32> -> vector<4x100xf32>
    %753 = arith.addf %747, %752 : vector<4x100xf32>
    %c3_778 = arith.constant 3 : index
    %c0_779 = arith.constant 0 : index
    %c21_780 = arith.constant 21 : index
    %754 = vector.load %arg15[%c3_778, %c0_779, %c21_780] : memref<4x4x122xf32, #tpu.memory_space<vmem>>, vector<1x4x100xf32>
    %755 = vector.shape_cast %754 : vector<1x4x100xf32> to vector<4x100xf32>
    %c33_781 = arith.constant 33 : index
    %c0_782 = arith.constant 0 : index
    %c0_783 = arith.constant 0 : index
    %756 = vector.load %arg5[%c33_781, %c0_782, %c0_783] : memref<36x4x4xf32, #tpu.memory_space<vmem>>, vector<1x4x4xf32>
    %757 = vector.shape_cast %756 : vector<1x4x4xf32> to vector<4x4xf32>
    %cst_784 = arith.constant dense<0.000000e+00> : vector<4x100xf32>
    %758 = tpu.matmul %757, %755, %cst_784 {dimension_numbers = #tpu.dot_dimension_numbers<[1], [0], [0], [1], [0, 0, 1, 1], [], []>} : vector<4x4xf32>, vector<4x100xf32>, vector<4x100xf32> -> vector<4x100xf32>
    %759 = arith.addf %753, %758 : vector<4x100xf32>
    %c2_785 = arith.constant 2 : index
    %c0_786 = arith.constant 0 : index
    %c22_787 = arith.constant 22 : index
    %760 = vector.load %arg15[%c2_785, %c0_786, %c22_787] : memref<4x4x122xf32, #tpu.memory_space<vmem>>, vector<1x4x100xf32>
    %761 = vector.shape_cast %760 : vector<1x4x100xf32> to vector<4x100xf32>
    %c34_788 = arith.constant 34 : index
    %c0_789 = arith.constant 0 : index
    %c0_790 = arith.constant 0 : index
    %762 = vector.load %arg5[%c34_788, %c0_789, %c0_790] : memref<36x4x4xf32, #tpu.memory_space<vmem>>, vector<1x4x4xf32>
    %763 = vector.shape_cast %762 : vector<1x4x4xf32> to vector<4x4xf32>
    %cst_791 = arith.constant dense<0.000000e+00> : vector<4x100xf32>
    %764 = tpu.matmul %763, %761, %cst_791 {dimension_numbers = #tpu.dot_dimension_numbers<[1], [0], [0], [1], [0, 0, 1, 1], [], []>} : vector<4x4xf32>, vector<4x100xf32>, vector<4x100xf32> -> vector<4x100xf32>
    %765 = arith.addf %759, %764 : vector<4x100xf32>
    %c3_792 = arith.constant 3 : index
    %c0_793 = arith.constant 0 : index
    %c22_794 = arith.constant 22 : index
    %766 = vector.load %arg15[%c3_792, %c0_793, %c22_794] : memref<4x4x122xf32, #tpu.memory_space<vmem>>, vector<1x4x100xf32>
    %767 = vector.shape_cast %766 : vector<1x4x100xf32> to vector<4x100xf32>
    %c35_795 = arith.constant 35 : index
    %c0_796 = arith.constant 0 : index
    %c0_797 = arith.constant 0 : index
    %768 = vector.load %arg5[%c35_795, %c0_796, %c0_797] : memref<36x4x4xf32, #tpu.memory_space<vmem>>, vector<1x4x4xf32>
    %769 = vector.shape_cast %768 : vector<1x4x4xf32> to vector<4x4xf32>
    %cst_798 = arith.constant dense<0.000000e+00> : vector<4x100xf32>
    %770 = tpu.matmul %769, %767, %cst_798 {dimension_numbers = #tpu.dot_dimension_numbers<[1], [0], [0], [1], [0, 0, 1, 1], [], []>} : vector<4x4xf32>, vector<4x100xf32>, vector<4x100xf32> -> vector<4x100xf32>
    %771 = arith.addf %765, %770 : vector<4x100xf32>
    %c0_799 = arith.constant 0 : index
    %c0_800 = arith.constant 0 : index
    %772 = vector.load %arg9[%c0_799, %c0_800] : memref<4x1xf32, #tpu.memory_space<vmem>>, vector<4x1xf32>
    %773 = vector.broadcast %772 : vector<4x1xf32> to vector<4x100xf32>
    %774 = arith.addf %771, %773 : vector<4x100xf32>
    %cst_801 = arith.constant 0.000000e+00 : f32
    %775 = vector.broadcast %cst_801 : f32 to vector<4x100xf32>
    %776 = arith.cmpf oge, %774, %775 : vector<4x100xf32>
    %777 = vector.broadcast %10 : f32 to vector<4x100xf32>
    %778 = arith.mulf %777, %774 : vector<4x100xf32>
    %779 = arith.select %776, %774, %778 : vector<4x100xi1>, vector<4x100xf32>
    %780 = arith.addf %779, %305 : vector<4x100xf32>
    %c0_802 = arith.constant 0 : index
    %c0_803 = arith.constant 0 : index
    %c0_804 = arith.constant 0 : index
    %781 = vector.load %arg12[%c0_802, %c0_803, %c0_804] : memref<1x4x100xf32, #tpu.memory_space<vmem>>, vector<1x4x100xf32>
    %782 = vector.shape_cast %781 : vector<1x4x100xf32> to vector<4x100xf32>
    %783 = vector.shape_cast %780 : vector<4x100xf32> to vector<1x4x100xf32>
    tpu.vector_store %arg12[%c0_802, %c0_803, %c0_804], %783 {strides = array<i32>} : memref<1x4x100xf32, #tpu.memory_space<vmem>>, vector<1x4x100xf32>,
    return
  }
  func.func @transform_0(%arg0: i32) -> (i32, i32, i32, i32) {
    %c0_i32 = arith.constant 0 : i32
    %c0_i32_0 = arith.constant 0 : i32
    %c0_i32_1 = arith.constant 0 : i32
    %c0_i32_2 = arith.constant 0 : i32
    return %arg0, %c0_i32, %c0_i32_0, %c0_i32_1 : i32, i32, i32, i32
  }
  func.func @transform_1(%arg0: i32) -> (i32, i32) {
    %c0_i32 = arith.constant 0 : i32
    %c0_i32_0 = arith.constant 0 : i32
    %c0_i32_1 = arith.constant 0 : i32
    return %c0_i32, %c0_i32_0 : i32, i32
  }
  func.func @transform_2(%arg0: i32) -> (i32, i32, i32) {
    %c0_i32 = arith.constant 0 : i32
    %c0_i32_0 = arith.constant 0 : i32
    %c0_i32_1 = arith.constant 0 : i32
    %c0_i32_2 = arith.constant 0 : i32
    return %c0_i32, %c0_i32_0, %c0_i32_1 : i32, i32, i32
  }
  func.func @transform_3(%arg0: i32) -> (i32, i32, i32) {
    %c0_i32 = arith.constant 0 : i32
    %c0_i32_0 = arith.constant 0 : i32
    %c0_i32_1 = arith.constant 0 : i32
    %c0_i32_2 = arith.constant 0 : i32
    return %c0_i32, %c0_i32_0, %c0_i32_1 : i32, i32, i32
  }
  func.func @transform_4(%arg0: i32) -> (i32, i32, i32) {
    %c0_i32 = arith.constant 0 : i32
    %c0_i32_0 = arith.constant 0 : i32
    %c0_i32_1 = arith.constant 0 : i32
    %c0_i32_2 = arith.constant 0 : i32
    return %c0_i32, %c0_i32_0, %c0_i32_1 : i32, i32, i32
  }
  func.func @transform_5(%arg0: i32) -> (i32, i32) {
    %c0_i32 = arith.constant 0 : i32
    %c0_i32_0 = arith.constant 0 : i32
    %c0_i32_1 = arith.constant 0 : i32
    return %c0_i32, %c0_i32_0 : i32, i32
  }
  func.func @transform_6(%arg0: i32) -> (i32, i32) {
    %c0_i32 = arith.constant 0 : i32
    %c0_i32_0 = arith.constant 0 : i32
    %c0_i32_1 = arith.constant 0 : i32
    return %c0_i32, %c0_i32_0 : i32, i32
  }
  func.func @transform_7(%arg0: i32) -> (i32, i32) {
    %c0_i32 = arith.constant 0 : i32
    %c0_i32_0 = arith.constant 0 : i32
    %c0_i32_1 = arith.constant 0 : i32
    return %c0_i32, %c0_i32_0 : i32, i32
  }
  func.func @transform_8(%arg0: i32) -> (i32, i32) {
    %c0_i32 = arith.constant 0 : i32
    %c0_i32_0 = arith.constant 0 : i32
    %c0_i32_1 = arith.constant 0 : i32
    return %c0_i32, %c0_i32_0 : i32, i32
  }
  func.func @transform_9(%arg0: i32) -> i32 {
    %c0_i32 = arith.constant 0 : i32
    %c0_i32_0 = arith.constant 0 : i32
    return %c0_i32 : i32
  }
  func.func @transform_10(%arg0: i32) -> (i32, i32) {
    %c0_i32 = arith.constant 0 : i32
    %c0_i32_0 = arith.constant 0 : i32
    %c0_i32_1 = arith.constant 0 : i32
    return %c0_i32, %c0_i32_0 : i32, i32
  }
  func.func @transform_11(%arg0: i32) -> (i32, i32, i32) {
    %c0_i32 = arith.constant 0 : i32
    %c0_i32_0 = arith.constant 0 : i32
    %c0_i32_1 = arith.constant 0 : i32
    return %arg0, %c0_i32, %c0_i32_0 : i32, i32, i32
  }
}

</mosaic_0001>

<bundles_post_ra>
// kernel: _lambda_.1
= control target key start
LH: loop header
LB: loop body
LE: loop exit
PB: predicated region body
PF: predicated region fallthrough
CT: control target
= control target key end

     0   :  { %16 = vsyncpa [#allocation6], 0  ;;  %s4479_s17 = smov 0   ;;  %s5276_s0 = inlined_call_operand.vmem [shape: f32[2,4,8,100], index: 0, kind: input, shape index: {}]   ;;  %s5277_s1 = inlined_call_operand.vmem [shape: f32[4,8], index: 1, kind: input, shape index: {}]   ;;  %s5278_s2 = inlined_call_operand.vmem [shape: f32[36,4,4], index: 2, kind: input, shape index: {}]   ;;  %s5279_s3 = inlined_call_operand.vmem [shape: f32[36,4,4], index: 3, kind: input, shape index: {}]   ;;  %s5280_s4 = inlined_call_operand.vmem [shape: f32[36,4,4], index: 4, kind: input, shape index: {}]   ;;  %s5281_s5 = inlined_call_operand.vmem [shape: f32[4,1], index: 5, kind: input, shape index: {}]   ;;  %s5282_s6 = inlined_call_operand.vmem [shape: f32[4,1], index: 6, kind: input, shape index: {}]   ;;  %s5283_s7 = inlined_call_operand.vmem [shape: f32[4,1], index: 7, kind: input, shape index: {}]   ;;  %s5284_s8 = inlined_call_operand.vmem [shape: f32[4,1], index: 8, kind: input, shape index: {}]   ;;  %s5285_s9 = inlined_call_operand.vmem [shape: f32[4], index: 9, kind: input, shape index: {}]   ;;  %s5286_s10 = inlined_call_operand.vmem [shape: f32[1,100], index: 10, kind: input, shape index: {}]   ;;  %s5287_s11 = inlined_call_operand.vmem [shape: f32[2,4,100], index: 11, kind: output, shape index: {}]  }
   0x1 LB: > { %s4001_s18 = sadd.s32 4294967295, %s4405_s17   ;;  %p4003_p0 = scmp.ge.s32.totalorder %s4405_s17, 1  ;;  %s4405_s17 = sphi %s4479_s17, %s22_s17  }
   0x2   : > { %p289_p1 = scmp.lt.s32.totalorder %s4405_s17, 3  ;;  %s325_s21 = sshll.u32 %s5285_s9, 4  ;;  %s326_s21 = int_to_ptr.vmem [resolvable:$true] %s325_s21 }
   0x3   : > { %p4353_p3 = scmp.eq.s32.totalorder %s4001_s18, 0  ;;  %s4407_s22 = smov [#allocation5]  }
   0x4   : > { %p290_p2 = pnand %p4003_p0, %p289_p1 }
   0x6   : > { %p4349_p4 = pneg %p290_p2  ;;  %349 = sbr.rel (%p290_p2) target bundleno = 1465 (0x5b9), region = 64 }
   0x8   : > { %p4350_p5 = pnand %p4353_p3, %p4349_p4 }
   0xa   : > { %4352 = dma.vmem_to_smem (!%p4350_p5), %s326_s21, 16, %s4407_s22, [#allocation6]  }
   0xb   : > { %4400 = dma.done.wait (%p4353_p3), [#allocation6], 16  }
   0xc   : > { %4402 = vsyncadd (%p4353_p3), [#allocation6], 4294967280 }
   0xd   : > { %356 = sfence }
   0xe   : > { %p390_p6 = scmp.lt.s32.totalorder %s4001_s18, 1  ;;  %v4408_v0 = vmov 0   ;;  %v416_v1 = vld [vmem:[%s5281_s5] sm:$0xf]  ;;  %vm422_vm0 = vcmask 64512   ;;  %vm399_vm1 = vcmask 994304  }
   0xf   : > { %4375 = vset.pattern.permute.xlu0 %v4408_v0  ;;  %4376 = vset.pattern.permute.xlu1 %v4408_v0  ;;  %v505_v2 = vld [vmem:[%s5281_s5] sm:$0xf]  ;;  %v4409_v13 = vmov 0.0   ;;  %s410_s26 = sld [smem:[#allocation5]]  ;;  %s4410_s29 = smov 11   ;;  %vm458_vm6 = vcmask 904280  }
  0x10   : > { %s5289_s18 = smov (!%p390_p6, %s4001_s18), 1  ;;  %419 = vperm.xlu0 %4375, %v416_v1   ;;  %508 = vperm.xlu1 %4376, %v505_v2   ;;  %v415_v3 = vld [vmem:[%s5277_s1] sm:$0xf]  ;;  %400 = vst.msk [vmem:[#allocation2] sm:$0xf] %vm399_vm1, %v4409_v13  ;;  %vm595_vm7 = vcmask 1043456  }
  0x11   : > { %s4344_s27 = sshll.u32 %s5289_s18, 5  ;;  %4377 = vset.pattern.permute.xlu2 %v4408_v0  ;;  %v462_v4 = vld [vmem:[%s5277_s1] sm:$0xf]  ;;  %401 = vst.msk [vmem:[#allocation2 + $0x4] sm:$0xf] %vm399_vm1, %v4409_v13  ;;  %s4412_s12 = smov 127  }
  0x12   : > { %s394_s30 = scalar_lea.vmem %s5276_s0, %s4344_s27  ;;  %v504_v9 = vld [vmem:[%s5277_s1] sm:$0xf]  ;;  %402 = vst.msk [vmem:[#allocation2 + $0x8] sm:$0xf] %vm399_vm1, %v4409_v13  ;;  %s4413_s13 = smov 117   ;;  %vm591_vm8 = vcmask 31744  }
  0x13   : > { %v414_v5 = vld [vmem:[%s394_s30] sm:$0xff]  ;;  %v4015_v6 = vld [vmem:[%s394_s30 + $0x8] sm:$0xff]  ;;  %v4017_v7 = vld [vmem:[%s394_s30 + $0x10] sm:$0xff]  ;;  %403 = vst.msk [vmem:[#allocation2 + $0xc] sm:$0xf] %vm399_vm1, %v4409_v13  ;;  %s4414_s14 = smov 118  }
  0x14   : > { %441 = vmatpush.msra.mxu0 %v414_v5  ;;  %487 = vmatpush.msra.mxu1 %v4015_v6  ;;  %v4019_v8 = vld [vmem:[%s394_s30 + $0x18] sm:$0xff]  ;;  %v546_v10 = vld [vmem:[%s5277_s1] sm:$0xf]  ;;  %404 = vst.msk [vmem:[#allocation3] sm:$0xf] %vm399_vm1, %v4409_v13  ;;  %s4411_s30 = smov 126  }
  0x15   : > { %529 = vmatpush.msra.mxu2 %v4017_v7  ;;  %571 = vmatpush.msra.mxu3 %v4019_v8  ;;  %v463_v11 = vld [vmem:[%s5281_s5] sm:$0xf]  ;;  %405 = vst.msk [vmem:[#allocation4] sm:$0xf] %vm399_vm1, %v4409_v13  ;;  %v447_v18 = vstv %s410_s26  ;;  %s4415_s15 = smov 116   ;;  %s4416_s16 = smov 107  }
  0x16   : > { %v547_v12 = vld [vmem:[%s5281_s5] sm:$0xf]  ;;  %4014 = vmatmul.msk.f32.vlgmr.msra.gmra.mxu0 %vm422_vm0, %v415_v3  ;;  %4016 = vmatmul.msk.f32.vlgmr.msra.gmra.mxu1 %vm422_vm0, %v462_v4  ;;  %406 = vst.msk [vmem:[#allocation4 + $0x4] sm:$0xf] %vm399_vm1, %v4409_v13  ;;  %s4417_s19 = smov 108   ;;  %s4418_s20 = smov 106  }
  0x17   : > { %4018 = vmatmul.msk.f32.vlgmr.msra.gmra.mxu2 %vm422_vm0, %v504_v9  ;;  %4020 = vmatmul.msk.f32.vlgmr.msra.gmra.mxu3 %vm422_vm0, %v546_v10  ;;  %407 = vst.msk [vmem:[#allocation4 + $0x8] sm:$0xf] %vm399_vm1, %v4409_v13  ;;  %v4523_v21 = vld [vmem:[%s5286_s10] ss:$0 sm:$0xff]  ;;  %v4021_v51 = vld [vmem:[%s5278_s2 + $0x4] sm:$0xf] }
  0x18   : > { %466 = vperm.xlu0 %4375, %v463_v11   ;;  %550 = vperm.xlu1 %4376, %v547_v12   ;;  %408 = vst.msk [vmem:[#allocation4 + $0xc] sm:$0xf] %vm399_vm1, %v4409_v13  ;;  %v1665_v48 = vld [vmem:[%s5282_s6] sm:$0xf]  ;;  %v4026_v52 = vld [vmem:[%s5278_s2 + $0x8] sm:$0xf] }
  0x19   : > { %v587_v53 = vld [vmem:[%s5278_s2] sm:$0xf]  ;;  %v4038_v55 = vld [vmem:[%s5278_s2 + $0x18] sm:$0xf]  ;;  %v4032_v56 = vld [vmem:[%s5278_s2 + $0x10] sm:$0xf] }
  0x1a   : > { %v4035_v58 = vld [vmem:[%s5278_s2 + $0x14] sm:$0xf]  ;;  %v4029_v60 = vld [vmem:[%s5278_s2 + $0xc] sm:$0xf]  ;;  %v4041_v0 = vld [vmem:[%s5278_s2 + $0x1c] sm:$0xf] }
  0x1b   : > { %v4053_v4 = vld [vmem:[%s5278_s2 + $0x2c] sm:$0xf]  ;;  %v4044_v7 = vld [vmem:[%s5278_s2 + $0x20] sm:$0xf]  ;;  %v4050_v10 = vld [vmem:[%s5278_s2 + $0x28] sm:$0xf] }
  0x1c   : > { %v4065_v11 = vld [vmem:[%s5278_s2 + $0x3c] sm:$0xf]  ;;  %v4047_v13 = vld [vmem:[%s5278_s2 + $0x24] sm:$0xf]  ;;  %s4011_s23 = sld [smem:[#allocation5 + $0x1]]  ;;  %s4010_s27 = sshll.u32 %s5289_s18, 2 }
  0x1d   : > { %s4012_s24 = sld [smem:[#allocation5 + $0x2]]  ;;  %s398_s22 = scalar_lea.vmem %s5287_s11, %s4010_s27  ;;  %vm3934_vm15 = vcmask 814080  }
  0x82   : > { %v420_v14 = vpop.permute.xlu0 %419  ;;  %v509_v15 = vpop.permute.xlu1 %508 }
  0x8a   : > { %v467_v16 = vpop.permute.xlu0 %466  ;;  %v551_v24 = vpop.permute.xlu1 %550 }
  0x93   : > { %v443_v17 = vpop.f32.mrf.mxu0  ;;  %v489_v19 = vpop.f32.mrf.mxu1 }
  0x94   : > { %v444_v20 = vadd.f32 %v443_v17, %v420_v14  ;;  %v490_v23 = vadd.f32 %v489_v19, %v467_v16  ;;  %v4056_v14 = vld [vmem:[%s5278_s2 + $0x30] sm:$0xf]  ;;  %v4062_v16 = vld [vmem:[%s5278_s2 + $0x38] sm:$0xf]  ;;  %v4077_v19 = vld [vmem:[%s5278_s2 + $0x4c] sm:$0xf] }
  0x96   : > { %v448_v22 = vmul.f32 %v447_v18, %v444_v20  ;;  %vm446_vm2 = vcmp.ge.f32.partialorder %v444_v20, 0.0  ;;  %v493_v27 = vmul.f32 %v490_v23, %v447_v18  ;;  %vm492_vm3 = vcmp.ge.f32.partialorder %v490_v23, 0.0 }
  0x98   : > { %v449_v25 = vsel %vm446_vm2, %v444_v20, %v448_v22  ;;  %v494_v34 = vsel %vm492_vm3, %v490_v23, %v493_v27  ;;  %v4059_v20 = vld [vmem:[%s5278_s2 + $0x34] sm:$0xf]  ;;  %v4074_v23 = vld [vmem:[%s5278_s2 + $0x48] sm:$0xf]  ;;  %v4071_v27 = vld [vmem:[%s5278_s2 + $0x44] sm:$0xf] }
  0x99   : > { %v453_v26 = vmul.f32 %v4523_v21, %v449_v25  ;;  %v495_v39 = vmul.f32 %v4523_v21, %v494_v34  ;;  %v4083_v34 = vld [vmem:[%s5278_s2 + $0x54] sm:$0xf] }
  0x9a   : > { %v531_v28 = vpop.f32.mrf.mxu2  ;;  %v573_v29 = vpop.f32.mrf.mxu3 }
  0x9b   : > { %v532_v30 = vadd.f32 %v531_v28, %v509_v15  ;;  %v574_v31 = vadd.f32 %v573_v29, %v551_v24  ;;  %455 = vrot.lane.b32.xlu2 %v453_v26, %s4410_s29  ;;  %v4068_v24 = vld [vmem:[%s5278_s2 + $0x40] sm:$0xf]  ;;  %v4086_v29 = vld [vmem:[%s5278_s2 + $0x58] sm:$0xf] }
  0x9d   : > { %vm534_vm4 = vcmp.ge.f32.partialorder %v532_v30, 0.0  ;;  %v535_v32 = vmul.f32 %v532_v30, %v447_v18  ;;  %vm576_vm5 = vcmp.ge.f32.partialorder %v574_v31, 0.0  ;;  %v577_v33 = vmul.f32 %v574_v31, %v447_v18 }
  0x9f   : > { %v578_v35 = vsel %vm576_vm5, %v574_v31, %v577_v33  ;;  %v536_v36 = vsel %vm534_vm4, %v532_v30, %v535_v32  ;;  %v4089_v30 = vld [vmem:[%s5278_s2 + $0x5c] sm:$0xf]  ;;  %v4080_v31 = vld [vmem:[%s5278_s2 + $0x50] sm:$0xf] }
  0xa0   : > { %v579_v37 = vmul.f32 %v4523_v21, %v578_v35  ;;  %v537_v38 = vmul.f32 %v4523_v21, %v536_v36  ;;  %v4098_v36 = vld [vmem:[%s5278_s2 + $0x68] sm:$0xf] }
  0xa2   : > { %581 = vrot.lane.b32.xlu1 %v579_v37, %s4410_s29  ;;  %539 = vrot.lane.b32.xlu0 %v537_v38, %s4410_s29  ;;  %v4092_v37 = vld [vmem:[%s5278_s2 + $0x60] sm:$0xf]  ;;  %v4101_v38 = vld [vmem:[%s5278_s2 + $0x6c] sm:$0xf] }
  0xa3   : > { %497 = vrot.lane.b32.xlu2 %v495_v39, %s4410_s29 }
  0xf5   : > { %v456_v40 = vpop.permute.xlu2 %455 }
  0xf6   : > { %459 = vst.msk [vmem:[#allocation2] sm:$0xf] %vm458_vm6, %v456_v40  ;;  %v4095_v40 = vld [vmem:[%s5278_s2 + $0x64] sm:$0xf] }
  0xfd   : > { %v498_v41 = vpop.permute.xlu2 %497  ;;  %v586_v42 = vld [vmem:[#allocation2] sm:$0xf] }
  0xfe   : > { %501 = vst.msk [vmem:[#allocation2 + $0x4] sm:$0xf] %vm458_vm6, %v498_v41  ;;  %707 = vrot.lane.b32.xlu1 %v586_v42, %s4411_s30  ;;  %647 = vrot.lane.b32.xlu2 %v586_v42, %s4412_s12 }
  0xff   : > { %4024 = vmatpush.msk.msrb.mxu1 %vm595_vm7, %v586_v42 }
 0x100   : > { %4025 = vmatmul.msk.f32.vlgmr.msrb.gmra.mxu1 %vm591_vm8, %v587_v53 }
 0x105   : > { %v588_v43 = vld [vmem:[#allocation2 + $0x4] sm:$0xf] }
 0x106   : > { %1007 = vrot.lane.b32.xlu1 %v586_v42, %s4413_s13  ;;  %737 = vrot.lane.b32.xlu2 %v588_v43, %s4411_s30 }
 0x107   : > { %677 = vrot.lane.b32.xlu0 %v588_v43, %s4412_s12  ;;  %4022 = vmatpush.msk.msrb.mxu0 %vm595_vm7, %v588_v43 }
 0x108   : > { %4023 = vmatmul.msk.f32.vlgmr.msrb.gmra.mxu0 %vm591_vm8, %v4021_v51  ;;  %v4125_v51 = vld [vmem:[%s5278_s2 + $0x8c] sm:$0xf] }
 0x10e   : > { %977 = vrot.lane.b32.xlu1 %v588_v43, %s4414_s14  ;;  %947 = vrot.lane.b32.xlu2 %v586_v42, %s4414_s14 }
 0x10f   : > { %1037 = vrot.lane.b32.xlu0 %v588_v43, %s4413_s13 }
 0x114   : > { %v582_v44 = vpop.permute.xlu1 %581  ;;  %v540_v45 = vpop.permute.xlu0 %539 }
 0x115   : > { %585 = vst.msk [vmem:[#allocation2 + $0xc] sm:$0xf] %vm458_vm6, %v582_v44  ;;  %v4104_v44 = vld [vmem:[%s5278_s2 + $0x70] sm:$0xf] }
 0x116   : > { %543 = vst.msk [vmem:[#allocation2 + $0x8] sm:$0xf] %vm458_vm6, %v540_v45  ;;  %1097 = vrot.lane.b32.xlu2 %v588_v43, %s4415_s15  ;;  %v4113_v45 = vld [vmem:[%s5278_s2 + $0x7c] sm:$0xf] }
 0x117   : > { %1067 = vrot.lane.b32.xlu0 %v586_v42, %s4415_s15 }
 0x11c   : > { %v795_v47 = vld [vmem:[#allocation2 + $0xc] sm:$0xf] }
 0x11d   : > { %v765_v46 = vld [vmem:[#allocation2 + $0x8] sm:$0xf] }
 0x11e   : > { %827 = vrot.lane.b32.xlu1 %v765_v46, %s4412_s12  ;;  %917 = vrot.lane.b32.xlu2 %v795_v47, %s4411_s30 }
 0x11f   : > { %887 = vrot.lane.b32.xlu0 %v765_v46, %s4411_s30 }
 0x126   : > { %1367 = vrot.lane.b32.xlu1 %v586_v42, %s4416_s16  ;;  %1127 = vrot.lane.b32.xlu2 %v765_v46, %s4414_s14 }
 0x127   : > { %857 = vrot.lane.b32.xlu0 %v795_v47, %s4412_s12 }
 0x12e   : > { %1157 = vrot.lane.b32.xlu1 %v795_v47, %s4414_s14  ;;  %1307 = vrot.lane.b32.xlu2 %v586_v42, %s4417_s19 }
 0x12f   : > { %1397 = vrot.lane.b32.xlu0 %v588_v43, %s4416_s16 }
 0x136   : > { %1187 = vrot.lane.b32.xlu1 %v765_v46, %s4413_s13  ;;  %1277 = vrot.lane.b32.xlu2 %v795_v47, %s4415_s15 }
 0x137   : > { %1247 = vrot.lane.b32.xlu0 %v765_v46, %s4415_s15 }
 0x13e   : > { %1337 = vrot.lane.b32.xlu1 %v588_v43, %s4417_s19  ;;  %1487 = vrot.lane.b32.xlu2 %v765_v46, %s4417_s19 }
 0x13f   : > { %1217 = vrot.lane.b32.xlu0 %v795_v47, %s4413_s13 }
 0x146   : > { %1517 = vrot.lane.b32.xlu1 %v795_v47, %s4417_s19  ;;  %1457 = vrot.lane.b32.xlu2 %v588_v43, %s4418_s20  ;;  %v4110_v43 = vld [vmem:[%s5278_s2 + $0x78] sm:$0xf] }
 0x147   : > { %1427 = vrot.lane.b32.xlu0 %v586_v42, %s4418_s20 }
 0x14e   : > { %1547 = vrot.lane.b32.xlu1 %v765_v46, %s4416_s16  ;;  %1637 = vrot.lane.b32.xlu2 %v795_v47, %s4418_s20 }
 0x14f   : > { %1607 = vrot.lane.b32.xlu0 %v765_v46, %s4418_s20 }
 0x156   : > { %1668 = vperm.xlu1 %4376, %v1665_v48  }
 0x157   : > { %1577 = vrot.lane.b32.xlu0 %v795_v47, %s4416_s16 }
 0x158   : > { %v648_v49 = vpop.permute.xlu2 %647 }
 0x159   : > { %4027 = vmatpush.msk.msrb.mxu2 %vm595_vm7, %v648_v49  ;;  %v4122_v49 = vld [vmem:[%s5278_s2 + $0x88] sm:$0xf] }
 0x15a   : > { %4028 = vmatmul.msk.f32.vlgmr.msrb.gmra.mxu2 %vm591_vm8, %v4026_v52  ;;  %v4119_v52 = vld [vmem:[%s5278_s2 + $0x84] sm:$0xf] }
 0x15b   : > { %4039 = vmatpush.msk.msra.mxu2 %vm595_vm7, %v765_v46 }
 0x160   : > { %v738_v50 = vpop.permute.xlu2 %737 }
 0x161   : > { %4036 = vmatpush.msk.msra.mxu1 %vm595_vm7, %v738_v50  ;;  %v4116_v50 = vld [vmem:[%s5278_s2 + $0x80] sm:$0xf] }
 0x162   : > { %4040 = vmatmul.msk.f32.vlgmr.msra.gmra.mxu2 %vm591_vm8, %v4038_v55  ;;  %4037 = vmatmul.msk.f32.vlgmr.msra.gmra.mxu1 %vm591_vm8, %v4035_v58 }
 0x168   : > { %v948_v54 = vpop.permute.xlu2 %947 }
 0x170   : > { %v708_v57 = vpop.permute.xlu1 %707  ;;  %v1098_v59 = vpop.permute.xlu2 %1097 }
 0x171   : > { %4033 = vmatpush.msk.msra.mxu0 %vm595_vm7, %v708_v57 }
 0x172   : > { %4034 = vmatmul.msk.f32.vlgmr.msra.gmra.mxu0 %vm591_vm8, %v4032_v56 }
 0x178   : > { %v918_v62 = vpop.permute.xlu2 %917  ;;  %v1008_v63 = vpop.permute.xlu1 %1007 }
 0x179   : > { %v678_v61 = vpop.permute.xlu0 %677 }
 0x17a   : > { %4030 = vmatpush.msk.msrb.mxu3 %vm595_vm7, %v678_v61 }
 0x17b   : > { %4031 = vmatmul.msk.f32.vlgmr.msrb.gmra.mxu3 %vm591_vm8, %v4029_v60 }
 0x17c   : > { %4042 = vmatpush.msk.msra.mxu3 %vm595_vm7, %v795_v47  ;;  %v4107_v47 = vld [vmem:[%s5278_s2 + $0x74] sm:$0xf] }
 0x17e   : > { %4054 = vmatpush.msk.msrb.mxu3 %vm595_vm7, %v918_v62 }
 0x180   : > { %v1128_v2 = vpop.permute.xlu2 %1127  ;;  %v978_v3 = vpop.permute.xlu1 %977 }
 0x181   : > { %v1038_v1 = vpop.permute.xlu0 %1037 }
 0x183   : > { %4043 = vmatmul.msk.f32.vlgmr.msra.gmra.mxu3 %vm591_vm8, %v4041_v0 }
 0x184   : > { %4066 = vmatpush.msk.msra.mxu3 %vm595_vm7, %v1038_v1 }
 0x185   : > { %v616_v55 = vpop.f32.mrf.mxu0 }
 0x188   : > { %v1308_v8 = vpop.permute.xlu2 %1307 }
 0x189   : > { %v1068_v5 = vpop.permute.xlu0 %1067 }
 0x18b   : > { %4055 = vmatmul.msk.f32.vlgmr.msrb.gmra.mxu3 %vm591_vm8, %v4053_v4 }
 0x190   : > { %v828_v6 = vpop.permute.xlu1 %827  ;;  %v1278_v17 = vpop.permute.xlu2 %1277 }
 0x191   : > { %4045 = vmatpush.msk.msrb.mxu0 %vm595_vm7, %v828_v6  ;;  %v888_v9 = vpop.permute.xlu0 %887 }
 0x192   : > { %4051 = vmatpush.msk.msrb.mxu2 %vm595_vm7, %v888_v9  ;;  %4046 = vmatmul.msk.f32.vlgmr.msrb.gmra.mxu0 %vm591_vm8, %v4044_v7 }
 0x193   : > { %4057 = vmatpush.msk.msra.mxu0 %vm595_vm7, %v948_v54  ;;  %4052 = vmatmul.msk.f32.vlgmr.msrb.gmra.mxu2 %vm591_vm8, %v4050_v10  ;;  %v642_v54 = vpop.f32.mrf.mxu1 }
 0x194   : > { %4063 = vmatpush.msk.msra.mxu2 %vm595_vm7, %v1008_v63  ;;  %4067 = vmatmul.msk.f32.vlgmr.msra.gmra.mxu3 %vm591_vm8, %v4065_v11  ;;  %v643_v56 = vadd.f32 %v642_v54, %v616_v55 }
 0x195   : > { %4069 = vmatpush.msk.msrb.mxu0 %vm595_vm7, %v1068_v5 }
 0x196   : > { %4075 = vmatpush.msk.msrb.mxu2 %vm595_vm7, %v1128_v2 }
 0x198   : > { %v1368_v12 = vpop.permute.xlu1 %1367  ;;  %v1488_v25 = vpop.permute.xlu2 %1487 }
 0x199   : > { %v858_v15 = vpop.permute.xlu0 %857 }
 0x19a   : > { %4048 = vmatpush.msk.msrb.mxu1 %vm595_vm7, %v858_v15  ;;  %4058 = vmatmul.msk.f32.vlgmr.msra.gmra.mxu0 %vm591_vm8, %v4056_v14 }
 0x19b   : > { %4049 = vmatmul.msk.f32.vlgmr.msrb.gmra.mxu1 %vm591_vm8, %v4047_v13  ;;  %4064 = vmatmul.msk.f32.vlgmr.msra.gmra.mxu2 %vm591_vm8, %v4062_v16 }
 0x19c   : > { %4060 = vmatpush.msk.msra.mxu1 %vm595_vm7, %v978_v3 }
 0x19e   : > { %4072 = vmatpush.msk.msrb.mxu1 %vm595_vm7, %v1098_v59 }
 0x1a0   : > { %v1158_v18 = vpop.permute.xlu1 %1157  ;;  %v1458_v32 = vpop.permute.xlu2 %1457 }
 0x1a1   : > { %4078 = vmatpush.msk.msrb.mxu3 %vm595_vm7, %v1158_v18  ;;  %v1398_v22 = vpop.permute.xlu0 %1397 }
 0x1a2   : > { %4079 = vmatmul.msk.f32.vlgmr.msrb.gmra.mxu3 %vm591_vm8, %v4077_v19  ;;  %4070 = vmatmul.msk.f32.vlgmr.msrb.gmra.mxu0 %vm591_vm8, %v4068_v24 }
 0x1a3   : > { %4090 = vmatpush.msk.msra.mxu3 %vm595_vm7, %v1278_v17  ;;  %4061 = vmatmul.msk.f32.vlgmr.msra.gmra.mxu1 %vm591_vm8, %v4059_v20 }
 0x1a4   : > { %4076 = vmatmul.msk.f32.vlgmr.msrb.gmra.mxu2 %vm591_vm8, %v4074_v23 }
 0x1a5   : > { %4102 = vmatpush.msk.msrb.mxu3 %vm595_vm7, %v1398_v22 }
 0x1a8   : > { %v1188_v26 = vpop.permute.xlu1 %1187  ;;  %v1638_v41 = vpop.permute.xlu2 %1637 }
 0x1a9   : > { %4081 = vmatpush.msk.msra.mxu0 %vm595_vm7, %v1188_v26  ;;  %v1248_v28 = vpop.permute.xlu0 %1247 }
 0x1aa   : > { %4087 = vmatpush.msk.msra.mxu2 %vm595_vm7, %v1248_v28  ;;  %4091 = vmatmul.msk.f32.vlgmr.msra.gmra.mxu3 %vm591_vm8, %v4089_v30 }
 0x1ab   : > { %4093 = vmatpush.msk.msrb.mxu0 %vm595_vm7, %v1308_v8  ;;  %4073 = vmatmul.msk.f32.vlgmr.msrb.gmra.mxu1 %vm591_vm8, %v4071_v27 }
 0x1ac   : > { %4099 = vmatpush.msk.msrb.mxu2 %vm595_vm7, %v1368_v12  ;;  %4082 = vmatmul.msk.f32.vlgmr.msra.gmra.mxu0 %vm591_vm8, %v4080_v31 }
 0x1ad   : > { %4088 = vmatmul.msk.f32.vlgmr.msra.gmra.mxu2 %vm591_vm8, %v4086_v29 }
 0x1ae   : > { %4111 = vmatpush.msk.msra.mxu2 %vm595_vm7, %v1488_v25 }
 0x1b0   : > { %v1338_v33 = vpop.permute.xlu1 %1337 }
 0x1b1   : > { %v1218_v35 = vpop.permute.xlu0 %1217 }
 0x1b2   : > { %4084 = vmatpush.msk.msra.mxu1 %vm595_vm7, %v1218_v35  ;;  %4103 = vmatmul.msk.f32.vlgmr.msrb.gmra.mxu3 %vm591_vm8, %v4101_v38 }
 0x1b3   : > { %4085 = vmatmul.msk.f32.vlgmr.msra.gmra.mxu1 %vm591_vm8, %v4083_v34 }
 0x1b4   : > { %4096 = vmatpush.msk.msrb.mxu1 %vm595_vm7, %v1338_v33  ;;  %4094 = vmatmul.msk.f32.vlgmr.msrb.gmra.mxu0 %vm591_vm8, %v4092_v37 }
 0x1b5   : > { %4100 = vmatmul.msk.f32.vlgmr.msrb.gmra.mxu2 %vm591_vm8, %v4098_v36 }
 0x1b6   : > { %4108 = vmatpush.msk.msra.mxu1 %vm595_vm7, %v1458_v32 }
 0x1b8   : > { %v1518_v39 = vpop.permute.xlu1 %1517 }
 0x1b9   : > { %4114 = vmatpush.msk.msra.mxu3 %vm595_vm7, %v1518_v39  ;;  %v1428_v42 = vpop.permute.xlu0 %1427 }
 0x1ba   : > { %4105 = vmatpush.msk.msra.mxu0 %vm595_vm7, %v1428_v42  ;;  %4115 = vmatmul.msk.f32.vlgmr.msra.gmra.mxu3 %vm591_vm8, %v4113_v45 }
 0x1bb   : > { %4126 = vmatpush.msk.msrb.mxu3 %vm595_vm7, %v1638_v41  ;;  %4097 = vmatmul.msk.f32.vlgmr.msrb.gmra.mxu1 %vm591_vm8, %v4095_v40 }
 0x1bc   : > { %4106 = vmatmul.msk.f32.vlgmr.msra.gmra.mxu0 %vm591_vm8, %v4104_v44 }
 0x1bd   : > { %4112 = vmatmul.msk.f32.vlgmr.msra.gmra.mxu2 %vm591_vm8, %v4110_v43 }
 0x1c0   : > { %v1548_v46 = vpop.permute.xlu1 %1547 }
 0x1c1   : > { %4117 = vmatpush.msk.msrb.mxu0 %vm595_vm7, %v1548_v46  ;;  %v1608_v48 = vpop.permute.xlu0 %1607 }
 0x1c2   : > { %4123 = vmatpush.msk.msrb.mxu2 %vm595_vm7, %v1608_v48  ;;  %4127 = vmatmul.msk.f32.vlgmr.msrb.gmra.mxu3 %vm591_vm8, %v4125_v51 }
 0x1c3   : > { %4109 = vmatmul.msk.f32.vlgmr.msra.gmra.mxu1 %vm591_vm8, %v4107_v47 }
 0x1c4   : > { %4118 = vmatmul.msk.f32.vlgmr.msrb.gmra.mxu0 %vm591_vm8, %v4116_v50 }
 0x1c5   : > { %4124 = vmatmul.msk.f32.vlgmr.msrb.gmra.mxu2 %vm591_vm8, %v4122_v49 }
 0x1c9   : > { %v1578_v53 = vpop.permute.xlu0 %1577 }
 0x1ca   : > { %4120 = vmatpush.msk.msrb.mxu1 %vm595_vm7, %v1578_v53 }
 0x1cb   : > { %4121 = vmatmul.msk.f32.vlgmr.msrb.gmra.mxu1 %vm591_vm8, %v4119_v52 }
 0x1dd   : > { %v671_v57 = vpop.f32.mrf.mxu2 }
 0x1de   : > { %v674_v58 = vadd.f32 %v671_v57, %v643_v56 }
 0x1df   : > { %v761_v63 = vpop.f32.mrf.mxu1 }
 0x1e5   : > { %v791_v2 = vpop.f32.mrf.mxu2 }
 0x1ef   : > { %v731_v61 = vpop.f32.mrf.mxu0 }
 0x1fe   : > { %v701_v59 = vpop.f32.mrf.mxu3 }
 0x1ff   : > { %v704_v60 = vadd.f32 %v701_v59, %v674_v58 }
 0x201   : > { %v734_v62 = vadd.f32 %v731_v61, %v704_v60 }
 0x203   : > { %v764_v1 = vadd.f32 %v761_v63, %v734_v62  ;;  %v1669_v62 = vpop.permute.xlu1 %1668  ;;  %v1673_v63 = vstv %s4011_s23 }
 0x205   : > { %v794_v3 = vadd.f32 %v791_v2, %v764_v1 }
 0x206   : > { %v821_v0 = vpop.f32.mrf.mxu3 }
 0x207   : > { %v824_v6 = vadd.f32 %v821_v0, %v794_v3 }
 0x20e   : > { %v941_v5 = vpop.f32.mrf.mxu3 }
 0x20f   : > { %v851_v4 = vpop.f32.mrf.mxu0 }
 0x210   : > { %v854_v7 = vadd.f32 %v851_v4, %v824_v6 }
 0x216   : > { %v911_v8 = vpop.f32.mrf.mxu2 }
 0x217   : > { %v971_v10 = vpop.f32.mrf.mxu0  ;;  %v1061_v13 = vpop.f32.mrf.mxu3 }
 0x218   : > { %v881_v9 = vpop.f32.mrf.mxu1 }
 0x219   : > { %v884_v11 = vadd.f32 %v881_v9, %v854_v7  ;;  %v2240_v9 = vld [vmem:[%s5283_s7] sm:$0xf] }
 0x21b   : > { %v914_v12 = vadd.f32 %v911_v8, %v884_v11  ;;  %v1949_v8 = vld [vmem:[%s5283_s7] sm:$0xf] }
 0x21c   : > { %v1960_v11 = vld [vmem:[#allocation2] sm:$0xf] }
 0x21d   : > { %v944_v14 = vadd.f32 %v941_v5, %v914_v12 }
 0x21e   : > { %v1031_v16 = vpop.f32.mrf.mxu2 }
 0x21f   : > { %v974_v15 = vadd.f32 %v971_v10, %v944_v14  ;;  %v1091_v19 = vpop.f32.mrf.mxu0  ;;  %v2250_v10 = vld [vmem:[#allocation2 + $0x4] sm:$0xf]  ;;  %v2822_v14 = vld [vmem:[%s5283_s7] sm:$0xf] }
 0x220   : > { %v1001_v17 = vpop.f32.mrf.mxu1 }
 0x221   : > { %v1004_v18 = vadd.f32 %v1001_v17, %v974_v15  ;;  %v2531_v15 = vld [vmem:[%s5283_s7] sm:$0xf] }
 0x223   : > { %v1034_v20 = vadd.f32 %v1031_v16, %v1004_v18  ;;  %v2541_v16 = vld [vmem:[#allocation2 + $0x8] sm:$0xf]  ;;  %v2832_v18 = vld [vmem:[#allocation2 + $0xc] sm:$0xf] }
 0x225   : > { %v1064_v22 = vadd.f32 %v1061_v13, %v1034_v20  ;;  %v1181_v23 = vpop.f32.mrf.mxu3  ;;  %v4136_v13 = vld [vmem:[%s5279_s3 + $0x30] sm:$0xf] }
 0x227   : > { %v1094_v24 = vadd.f32 %v1091_v19, %v1064_v22  ;;  %v1151_v25 = vpop.f32.mrf.mxu2  ;;  %v4128_v22 = vld [vmem:[%s5279_s3 + $0x8] sm:$0xf] }
 0x228   : > { %v1121_v26 = vpop.f32.mrf.mxu1 }
 0x229   : > { %v1124_v27 = vadd.f32 %v1121_v26, %v1094_v24  ;;  %v1211_v28 = vpop.f32.mrf.mxu0 }
 0x22b   : > { %v1154_v29 = vadd.f32 %v1151_v25, %v1124_v27  ;;  %v1683_v27 = vld [vmem:[%s5279_s3] sm:$0xf] }
 0x22d   : > { %v1184_v30 = vadd.f32 %v1181_v23, %v1154_v29  ;;  %v1301_v33 = vpop.f32.mrf.mxu3  ;;  %v4133_v23 = vld [vmem:[%s5279_s3 + $0x10] sm:$0xf] }
 0x22f   : > { %v1214_v31 = vadd.f32 %v1211_v28, %v1184_v30  ;;  %v4145_v28 = vld [vmem:[%s5279_s3 + $0x60] sm:$0xf]  ;;  %v4139_v30 = vld [vmem:[%s5279_s3 + $0x38] sm:$0xf] }
 0x230   : > { %v1271_v32 = vpop.f32.mrf.mxu2  ;;  %v1241_v34 = vpop.f32.mrf.mxu1 }
 0x231   : > { %v1244_v35 = vadd.f32 %v1241_v34, %v1214_v31  ;;  %v1331_v36 = vpop.f32.mrf.mxu0  ;;  %v4142_v34 = vld [vmem:[%s5279_s3 + $0x40] sm:$0xf] }
 0x233   : > { %v1274_v37 = vadd.f32 %v1271_v32, %v1244_v35 }
 0x235   : > { %v1304_v38 = vadd.f32 %v1301_v33, %v1274_v37  ;;  %v1421_v43 = vpop.f32.mrf.mxu3  ;;  %v4148_v33 = vld [vmem:[%s5279_s3 + $0x68] sm:$0xf]  ;;  %v4151_v37 = vld [vmem:[%s5279_s3 + $0x70] sm:$0xf] }
 0x237   : > { %v1334_v39 = vadd.f32 %v1331_v36, %v1304_v38  ;;  %v4154_v36 = vld [vmem:[%s5279_s3 + $0x4] sm:$0xf] }
 0x238   : > { %v1391_v40 = vpop.f32.mrf.mxu2  ;;  %v1361_v41 = vpop.f32.mrf.mxu1 }
 0x239   : > { %v1364_v42 = vadd.f32 %v1361_v41, %v1334_v39  ;;  %v1451_v44 = vpop.f32.mrf.mxu0  ;;  %v4155_v41 = vld [vmem:[%s5279_s3 + $0xc] sm:$0xf] }
 0x23b   : > { %v1394_v45 = vadd.f32 %v1391_v40, %v1364_v42  ;;  %v4160_v40 = vld [vmem:[%s5279_s3 + $0x14] sm:$0xf] }
 0x23d   : > { %v1424_v46 = vadd.f32 %v1421_v43, %v1394_v45  ;;  %v1541_v51 = vpop.f32.mrf.mxu3  ;;  %v4169_v43 = vld [vmem:[%s5279_s3 + $0x44] sm:$0xf]  ;;  %v4163_v45 = vld [vmem:[%s5279_s3 + $0x34] sm:$0xf] }
 0x23f   : > { %v1454_v47 = vadd.f32 %v1451_v44, %v1424_v46  ;;  %v4172_v46 = vld [vmem:[%s5279_s3 + $0x64] sm:$0xf] }
 0x240   : > { %v1511_v48 = vpop.f32.mrf.mxu2  ;;  %v1481_v49 = vpop.f32.mrf.mxu1 }
 0x241   : > { %v1484_v50 = vadd.f32 %v1481_v49, %v1454_v47  ;;  %v1571_v53 = vpop.f32.mrf.mxu0  ;;  %v4166_v49 = vld [vmem:[%s5279_s3 + $0x3c] sm:$0xf] }
 0x243   : > { %v1514_v52 = vadd.f32 %v1511_v48, %v1484_v50 }
 0x245   : > { %v1544_v54 = vadd.f32 %v1541_v51, %v1514_v52  ;;  %v1661_v59 = vpop.f32.mrf.mxu3  ;;  %v4175_v51 = vld [vmem:[%s5279_s3 + $0x6c] sm:$0xf]  ;;  %v4181_v52 = vld [vmem:[%s5279_s3 + $0x18] sm:$0xf] }
 0x247   : > { %v1574_v55 = vadd.f32 %v1571_v53, %v1544_v54  ;;  %v4178_v54 = vld [vmem:[%s5279_s3 + $0x74] sm:$0xf] }
 0x248   : > { %v1601_v56 = vpop.f32.mrf.mxu1  ;;  %v1631_v57 = vpop.f32.mrf.mxu2 }
 0x249   : > { %v1604_v58 = vadd.f32 %v1601_v56, %v1574_v55  ;;  %v4182_v55 = vld [vmem:[%s5279_s3 + $0x20] sm:$0xf] }
 0x24b   : > { %v1634_v60 = vadd.f32 %v1631_v57, %v1604_v58  ;;  %v4187_v58 = vld [vmem:[%s5279_s3 + $0x28] sm:$0xf] }
 0x24d   : > { %v1664_v61 = vadd.f32 %v1661_v59, %v1634_v60  ;;  %v4196_v60 = vld [vmem:[%s5279_s3 + $0x58] sm:$0xf] }
 0x24f   : > { %v1671_v0 = vadd.f32 %v1669_v62, %v1664_v61  ;;  %v4193_v61 = vld [vmem:[%s5279_s3 + $0x50] sm:$0xf] }
 0x251   : > { %vm1672_vm9 = vcmp.ge.f32.partialorder %v1671_v0, 0.0  ;;  %v1674_v1 = vmul.f32 %v1673_v63, %v1671_v0 }
 0x253   : > { %v1675_v2 = vsel %vm1672_vm9, %v1671_v0, %v1674_v1  ;;  %v4190_v0 = vld [vmem:[%s5279_s3 + $0x48] sm:$0xf]  ;;  %v4199_v1 = vld [vmem:[%s5279_s3 + $0x78] sm:$0xf] }
 0x254   : > { %v4753_v3 = vmul.f32 %v4523_v21, %v1675_v2 }
 0x256   : > { %1678 = vrot.lane.b32.xlu2 %v4753_v3, %s4410_s29 }
 0x2b0   : > { %v1679_v4 = vpop.permute.xlu2 %1678 }
 0x2b1   : > { %1681 = vst.msk [vmem:[#allocation3] sm:$0xf] %vm458_vm6, %v1679_v4  ;;  %v4209_v4 = vld [vmem:[%s5279_s3 + $0x24] sm:$0xf] }
 0x2b8   : > { %v4758_v5 = vld [vmem:[#allocation3] sm:$0xf] }
 0x2b9   : > { %1773 = vrot.lane.b32.xlu2 %v4758_v5, %s4415_s15  ;;  %1687 = vrot.lane.b32.xlu1 %v4758_v5, %s4416_s16  ;;  %v4772_v21 = vld [vmem:[#allocation3] sm:$0xf] }
 0x2ba   : > { %1743 = vrot.lane.b32.xlu0 %v4758_v5, %s4417_s19  ;;  %v4792_v6 = vld [vmem:[#allocation3] sm:$0xf] }
 0x2bb   : > { %v4806_v7 = vld [vmem:[#allocation3] sm:$0xf] }
 0x2c1   : > { %1803 = vrot.lane.b32.xlu2 %v4758_v5, %s4413_s13  ;;  %1863 = vrot.lane.b32.xlu1 %v4758_v5, %s4411_s30 }
 0x2c2   : > { %1714 = vrot.lane.b32.xlu0 %v4758_v5, %s4418_s20 }
 0x2c9   : > { %2005 = vrot.lane.b32.xlu2 %v4772_v21, %s4418_s20  ;;  %1833 = vrot.lane.b32.xlu1 %v4758_v5, %s4414_s14 }
 0x2ca   : > { %1893 = vrot.lane.b32.xlu0 %v4758_v5, %s4412_s12 }
 0x2d1   : > { %2124 = vrot.lane.b32.xlu2 %v4772_v21, %s4414_s14  ;;  %1978 = vrot.lane.b32.xlu1 %v4772_v21, %s4416_s16 }
 0x2d2   : > { %2034 = vrot.lane.b32.xlu0 %v4772_v21, %s4417_s19 }
 0x2d9   : > { %2094 = vrot.lane.b32.xlu2 %v4772_v21, %s4413_s13  ;;  %2154 = vrot.lane.b32.xlu1 %v4772_v21, %s4411_s30 }
 0x2da   : > { %2064 = vrot.lane.b32.xlu0 %v4772_v21, %s4415_s15 }
 0x2e1   : > { %2296 = vrot.lane.b32.xlu2 %v4792_v6, %s4418_s20  ;;  %2184 = vrot.lane.b32.xlu1 %v4772_v21, %s4412_s12 }
 0x2e2   : > { %2269 = vrot.lane.b32.xlu0 %v4792_v6, %s4416_s16 }
 0x2e9   : > { %2415 = vrot.lane.b32.xlu2 %v4792_v6, %s4414_s14  ;;  %2325 = vrot.lane.b32.xlu1 %v4792_v6, %s4417_s19 }
 0x2ea   : > { %2385 = vrot.lane.b32.xlu0 %v4792_v6, %s4413_s13 }
 0x2f1   : > { %2560 = vrot.lane.b32.xlu2 %v4806_v7, %s4416_s16  ;;  %2445 = vrot.lane.b32.xlu1 %v4792_v6, %s4411_s30 }
 0x2f2   : > { %2355 = vrot.lane.b32.xlu0 %v4792_v6, %s4415_s15 }
 0x2f9   : > { %2587 = vrot.lane.b32.xlu2 %v4806_v7, %s4418_s20  ;;  %2646 = vrot.lane.b32.xlu1 %v4806_v7, %s4415_s15 }
 0x2fa   : > { %2475 = vrot.lane.b32.xlu0 %v4792_v6, %s4412_s12 }
 0x301   : > { %2766 = vrot.lane.b32.xlu2 %v4806_v7, %s4412_s12  ;;  %2616 = vrot.lane.b32.xlu1 %v4806_v7, %s4417_s19 }
 0x302   : > { %2676 = vrot.lane.b32.xlu0 %v4806_v7, %s4413_s13 }
 0x309   : > { %1952 = vperm.xlu2 %4377, %v1949_v8   ;;  %2736 = vrot.lane.b32.xlu1 %v4806_v7, %s4411_s30  ;;  %v4208_v8 = vld [vmem:[%s5279_s3 + $0x1c] sm:$0xf] }
 0x30a   : > { %2706 = vrot.lane.b32.xlu0 %v4806_v7, %s4414_s14 }
 0x311   : > { %2252 = vrot.lane.b32.xlu2 %v2250_v10, %s4413_s13  ;;  %1962 = vrot.lane.b32.xlu1 %v1960_v11, %s4413_s13  ;;  %v4217_v11 = vld [vmem:[%s5279_s3 + $0x4c] sm:$0xf] }
 0x312   : > { %2243 = vperm.xlu0 %4375, %v2240_v9  }
 0x313   : > { %v1774_v12 = vpop.permute.xlu2 %1773 }
 0x314   : > { %4137 = vmatpush.msk.msra.mxu3 %vm595_vm7, %v1774_v12 }
 0x315   : > { %4138 = vmatmul.msk.f32.vlgmr.msra.gmra.mxu3 %vm591_vm8, %v4136_v13  ;;  %v4214_v13 = vld [vmem:[%s5279_s3 + $0x2c] sm:$0xf] }
 0x319   : > { %2543 = vrot.lane.b32.xlu2 %v2541_v16, %s4413_s13  ;;  %2825 = vperm.xlu1 %4376, %v2822_v14   ;;  %v4220_v14 = vld [vmem:[%s5279_s3 + $0x54] sm:$0xf]  ;;  %v4229_v16 = vld [vmem:[%s5279_s3 + $0x84] sm:$0xf] }
 0x31a   : > { %2534 = vperm.xlu0 %4375, %v2531_v15  }
 0x31b   : > { %v1804_v17 = vpop.permute.xlu2 %1803 }
 0x322   : > { %2834 = vrot.lane.b32.xlu0 %v2832_v18, %s4413_s13  ;;  %v4223_v18 = vld [vmem:[%s5279_s3 + $0x5c] sm:$0xf] }
 0x323   : > { %v2006_v19 = vpop.permute.xlu2 %2005 }
 0x32b   : > { %v1688_v20 = vpop.permute.xlu1 %1687  ;;  %v2125_v25 = vpop.permute.xlu2 %2124 }
 0x32c   : > { %v1744_v24 = vpop.permute.xlu0 %1743  ;;  %4129 = vmatpush.msk.msra.mxu0 %vm595_vm7, %v1688_v20 }
 0x32d   : > { %4134 = vmatpush.msk.msra.mxu2 %vm595_vm7, %v1744_v24  ;;  %4130 = vmatmul.msk.f32.vlgmr.msra.gmra.mxu0 %vm591_vm8, %v4128_v22  ;;  %v4226_v22 = vld [vmem:[%s5279_s3 + $0x7c] sm:$0xf] }
 0x32e   : > { %4140 = vmatpush.msk.msrb.mxu0 %vm595_vm7, %v1804_v17  ;;  %4135 = vmatmul.msk.f32.vlgmr.msra.gmra.mxu2 %vm591_vm8, %v4133_v23 }
 0x330   : > { %4152 = vmatpush.msk.msra.mxu0 %vm595_vm7, %v4758_v5  ;;  %v4205_v5 = vld [vmem:[%s5279_s3 + $0x88] sm:$0xf] }
 0x333   : > { %v1864_v26 = vpop.permute.xlu1 %1863  ;;  %v2095_v31 = vpop.permute.xlu2 %2094 }
 0x334   : > { %v1715_v29 = vpop.permute.xlu0 %1714  ;;  %4146 = vmatpush.msk.msrb.mxu2 %vm595_vm7, %v1864_v26 }
 0x335   : > { %4131 = vmatpush.msk.msra.mxu1 %vm595_vm7, %v1715_v29  ;;  %4141 = vmatmul.msk.f32.vlgmr.msrb.gmra.mxu0 %vm591_vm8, %v4139_v30 }
 0x336   : > { %4158 = vmatpush.msk.msra.mxu2 %vm595_vm7, %v2006_v19  ;;  %4132 = vmatmul.msk.f32.vlgmr.msra.gmra.mxu1 %vm591_vm8, %v1683_v27  ;;  %v4232_v19 = vld [vmem:[%s5279_s3 + $0x8c] sm:$0xf] }
 0x337   : > { %4147 = vmatmul.msk.f32.vlgmr.msrb.gmra.mxu2 %vm591_vm8, %v4145_v28 }
 0x338   : > { %4170 = vmatpush.msk.msrb.mxu2 %vm595_vm7, %v2125_v25 }
 0x33b   : > { %v1834_v32 = vpop.permute.xlu1 %1833  ;;  %v2297_v38 = vpop.permute.xlu2 %2296 }
 0x33c   : > { %v1894_v35 = vpop.permute.xlu0 %1893  ;;  %4143 = vmatpush.msk.msrb.mxu1 %vm595_vm7, %v1834_v32 }
 0x33d   : > { %4149 = vmatpush.msk.msrb.mxu3 %vm595_vm7, %v1894_v35  ;;  %4153 = vmatmul.msk.f32.vlgmr.msra.gmra.mxu0 %vm591_vm8, %v4151_v37 }
 0x33e   : > { %4150 = vmatmul.msk.f32.vlgmr.msrb.gmra.mxu3 %vm591_vm8, %v4148_v33  ;;  %4144 = vmatmul.msk.f32.vlgmr.msrb.gmra.mxu1 %vm591_vm8, %v4142_v34 }
 0x33f   : > { %4159 = vmatmul.msk.f32.vlgmr.msra.gmra.mxu2 %vm591_vm8, %v4154_v36 }
 0x343   : > { %v1979_v39 = vpop.permute.xlu1 %1978  ;;  %v2416_v47 = vpop.permute.xlu2 %2415 }
 0x344   : > { %v2035_v42 = vpop.permute.xlu0 %2034  ;;  %4156 = vmatpush.msk.msra.mxu1 %vm595_vm7, %v1979_v39 }
 0x345   : > { %4161 = vmatpush.msk.msra.mxu3 %vm595_vm7, %v2035_v42  ;;  %v5030_v42 = vstv %s4012_s24 }
 0x346   : > { %4167 = vmatpush.msk.msrb.mxu1 %vm595_vm7, %v2095_v31  ;;  %4162 = vmatmul.msk.f32.vlgmr.msra.gmra.mxu3 %vm591_vm8, %v4160_v40 }
 0x347   : > { %4157 = vmatmul.msk.f32.vlgmr.msra.gmra.mxu1 %vm591_vm8, %v4155_v41  ;;  %4171 = vmatmul.msk.f32.vlgmr.msrb.gmra.mxu2 %vm591_vm8, %v4169_v43 }
 0x348   : > { %4179 = vmatpush.msk.msra.mxu1 %vm595_vm7, %v4772_v21 }
 0x34b   : > { %v2155_v44 = vpop.permute.xlu1 %2154  ;;  %v2561_v56 = vpop.permute.xlu2 %2560 }
 0x34c   : > { %v2065_v48 = vpop.permute.xlu0 %2064  ;;  %4173 = vmatpush.msk.msrb.mxu3 %vm595_vm7, %v2155_v44 }
 0x34d   : > { %4164 = vmatpush.msk.msrb.mxu0 %vm595_vm7, %v2065_v48 }
 0x34e   : > { %4185 = vmatpush.msk.msra.mxu3 %vm595_vm7, %v2297_v38  ;;  %4165 = vmatmul.msk.f32.vlgmr.msrb.gmra.mxu0 %vm591_vm8, %v4163_v45 }
 0x34f   : > { %4174 = vmatmul.msk.f32.vlgmr.msrb.gmra.mxu3 %vm591_vm8, %v4172_v46  ;;  %4168 = vmatmul.msk.f32.vlgmr.msrb.gmra.mxu1 %vm591_vm8, %v4166_v49 }
 0x350   : > { %4197 = vmatpush.msk.msrb.mxu3 %vm595_vm7, %v2416_v47 }
 0x353   : > { %v2185_v50 = vpop.permute.xlu1 %2184  ;;  %v2588_v62 = vpop.permute.xlu2 %2587 }
 0x354   : > { %v2270_v53 = vpop.permute.xlu0 %2269  ;;  %4176 = vmatpush.msk.msra.mxu0 %vm595_vm7, %v2185_v50 }
 0x355   : > { %4183 = vmatpush.msk.msra.mxu2 %vm595_vm7, %v2270_v53 }
 0x356   : > { %4177 = vmatmul.msk.f32.vlgmr.msra.gmra.mxu0 %vm591_vm8, %v4175_v51  ;;  %4184 = vmatmul.msk.f32.vlgmr.msra.gmra.mxu2 %vm591_vm8, %v4182_v55  ;;  %v5036_v55 = vld [vmem:[%s5286_s10] ss:$0 sm:$0xff] }
 0x357   : > { %4186 = vmatmul.msk.f32.vlgmr.msra.gmra.mxu3 %vm591_vm8, %v4181_v52  ;;  %4180 = vmatmul.msk.f32.vlgmr.msra.gmra.mxu1 %vm591_vm8, %v4178_v54 }
 0x358   : > { %4210 = vmatpush.msk.msra.mxu3 %vm595_vm7, %v2561_v56 }
 0x35b   : > { %v2326_v57 = vpop.permute.xlu1 %2325  ;;  %v2767_v9 = vpop.permute.xlu2 %2766 }
 0x35c   : > { %v2386_v59 = vpop.permute.xlu0 %2385  ;;  %4188 = vmatpush.msk.msrb.mxu0 %vm595_vm7, %v2326_v57 }
 0x35d   : > { %4194 = vmatpush.msk.msrb.mxu2 %vm595_vm7, %v2386_v59 }
 0x35e   : > { %4189 = vmatmul.msk.f32.vlgmr.msrb.gmra.mxu0 %vm591_vm8, %v4187_v58  ;;  %4195 = vmatmul.msk.f32.vlgmr.msrb.gmra.mxu2 %vm591_vm8, %v4193_v61 }
 0x35f   : > { %4206 = vmatpush.msk.msra.mxu2 %vm595_vm7, %v4792_v6  ;;  %4198 = vmatmul.msk.f32.vlgmr.msrb.gmra.mxu3 %vm591_vm8, %v4196_v60  ;;  %v4202_v6 = vld [vmem:[%s5279_s3 + $0x80] sm:$0xf] }
 0x363   : > { %v2446_v63 = vpop.permute.xlu1 %2445  ;;  %v1953_v41 = vpop.permute.xlu2 %1952 }
 0x364   : > { %v2356_v2 = vpop.permute.xlu0 %2355  ;;  %4200 = vmatpush.msk.msra.mxu0 %vm595_vm7, %v2446_v63 }
 0x365   : > { %4191 = vmatpush.msk.msrb.mxu1 %vm595_vm7, %v2356_v2 }
 0x366   : > { %4212 = vmatpush.msk.msrb.mxu0 %vm595_vm7, %v2588_v62  ;;  %4192 = vmatmul.msk.f32.vlgmr.msrb.gmra.mxu1 %vm591_vm8, %v4190_v0 }
 0x367   : > { %4201 = vmatmul.msk.f32.vlgmr.msra.gmra.mxu0 %vm591_vm8, %v4199_v1  ;;  %4211 = vmatmul.msk.f32.vlgmr.msra.gmra.mxu3 %vm591_vm8, %v4209_v4 }
 0x368   : > { %4207 = vmatmul.msk.f32.vlgmr.msra.gmra.mxu2 %vm591_vm8, %v4205_v5 }
 0x36b   : > { %v2647_v21 = vpop.permute.xlu1 %2646 }
 0x36c   : > { %v2476_v10 = vpop.permute.xlu0 %2475  ;;  %4218 = vmatpush.msk.msrb.mxu2 %vm595_vm7, %v2647_v21 }
 0x36d   : > { %4203 = vmatpush.msk.msra.mxu1 %vm595_vm7, %v2476_v10 }
 0x36e   : > { %4230 = vmatpush.msk.msra.mxu2 %vm595_vm7, %v2767_v9  ;;  %4204 = vmatmul.msk.f32.vlgmr.msra.gmra.mxu1 %vm591_vm8, %v4202_v6 }
 0x36f   : > { %4213 = vmatmul.msk.f32.vlgmr.msrb.gmra.mxu0 %vm591_vm8, %v4208_v8  ;;  %v2253_v8 = vpop.permute.xlu2 %2252 }
 0x370   : > { %4219 = vmatmul.msk.f32.vlgmr.msrb.gmra.mxu2 %vm591_vm8, %v4217_v11 }
 0x373   : > { %v2617_v12 = vpop.permute.xlu1 %2616 }
 0x374   : > { %v2677_v15 = vpop.permute.xlu0 %2676  ;;  %4215 = vmatpush.msk.msrb.mxu1 %vm595_vm7, %v2617_v12 }
 0x375   : > { %4221 = vmatpush.msk.msrb.mxu3 %vm595_vm7, %v2677_v15 }
 0x376   : > { %4216 = vmatmul.msk.f32.vlgmr.msrb.gmra.mxu1 %vm591_vm8, %v4214_v13  ;;  %4222 = vmatmul.msk.f32.vlgmr.msrb.gmra.mxu3 %vm591_vm8, %v4220_v14 }
 0x377   : > { %4233 = vmatpush.msk.msra.mxu3 %vm595_vm7, %v4806_v7 }
 0x378   : > { %4231 = vmatmul.msk.f32.vlgmr.msra.gmra.mxu2 %vm591_vm8, %v4229_v16 }
 0x37b   : > { %v2737_v17 = vpop.permute.xlu1 %2736 }
 0x37c   : > { %v2707_v20 = vpop.permute.xlu0 %2706  ;;  %4227 = vmatpush.msk.msra.mxu1 %vm595_vm7, %v2737_v17 }
 0x37d   : > { %4224 = vmatpush.msk.msra.mxu0 %vm595_vm7, %v2707_v20 }
 0x37e   : > { %4225 = vmatmul.msk.f32.vlgmr.msra.gmra.mxu0 %vm591_vm8, %v4223_v18  ;;  %4234 = vmatmul.msk.f32.vlgmr.msra.gmra.mxu3 %vm591_vm8, %v4232_v19 }
 0x37f   : > { %4228 = vmatmul.msk.f32.vlgmr.msra.gmra.mxu1 %vm591_vm8, %v4226_v22 }
 0x383   : > { %v1963_v47 = vpop.permute.xlu1 %1962 }
 0x384   : > { %v2244_v1 = vpop.permute.xlu0 %2243 }
 0x398   : > { %v1797_v26 = vpop.f32.mrf.mxu3 }
 0x3aa   : > { %v1711_v7 = vpop.f32.mrf.mxu0 }
 0x3b1   : > { %v1767_v23 = vpop.f32.mrf.mxu2 }
 0x3b2   : > { %v1827_v28 = vpop.f32.mrf.mxu0 }
 0x3b3   : > { %v1738_v24 = vpop.f32.mrf.mxu1 }
 0x3b4   : > { %v1739_v25 = vadd.f32 %v1738_v24, %v1711_v7 }
 0x3b6   : > { %v1770_v27 = vadd.f32 %v1767_v23, %v1739_v25 }
 0x3b8   : > { %v1800_v29 = vadd.f32 %v1797_v26, %v1770_v27 }
 0x3ba   : > { %v1887_v30 = vpop.f32.mrf.mxu2  ;;  %v1830_v31 = vadd.f32 %v1827_v28, %v1800_v29  ;;  %v1945_v36 = vpop.f32.mrf.mxu0 }
 0x3bb   : > { %v1857_v32 = vpop.f32.mrf.mxu1  ;;  %v2535_v28 = vpop.permute.xlu0 %2534 }
 0x3bc   : > { %v1860_v33 = vadd.f32 %v1857_v32, %v1830_v31 }
 0x3be   : > { %v1890_v34 = vadd.f32 %v1887_v30, %v1860_v33  ;;  %v2544_v33 = vpop.permute.xlu2 %2543 }
 0x3c1   : > { %v1917_v35 = vpop.f32.mrf.mxu3 }
 0x3c2   : > { %v1920_v37 = vadd.f32 %v1917_v35, %v1890_v34  ;;  %v2029_v39 = vpop.f32.mrf.mxu2 }
 0x3c4   : > { %v2002_v38 = vpop.f32.mrf.mxu1  ;;  %v1948_v40 = vadd.f32 %v1945_v36, %v1920_v37 }
 0x3c5   : > { %v2030_v44 = vadd.f32 %v2029_v39, %v2002_v38 }
 0x3c6   : > { %v1955_v43 = vadd.f32 %v1953_v41, %v1948_v40 }
 0x3c8   : > { %vm1956_vm10 = vcmp.ge.f32.partialorder %v1955_v43, 0.0  ;;  %v1958_v45 = vmul.f32 %v5030_v42, %v1955_v43 }
 0x3c9   : > { %v2058_v46 = vpop.f32.mrf.mxu3 }
 0x3ca   : > { %v2061_v48 = vadd.f32 %v2058_v46, %v2030_v44  ;;  %v1959_v49 = vsel %vm1956_vm10, %v1955_v43, %v1958_v45  ;;  %v2148_v54 = vpop.f32.mrf.mxu2 }
 0x3cb   : > { %v2088_v50 = vpop.f32.mrf.mxu0  ;;  %v1965_v51 = vsub.f32 %v1959_v49, %v1963_v47 }
 0x3cc   : > { %v2091_v52 = vadd.f32 %v2088_v50, %v2061_v48  ;;  %v2118_v53 = vpop.f32.mrf.mxu1 }
 0x3cd   : > { %v1966_v56 = vmul.f32 %v5036_v55, %v1965_v51  ;;  %v2826_v51 = vpop.permute.xlu1 %2825 }
 0x3ce   : > { %v2121_v57 = vadd.f32 %v2118_v53, %v2091_v52 }
 0x3cf   : > { %1968 = vrot.lane.b32.xlu1 %v1966_v56, %s4410_s29 }
 0x3d0   : > { %v2151_v58 = vadd.f32 %v2148_v54, %v2121_v57  ;;  %v2835_v54 = vpop.permute.xlu0 %2834 }
 0x3d2   : > { %v2178_v59 = vpop.f32.mrf.mxu3 }
 0x3d3   : > { %v2181_v60 = vadd.f32 %v2178_v59, %v2151_v58  ;;  %v2208_v61 = vpop.f32.mrf.mxu0 }
 0x3d4   : > { %v2236_v63 = vpop.f32.mrf.mxu1 }
 0x3d5   : > { %v2211_v62 = vadd.f32 %v2208_v61, %v2181_v60 }
 0x3d7   : > { %v2239_v0 = vadd.f32 %v2236_v63, %v2211_v62 }
 0x3d9   : > { %v2246_v2 = vadd.f32 %v2244_v1, %v2239_v0  ;;  %v2293_v21 = vpop.f32.mrf.mxu2 }
 0x3da   : > { %v2320_v4 = vpop.f32.mrf.mxu3 }
 0x3db   : > { %vm2247_vm11 = vcmp.ge.f32.partialorder %v2246_v2, 0.0  ;;  %v2248_v5 = vmul.f32 %v2246_v2, %v5030_v42  ;;  %v2349_v6 = vpop.f32.mrf.mxu0  ;;  %v2321_v9 = vadd.f32 %v2320_v4, %v2293_v21  ;;  %v3922_v4 = vld [vmem:[%s5284_s8] sm:$0xf]  ;;  %v4240_v21 = vld [vmem:[%s5280_s4 + $0x8] sm:$0xf] }
 0x3dd   : > { %v2249_v10 = vsel %vm2247_vm11, %v2246_v2, %v2248_v5  ;;  %v2352_v13 = vadd.f32 %v2349_v6, %v2321_v9  ;;  %v4235_v5 = vld [vmem:[%s5280_s4 + $0x4] sm:$0xf]  ;;  %v4246_v9 = vld [vmem:[%s5280_s4 + $0x10] sm:$0xf] }
 0x3de   : > { %v2255_v11 = vsub.f32 %v2249_v10, %v2253_v8  ;;  %v4252_v8 = vld [vmem:[%s5280_s4 + $0x18] sm:$0xf] }
 0x3e0   : > { %v2256_v12 = vmul.f32 %v5036_v55, %v2255_v11 }
 0x3e1   : > { %v2409_v15 = vpop.f32.mrf.mxu2 }
 0x3e2   : > { %2258 = vrot.lane.b32.xlu2 %v2256_v12, %s4410_s29  ;;  %v2439_v18 = vpop.f32.mrf.mxu3 }
 0x3e3   : > { %v2379_v14 = vpop.f32.mrf.mxu1 }
 0x3e4   : > { %v2382_v16 = vadd.f32 %v2379_v14, %v2352_v13  ;;  %v2469_v17 = vpop.f32.mrf.mxu0  ;;  %v4243_v13 = vld [vmem:[%s5280_s4 + $0xc] sm:$0xf]  ;;  %v2846_v14 = vld [vmem:[%s5280_s4] sm:$0xf] }
 0x3e6   : > { %v2412_v19 = vadd.f32 %v2409_v15, %v2382_v16  ;;  %v4255_v15 = vld [vmem:[%s5280_s4 + $0x1c] sm:$0xf]  ;;  %v4249_v16 = vld [vmem:[%s5280_s4 + $0x14] sm:$0xf] }
 0x3e8   : > { %v2442_v20 = vadd.f32 %v2439_v18, %v2412_v19 }
 0x3ea   : > { %v2472_v22 = vadd.f32 %v2469_v17, %v2442_v20  ;;  %v2584_v25 = vpop.f32.mrf.mxu3 }
 0x3eb   : > { %v2499_v7 = vpop.f32.mrf.mxu1  ;;  %v2527_v23 = vpop.f32.mrf.mxu2 }
 0x3ec   : > { %v2502_v24 = vadd.f32 %v2499_v7, %v2472_v22  ;;  %v2611_v26 = vpop.f32.mrf.mxu0  ;;  %v4267_v7 = vld [vmem:[%s5280_s4 + $0x2c] sm:$0xf] }
 0x3ed   : > { %v2612_v30 = vadd.f32 %v2611_v26, %v2584_v25  ;;  %v4264_v26 = vld [vmem:[%s5280_s4 + $0x28] sm:$0xf] }
 0x3ee   : > { %v2530_v27 = vadd.f32 %v2527_v23, %v2502_v24  ;;  %v4258_v23 = vld [vmem:[%s5280_s4 + $0x20] sm:$0xf] }
 0x3f0   : > { %v2537_v29 = vadd.f32 %v2535_v28, %v2530_v27  ;;  %v4279_v28 = vld [vmem:[%s5280_s4 + $0x3c] sm:$0xf] }
 0x3f2   : > { %vm2538_vm12 = vcmp.ge.f32.partialorder %v2537_v29, 0.0  ;;  %v2539_v31 = vmul.f32 %v2537_v29, %v5030_v42 }
 0x3f3   : > { %v2640_v32 = vpop.f32.mrf.mxu1  ;;  %v2670_v36 = vpop.f32.mrf.mxu2 }
 0x3f4   : > { %v2643_v34 = vadd.f32 %v2640_v32, %v2612_v30  ;;  %v2540_v35 = vsel %vm2538_vm12, %v2537_v29, %v2539_v31  ;;  %v4270_v29 = vld [vmem:[%s5280_s4 + $0x30] sm:$0xf]  ;;  %v4276_v31 = vld [vmem:[%s5280_s4 + $0x38] sm:$0xf] }
 0x3f5   : > { %v2546_v37 = vsub.f32 %v2540_v35, %v2544_v33  ;;  %v4282_v33 = vld [vmem:[%s5280_s4 + $0x40] sm:$0xf] }
 0x3f6   : > { %v2673_v39 = vadd.f32 %v2670_v36, %v2643_v34  ;;  %v4288_v34 = vld [vmem:[%s5280_s4 + $0x48] sm:$0xf] }
 0x3f7   : > { %v2547_v38 = vmul.f32 %v5036_v55, %v2546_v37  ;;  %v4261_v37 = vld [vmem:[%s5280_s4 + $0x24] sm:$0xf] }
 0x3f9   : > { %v2700_v40 = vpop.f32.mrf.mxu3  ;;  %2549 = vrot.lane.b32.xlu0 %v2547_v38, %s4410_s29  ;;  %v4291_v38 = vld [vmem:[%s5280_s4 + $0x4c] sm:$0xf] }
 0x3fa   : > { %v2703_v41 = vadd.f32 %v2700_v40, %v2673_v39  ;;  %v4294_v40 = vld [vmem:[%s5280_s4 + $0x50] sm:$0xf] }
 0x3fb   : > { %v2730_v43 = vpop.f32.mrf.mxu0  ;;  %v2790_v46 = vpop.f32.mrf.mxu2 }
 0x3fc   : > { %v2733_v44 = vadd.f32 %v2730_v43, %v2703_v41  ;;  %v2760_v45 = vpop.f32.mrf.mxu1 }
 0x3fe   : > { %v2763_v47 = vadd.f32 %v2760_v45, %v2733_v44  ;;  %v4273_v44 = vld [vmem:[%s5280_s4 + $0x34] sm:$0xf] }
 0x400   : > { %v2793_v48 = vadd.f32 %v2790_v46, %v2763_v47  ;;  %v4300_v46 = vld [vmem:[%s5280_s4 + $0x58] sm:$0xf]  ;;  %v4303_v47 = vld [vmem:[%s5280_s4 + $0x5c] sm:$0xf] }
 0x401   : > { %v2818_v49 = vpop.f32.mrf.mxu3 }
 0x402   : > { %v2821_v50 = vadd.f32 %v2818_v49, %v2793_v48  ;;  %v4306_v48 = vld [vmem:[%s5280_s4 + $0x60] sm:$0xf] }
 0x404   : > { %v2828_v52 = vadd.f32 %v2826_v51, %v2821_v50  ;;  %v4285_v51 = vld [vmem:[%s5280_s4 + $0x44] sm:$0xf] }
 0x406   : > { %vm2829_vm13 = vcmp.ge.f32.partialorder %v2828_v52, 0.0  ;;  %v2830_v53 = vmul.f32 %v2828_v52, %v5030_v42 }
 0x408   : > { %v2831_v56 = vsel %vm2829_vm13, %v2828_v52, %v2830_v53  ;;  %v4315_v53 = vld [vmem:[%s5280_s4 + $0x6c] sm:$0xf] }
 0x409   : > { %v2837_v57 = vsub.f32 %v2831_v56, %v2835_v54  ;;  %v4312_v54 = vld [vmem:[%s5280_s4 + $0x68] sm:$0xf] }
 0x40b   : > { %v2838_v58 = vmul.f32 %v5036_v55, %v2837_v57 }
 0x40d   : > { %2840 = vrot.lane.b32.xlu1 %v2838_v58, %s4410_s29  ;;  %v4297_v58 = vld [vmem:[%s5280_s4 + $0x54] sm:$0xf] }
 0x43c   : > { %v2259_v59 = vpop.permute.xlu2 %2258 }
 0x43d   : > { %2262 = vst.msk [vmem:[#allocation4 + $0x4] sm:$0xf] %vm458_vm6, %v2259_v59 }
 0x441   : > { %v1969_v60 = vpop.permute.xlu1 %1968 }
 0x442   : > { %1971 = vst.msk [vmem:[#allocation4] sm:$0xf] %vm458_vm6, %v1969_v60  ;;  %v4324_v60 = vld [vmem:[%s5280_s4 + $0x78] sm:$0xf] }
 0x444   : > { %v2847_v61 = vld [vmem:[#allocation4 + $0x4] sm:$0xf] }
 0x445   : > { %4236 = vmatpush.msk.msrb.mxu0 %vm595_vm7, %v2847_v61 }
 0x446   : > { %4237 = vmatmul.msk.f32.vlgmr.msrb.gmra.mxu0 %vm591_vm8, %v4235_v5  ;;  %v4330_v5 = vld [vmem:[%s5280_s4 + $0x80] sm:$0xf] }
 0x449   : > { %v2845_v62 = vld [vmem:[#allocation4] sm:$0xf] }
 0x44a   : > { %4238 = vmatpush.msk.msrb.mxu1 %vm595_vm7, %v2845_v62  ;;  %2904 = vrot.lane.b32.xlu2 %v2845_v62, %s4412_s12 }
 0x44b   : > { %3324 = vrot.lane.b32.xlu0 %v2845_v62, %s4415_s15  ;;  %2964 = vrot.lane.b32.xlu1 %v2845_v62, %s4411_s30 }
 0x44c   : > { %4239 = vmatmul.msk.f32.vlgmr.msrb.gmra.mxu1 %vm591_vm8, %v2846_v14 }
 0x452   : > { %3204 = vrot.lane.b32.xlu2 %v2845_v62, %s4414_s14 }
 0x453   : > { %2934 = vrot.lane.b32.xlu0 %v2847_v61, %s4412_s12  ;;  %3264 = vrot.lane.b32.xlu1 %v2845_v62, %s4413_s13 }
 0x45a   : > { %2994 = vrot.lane.b32.xlu2 %v2847_v61, %s4411_s30 }
 0x45b   : > { %3294 = vrot.lane.b32.xlu0 %v2847_v61, %s4413_s13  ;;  %3234 = vrot.lane.b32.xlu1 %v2847_v61, %s4414_s14 }
 0x46b   : > { %v2550_v42 = vpop.permute.xlu0 %2549 }
 0x46c   : > { %2553 = vst.msk [vmem:[#allocation4 + $0x8] sm:$0xf] %vm458_vm6, %v2550_v42  ;;  %v4309_v42 = vld [vmem:[%s5280_s4 + $0x64] sm:$0xf] }
 0x473   : > { %v3022_v55 = vld [vmem:[#allocation4 + $0x8] sm:$0xf] }
 0x474   : > { %3384 = vrot.lane.b32.xlu2 %v3022_v55, %s4414_s14  ;;  %3084 = vrot.lane.b32.xlu1 %v3022_v55, %s4412_s12 }
 0x475   : > { %3144 = vrot.lane.b32.xlu0 %v3022_v55, %s4411_s30 }
 0x47c   : > { %3444 = vrot.lane.b32.xlu1 %v3022_v55, %s4413_s13 }
 0x47f   : > { %v2841_v63 = vpop.permute.xlu1 %2840 }
 0x480   : > { %2844 = vst.msk [vmem:[#allocation4 + $0xc] sm:$0xf] %vm458_vm6, %v2841_v63  ;;  %v4318_v63 = vld [vmem:[%s5280_s4 + $0x70] sm:$0xf] }
 0x487   : > { %v3052_v0 = vld [vmem:[#allocation4 + $0xc] sm:$0xf] }
 0x488   : > { %3174 = vrot.lane.b32.xlu2 %v3052_v0, %s4411_s30  ;;  %3414 = vrot.lane.b32.xlu1 %v3052_v0, %s4414_s14 }
 0x489   : > { %3114 = vrot.lane.b32.xlu0 %v3052_v0, %s4412_s12 }
 0x490   : > { %3354 = vrot.lane.b32.xlu2 %v2847_v61, %s4415_s15  ;;  %3624 = vrot.lane.b32.xlu1 %v2845_v62, %s4416_s16 }
 0x491   : > { %3504 = vrot.lane.b32.xlu0 %v3022_v55, %s4415_s15 }
 0x498   : > { %3564 = vrot.lane.b32.xlu2 %v2845_v62, %s4417_s19  ;;  %3594 = vrot.lane.b32.xlu1 %v2847_v61, %s4417_s19 }
 0x499   : > { %3654 = vrot.lane.b32.xlu0 %v2847_v61, %s4416_s16 }
 0x4a0   : > { %3534 = vrot.lane.b32.xlu2 %v3052_v0, %s4415_s15  ;;  %3774 = vrot.lane.b32.xlu1 %v3052_v0, %s4417_s19 }
 0x4a1   : > { %3474 = vrot.lane.b32.xlu0 %v3052_v0, %s4413_s13 }
 0x4a4   : > { %v2905_v1 = vpop.permute.xlu2 %2904 }
 0x4a5   : > { %4241 = vmatpush.msk.msrb.mxu2 %vm595_vm7, %v2905_v1  ;;  %v4321_v1 = vld [vmem:[%s5280_s4 + $0x74] sm:$0xf] }
 0x4a6   : > { %4242 = vmatmul.msk.f32.vlgmr.msrb.gmra.mxu2 %vm591_vm8, %v4240_v21  ;;  %v4333_v21 = vld [vmem:[%s5280_s4 + $0x84] sm:$0xf] }
 0x4a7   : > { %4253 = vmatpush.msk.msra.mxu2 %vm595_vm7, %v3022_v55 }
 0x4a8   : > { %3744 = vrot.lane.b32.xlu2 %v3022_v55, %s4417_s19  ;;  %3804 = vrot.lane.b32.xlu1 %v3022_v55, %s4416_s16  ;;  %s4013_s19 = sld [smem:[#allocation5 + $0x3]] }
 0x4a9   : > { %3684 = vrot.lane.b32.xlu0 %v2845_v62, %s4418_s20 }
 0x4ac   : > { %v3205_v2 = vpop.permute.xlu2 %3204 }
 0x4ae   : > { %4254 = vmatmul.msk.f32.vlgmr.msra.gmra.mxu2 %vm591_vm8, %v4252_v8 }
 0x4b0   : > { %3714 = vrot.lane.b32.xlu2 %v2847_v61, %s4418_s20  ;;  %3925 = vperm.xlu1 %4376, %v3922_v4   ;;  %v4327_v61 = vld [vmem:[%s5280_s4 + $0x7c] sm:$0xf] }
 0x4b1   : > { %3864 = vrot.lane.b32.xlu0 %v3022_v55, %s4418_s20 }
 0x4b4   : > { %v2995_v6 = vpop.permute.xlu2 %2994 }
 0x4b5   : > { %4250 = vmatpush.msk.msra.mxu1 %vm595_vm7, %v2995_v6 }
 0x4b6   : > { %4251 = vmatmul.msk.f32.vlgmr.msra.gmra.mxu1 %vm591_vm8, %v4249_v16 }
 0x4b8   : > { %3894 = vrot.lane.b32.xlu2 %v3052_v0, %s4418_s20 }
 0x4b9   : > { %3834 = vrot.lane.b32.xlu0 %v3052_v0, %s4416_s16 }
 0x4bd   : > { %v2965_v10 = vpop.permute.xlu1 %2964  ;;  %v3325_v11 = vpop.permute.xlu0 %3324 }
 0x4be   : > { %4247 = vmatpush.msk.msra.mxu0 %vm595_vm7, %v2965_v10 }
 0x4bf   : > { %4248 = vmatmul.msk.f32.vlgmr.msra.gmra.mxu0 %vm591_vm8, %v4246_v9 }
 0x4c3   : > { %v2873_v8 = vpop.f32.mrf.mxu0 }
 0x4c5   : > { %v2935_v12 = vpop.permute.xlu0 %2934  ;;  %v3265_v17 = vpop.permute.xlu1 %3264 }
 0x4c6   : > { %4244 = vmatpush.msk.msrb.mxu3 %vm595_vm7, %v2935_v12 }
 0x4c7   : > { %4245 = vmatmul.msk.f32.vlgmr.msrb.gmra.mxu3 %vm591_vm8, %v4243_v13 }
 0x4c8   : > { %4256 = vmatpush.msk.msra.mxu3 %vm595_vm7, %v3052_v0  ;;  %v4339_v0 = vld [vmem:[%s5280_s4 + $0x8c] sm:$0xf] }
 0x4c9   : > { %v2899_v9 = vpop.f32.mrf.mxu1 }
 0x4cd   : > { %v3235_v19 = vpop.permute.xlu1 %3234  ;;  %v3295_v20 = vpop.permute.xlu0 %3294 }
 0x4ce   : > { %v3385_v18 = vpop.permute.xlu2 %3384 }
 0x4cf   : > { %4257 = vmatmul.msk.f32.vlgmr.msra.gmra.mxu3 %vm591_vm8, %v4255_v15 }
 0x4e2   : > { %v3175_v22 = vpop.permute.xlu2 %3174 }
 0x4e3   : > { %4268 = vmatpush.msk.msrb.mxu3 %vm595_vm7, %v3175_v22 }
 0x4e4   : > { %4269 = vmatmul.msk.f32.vlgmr.msrb.gmra.mxu3 %vm591_vm8, %v4267_v7 }
 0x4e5   : > { %4280 = vmatpush.msk.msra.mxu3 %vm595_vm7, %v3295_v20 }
 0x4e6   : > { %v3085_v24 = vpop.permute.xlu1 %3084 }
 0x4e7   : > { %v3145_v25 = vpop.permute.xlu0 %3144  ;;  %4259 = vmatpush.msk.msrb.mxu0 %vm595_vm7, %v3085_v24 }
 0x4e8   : > { %4265 = vmatpush.msk.msrb.mxu2 %vm595_vm7, %v3145_v25  ;;  %4260 = vmatmul.msk.f32.vlgmr.msrb.gmra.mxu0 %vm591_vm8, %v4258_v23 }
 0x4e9   : > { %4271 = vmatpush.msk.msra.mxu0 %vm595_vm7, %v3205_v2  ;;  %4266 = vmatmul.msk.f32.vlgmr.msrb.gmra.mxu2 %vm591_vm8, %v4264_v26  ;;  %v4336_v2 = vld [vmem:[%s5280_s4 + $0x88] sm:$0xf] }
 0x4ea   : > { %4277 = vmatpush.msk.msra.mxu2 %vm595_vm7, %v3265_v17  ;;  %v3355_v27 = vpop.permute.xlu2 %3354 }
 0x4eb   : > { %4283 = vmatpush.msk.msrb.mxu0 %vm595_vm7, %v3325_v11  ;;  %v2900_v11 = vadd.f32 %v2899_v9, %v2873_v8 }
 0x4ec   : > { %4289 = vmatpush.msk.msrb.mxu2 %vm595_vm7, %v3385_v18  ;;  %4281 = vmatmul.msk.f32.vlgmr.msra.gmra.mxu3 %vm591_vm8, %v4279_v28 }
 0x4ee   : > { %v3445_v30 = vpop.permute.xlu1 %3444 }
 0x4f0   : > { %4272 = vmatmul.msk.f32.vlgmr.msra.gmra.mxu0 %vm591_vm8, %v4270_v29 }
 0x4f1   : > { %4295 = vmatpush.msk.msra.mxu0 %vm595_vm7, %v3445_v30  ;;  %4278 = vmatmul.msk.f32.vlgmr.msra.gmra.mxu2 %vm591_vm8, %v4276_v31 }
 0x4f2   : > { %v3565_v32 = vpop.permute.xlu2 %3564 }
 0x4f8   : > { %4284 = vmatmul.msk.f32.vlgmr.msrb.gmra.mxu0 %vm591_vm8, %v4282_v33 }
 0x4f9   : > { %4307 = vmatpush.msk.msrb.mxu0 %vm595_vm7, %v3565_v32  ;;  %4290 = vmatmul.msk.f32.vlgmr.msrb.gmra.mxu2 %vm591_vm8, %v4288_v34 }
 0x4fa   : > { %v3535_v35 = vpop.permute.xlu2 %3534  ;;  %v3415_v36 = vpop.permute.xlu1 %3414 }
 0x4fb   : > { %v3115_v39 = vpop.permute.xlu0 %3114  ;;  %4292 = vmatpush.msk.msrb.mxu3 %vm595_vm7, %v3415_v36 }
 0x4fc   : > { %4262 = vmatpush.msk.msrb.mxu1 %vm595_vm7, %v3115_v39  ;;  %4293 = vmatmul.msk.f32.vlgmr.msrb.gmra.mxu3 %vm591_vm8, %v4291_v38 }
 0x4fd   : > { %4304 = vmatpush.msk.msra.mxu3 %vm595_vm7, %v3535_v35  ;;  %4263 = vmatmul.msk.f32.vlgmr.msrb.gmra.mxu1 %vm591_vm8, %v4261_v37 }
 0x4fe   : > { %4274 = vmatpush.msk.msra.mxu1 %vm595_vm7, %v3235_v19 }
 0x500   : > { %4286 = vmatpush.msk.msrb.mxu1 %vm595_vm7, %v3355_v27  ;;  %4296 = vmatmul.msk.f32.vlgmr.msra.gmra.mxu0 %vm591_vm8, %v4294_v40 }
 0x502   : > { %v3745_v41 = vpop.permute.xlu2 %3744  ;;  %v3625_v43 = vpop.permute.xlu1 %3624 }
 0x503   : > { %v3505_v45 = vpop.permute.xlu0 %3504 }
 0x504   : > { %4301 = vmatpush.msk.msra.mxu2 %vm595_vm7, %v3505_v45  ;;  %4305 = vmatmul.msk.f32.vlgmr.msra.gmra.mxu3 %vm591_vm8, %v4303_v47 }
 0x505   : > { %4275 = vmatmul.msk.f32.vlgmr.msra.gmra.mxu1 %vm591_vm8, %v4273_v44  ;;  %4302 = vmatmul.msk.f32.vlgmr.msra.gmra.mxu2 %vm591_vm8, %v4300_v46 }
 0x506   : > { %4313 = vmatpush.msk.msrb.mxu2 %vm595_vm7, %v3625_v43 }
 0x508   : > { %4325 = vmatpush.msk.msra.mxu2 %vm595_vm7, %v3745_v41  ;;  %4308 = vmatmul.msk.f32.vlgmr.msrb.gmra.mxu0 %vm591_vm8, %v4306_v48 }
 0x50a   : > { %v3715_v49 = vpop.permute.xlu2 %3714  ;;  %v3595_v50 = vpop.permute.xlu1 %3594 }
 0x50b   : > { %v3655_v52 = vpop.permute.xlu0 %3654 }
 0x50c   : > { %4316 = vmatpush.msk.msrb.mxu3 %vm595_vm7, %v3655_v52 }
 0x50d   : > { %4287 = vmatmul.msk.f32.vlgmr.msrb.gmra.mxu1 %vm591_vm8, %v4285_v51  ;;  %4317 = vmatmul.msk.f32.vlgmr.msrb.gmra.mxu3 %vm591_vm8, %v4315_v53 }
 0x50e   : > { %4314 = vmatmul.msk.f32.vlgmr.msrb.gmra.mxu2 %vm591_vm8, %v4312_v54 }
 0x512   : > { %v3895_v56 = vpop.permute.xlu2 %3894  ;;  %v3775_v57 = vpop.permute.xlu1 %3774 }
 0x513   : > { %v3475_v59 = vpop.permute.xlu0 %3474  ;;  %4328 = vmatpush.msk.msra.mxu3 %vm595_vm7, %v3775_v57 }
 0x514   : > { %4298 = vmatpush.msk.msra.mxu1 %vm595_vm7, %v3475_v59 }
 0x515   : > { %4340 = vmatpush.msk.msrb.mxu3 %vm595_vm7, %v3895_v56  ;;  %4299 = vmatmul.msk.f32.vlgmr.msra.gmra.mxu1 %vm591_vm8, %v4297_v58 }
 0x516   : > { %4310 = vmatpush.msk.msrb.mxu1 %vm595_vm7, %v3595_v50  ;;  %4326 = vmatmul.msk.f32.vlgmr.msra.gmra.mxu2 %vm591_vm8, %v4324_v60 }
 0x517   : > { %4329 = vmatmul.msk.f32.vlgmr.msra.gmra.mxu3 %vm591_vm8, %v4327_v61 }
 0x518   : > { %4322 = vmatpush.msk.msra.mxu1 %vm595_vm7, %v3715_v49 }
 0x51a   : > { %v3805_v62 = vpop.permute.xlu1 %3804 }
 0x51b   : > { %v3685_v55 = vpop.permute.xlu0 %3684 }
 0x51c   : > { %4319 = vmatpush.msk.msra.mxu0 %vm595_vm7, %v3685_v55 }
 0x51d   : > { %4311 = vmatmul.msk.f32.vlgmr.msrb.gmra.mxu1 %vm591_vm8, %v4309_v42  ;;  %4320 = vmatmul.msk.f32.vlgmr.msra.gmra.mxu0 %vm591_vm8, %v4318_v63 }
 0x51e   : > { %4331 = vmatpush.msk.msrb.mxu0 %vm595_vm7, %v3805_v62 }
 0x51f   : > { %4341 = vmatmul.msk.f32.vlgmr.msrb.gmra.mxu3 %vm591_vm8, %v4339_v0 }
 0x523   : > { %v3865_v4 = vpop.permute.xlu0 %3864 }
 0x524   : > { %4337 = vmatpush.msk.msrb.mxu2 %vm595_vm7, %v3865_v4 }
 0x525   : > { %4323 = vmatmul.msk.f32.vlgmr.msra.gmra.mxu1 %vm591_vm8, %v4321_v1  ;;  %4338 = vmatmul.msk.f32.vlgmr.msrb.gmra.mxu2 %vm591_vm8, %v4336_v2 }
 0x526   : > { %4332 = vmatmul.msk.f32.vlgmr.msrb.gmra.mxu0 %vm591_vm8, %v4330_v5 }
 0x529   : > { %v2928_v10 = vpop.f32.mrf.mxu2 }
 0x52a   : > { %v2931_v13 = vadd.f32 %v2928_v10, %v2900_v11 }
 0x52b   : > { %v3835_v6 = vpop.permute.xlu0 %3834 }
 0x52c   : > { %4334 = vmatpush.msk.msrb.mxu1 %vm595_vm7, %v3835_v6 }
 0x52d   : > { %4335 = vmatmul.msk.f32.vlgmr.msrb.gmra.mxu1 %vm591_vm8, %v4333_v21 }
 0x531   : > { %v3048_v16 = vpop.f32.mrf.mxu2 }
 0x533   : > { %v3018_v19 = vpop.f32.mrf.mxu1 }
 0x53c   : > { %v2988_v14 = vpop.f32.mrf.mxu0 }
 0x54a   : > { %v2958_v12 = vpop.f32.mrf.mxu3 }
 0x54b   : > { %v2961_v15 = vadd.f32 %v2958_v12, %v2931_v13 }
 0x54d   : > { %v2991_v18 = vadd.f32 %v2988_v14, %v2961_v15 }
 0x54f   : > { %v3021_v22 = vadd.f32 %v3018_v19, %v2991_v18 }
 0x551   : > { %v3051_v24 = vadd.f32 %v3048_v16, %v3021_v22  ;;  %v3926_v16 = vpop.permute.xlu1 %3925 }
 0x552   : > { %v3078_v17 = vpop.f32.mrf.mxu3 }
 0x553   : > { %v3081_v26 = vadd.f32 %v3078_v17, %v3051_v24  ;;  %v3930_v17 = vstv %s4013_s19 }
 0x565   : > { %v3108_v20 = vpop.f32.mrf.mxu0 }
 0x566   : > { %v3111_v28 = vadd.f32 %v3108_v20, %v3081_v26 }
 0x567   : > { %v3198_v23 = vpop.f32.mrf.mxu3 }
 0x56c   : > { %v3168_v7 = vpop.f32.mrf.mxu2 }
 0x56d   : > { %v3228_v25 = vpop.f32.mrf.mxu0 }
 0x56f   : > { %v3318_v30 = vpop.f32.mrf.mxu3 }
 0x574   : > { %v3288_v27 = vpop.f32.mrf.mxu2 }
 0x575   : > { %v3348_v33 = vpop.f32.mrf.mxu0 }
 0x57a   : > { %v3138_v29 = vpop.f32.mrf.mxu1 }
 0x57b   : > { %v3141_v31 = vadd.f32 %v3138_v29, %v3111_v28 }
 0x57c   : > { %v3408_v37 = vpop.f32.mrf.mxu2 }
 0x57d   : > { %v3171_v32 = vadd.f32 %v3168_v7, %v3141_v31  ;;  %v3468_v43 = vpop.f32.mrf.mxu0 }
 0x57f   : > { %v3201_v34 = vadd.f32 %v3198_v23, %v3171_v32  ;;  %v3438_v39 = vpop.f32.mrf.mxu3 }
 0x581   : > { %v3231_v35 = vadd.f32 %v3228_v25, %v3201_v34 }
 0x582   : > { %v3258_v36 = vpop.f32.mrf.mxu1 }
 0x583   : > { %v3261_v38 = vadd.f32 %v3258_v36, %v3231_v35 }
 0x585   : > { %v3291_v40 = vadd.f32 %v3288_v27, %v3261_v38  ;;  %v3588_v53 = vpop.f32.mrf.mxu0 }
 0x587   : > { %v3321_v41 = vadd.f32 %v3318_v30, %v3291_v40  ;;  %v3558_v49 = vpop.f32.mrf.mxu3 }
 0x588   : > { %v3528_v47 = vpop.f32.mrf.mxu2 }
 0x589   : > { %v3351_v44 = vadd.f32 %v3348_v33, %v3321_v41 }
 0x58a   : > { %v3378_v45 = vpop.f32.mrf.mxu1 }
 0x58b   : > { %v3381_v46 = vadd.f32 %v3378_v45, %v3351_v44 }
 0x58d   : > { %v3411_v48 = vadd.f32 %v3408_v37, %v3381_v46 }
 0x58f   : > { %v3441_v50 = vadd.f32 %v3438_v39, %v3411_v48 }
 0x590   : > { %v3678_v59 = vpop.f32.mrf.mxu3 }
 0x591   : > { %v3471_v51 = vadd.f32 %v3468_v43, %v3441_v50  ;;  %v3648_v57 = vpop.f32.mrf.mxu2 }
 0x592   : > { %v3498_v52 = vpop.f32.mrf.mxu1 }
 0x593   : > { %v3501_v54 = vadd.f32 %v3498_v52, %v3471_v51 }
 0x595   : > { %v3531_v56 = vadd.f32 %v3528_v47, %v3501_v54 }
 0x597   : > { %v3561_v58 = vadd.f32 %v3558_v49, %v3531_v56 }
 0x599   : > { %v3591_v60 = vadd.f32 %v3588_v53, %v3561_v58  ;;  %v3768_v0 = vpop.f32.mrf.mxu2 }
 0x59a   : > { %v3618_v61 = vpop.f32.mrf.mxu1  ;;  %v3708_v42 = vpop.f32.mrf.mxu0 }
 0x59b   : > { %v3621_v62 = vadd.f32 %v3618_v61, %v3591_v60  ;;  %v3798_v4 = vpop.f32.mrf.mxu3 }
 0x59d   : > { %v3651_v55 = vadd.f32 %v3648_v57, %v3621_v62 }
 0x59f   : > { %v3681_v63 = vadd.f32 %v3678_v59, %v3651_v55 }
 0x5a1   : > { %v3711_v1 = vadd.f32 %v3708_v42, %v3681_v63 }
 0x5a2   : > { %v3738_v2 = vpop.f32.mrf.mxu1 }
 0x5a3   : > { %v3741_v5 = vadd.f32 %v3738_v2, %v3711_v1  ;;  %v3828_v6 = vpop.f32.mrf.mxu0  ;;  %v3918_v13 = vpop.f32.mrf.mxu3 }
 0x5a5   : > { %v3771_v21 = vadd.f32 %v3768_v0, %v3741_v5 }
 0x5a7   : > { %v3801_v8 = vadd.f32 %v3798_v4, %v3771_v21 }
 0x5a8   : > { %v3888_v11 = vpop.f32.mrf.mxu2 }
 0x5a9   : > { %v3831_v9 = vadd.f32 %v3828_v6, %v3801_v8 }
 0x5aa   : > { %v3858_v10 = vpop.f32.mrf.mxu1 }
 0x5ab   : > { %v3861_v12 = vadd.f32 %v3858_v10, %v3831_v9 }
 0x5ad   : > { %v3891_v14 = vadd.f32 %v3888_v11, %v3861_v12 }
 0x5af   : > { %v3921_v15 = vadd.f32 %v3918_v13, %v3891_v14 }
 0x5b1   : > { %v3928_v18 = vadd.f32 %v3926_v16, %v3921_v15 }
 0x5b3   : > { %vm3929_vm14 = vcmp.ge.f32.partialorder %v3928_v18, 0.0  ;;  %v3931_v19 = vmul.f32 %v3930_v17, %v3928_v18 }
 0x5b5   : > { %v3932_v20 = vsel %vm3929_vm14, %v3928_v18, %v3931_v19 }
 0x5b6   : > { %v3933_v22 = vadd.f32 %v3932_v20, %v4753_v3 }
 0x5b8   : > { %3935 = vst.msk [vmem:[%s398_s22] sm:$0xf] %vm3934_vm15, %v3933_v22 }
 0x5b9 PF: > { %s22_s17 = sadd.s32 1, %s4405_s17  }
 0x5ba   : > { %p19_p7 = scmp.ge.s32.totalorder %s22_s17, 4  }
 0x5bc   :  { %21 = sbr.rel (!%p19_p7) target bundleno = 1 (0x1), region = 213 }
 0x5c1   :  { %3955 = vsyncpa [#allocation6], 1 }
 0x5c2   :  { %3957 = vsyncpa [#allocation6 + $0x1], 1 }

</bundles_post_ra>
